<compile_context>
chip_gen: v5e
topology: v5e:2x2
jax: 0.10.0
libtpu: 0.0.40
codegen_flags: <defaults>
</compile_context>

<pallas_src>
import jax
import jax.numpy as jnp
from jax.experimental import pallas as pl
from jax.experimental.pallas import tpu as pltpu

C_IN = 256
C_OUT = 384
KH = KW = 3


def conv3_kernel(x_ref, w_ref, b_ref, o_ref, xcol_ref):
    """One batch block of B images.

    x_ref   : (B, H+2, W+2, Cin)   bf16 spatially pre-padded input block (VMEM)
    w_ref   : (9*Cin, Cout)        bf16 weights, (dh, dw, cin) flattened into K (VMEM)
    b_ref   : (1, Cout)            f32 bias (VMEM)
    o_ref   : (B, H*W, Cout)       f32 output block (VMEM, lane/sublane dense)
    xcol_ref: (B*H*W, 9*Cin)       bf16 scratch: full im2col matrix (matmul LHS)
    """
    B, Hp, Wp, Cin = x_ref.shape
    H, W = Hp - 2, Wp - 2
    Cout = o_ref.shape[-1]
    M = B * H * W

    # --- full im2col: 9 write-once copies into the dense (M, 9*Cin) LHS scratch ---
    # xcol[(b,h,w), (dh*3 + dw)*Cin + c] = x[b, h+dh, w+dw, c]
    # Lane writes land at multiples of 256; any sublane relayout happens inside these
    # small per-tap copies, never on the matmul LHS.
    for dh in range(KH):
        for dw in range(KW):
            k = dh * KW + dw
            xcol_ref[:, k * Cin:(k + 1) * Cin] = (
                x_ref[:, dh:dh + H, dw:dw + W, :].reshape(M, Cin))

    # --- single MXU matmul, K = 9*Cin = 2304; f32 accumulation stays in the MXU ---
    acc = jnp.dot(xcol_ref[...], w_ref[...], preferred_element_type=jnp.float32)

    # --- fused epilogue: bias + ReLU + dense store, one pass over the f32 result ---
    out = jnp.maximum(acc + b_ref[...], 0.0)
    o_ref[...] = out.reshape(B, H * W, Cout).astype(o_ref.dtype)


def _vmem_budget_and_limit():
    """Per-generation tile budget / scoped-VMEM limit (perf feedback):
    v5e ~12 MiB budget, v6e ~24-28 MiB, v7x ~20-24 MiB (v7x has only 64 MiB physical
    VMEM, so never copy a near-physical v6e setting there).  Best-effort detection via
    device_kind; conservative cross-generation fallback if detection fails."""
    try:
        kind = jax.devices()[0].device_kind.lower()
    except Exception:  # pragma: no cover - detection is best-effort only
        kind = ""
    if "v5 lite" in kind or "v5e" in kind:
        return 12 << 20, 24 << 20
    if "v6" in kind:
        return 26 << 20, 48 << 20
    if "7x" in kind or "v7" in kind:
        return 22 << 20, 40 << 20
    return 16 << 20, 32 << 20


def _pick_batch_block(N, H, W, tile_budget_bytes):
    """Largest batch block B that (a) divides N, (b) fits the VMEM tile budget
    (accounting for double-buffered input/output, the im2col scratch, the f32 matmul
    result temporary, and the double-buffered constant weight block), (c) keeps >= 2
    grid steps so both v7x TensorCores get work, preferring B with M = B*H*W % 8 == 0
    (sublane-aligned MXU rows)."""
    in_bytes = (H + 2) * (W + 2) * C_IN * 2          # bf16 padded input tile
    col_bytes = H * W * KH * KW * C_IN * 2           # bf16 im2col scratch (single buffer)
    out_bytes = H * W * C_OUT * 4                    # f32 output tile
    res_bytes = H * W * C_OUT * 4                    # f32 matmul-result temporary
    per_image = 2 * in_bytes + col_bytes + 2 * out_bytes + res_bytes
    fixed = 2 * KH * KW * C_IN * C_OUT * 2 + C_OUT * 4   # weights (2 bufs) + bias

    feasible = [1]
    for b in range(2, N + 1):
        if N % b:
            continue
        if N >= 2 and (N // b) < 2:
            continue                                 # >= 2 grid steps (v7x megacore)
        if fixed + b * per_image > tile_budget_bytes:
            continue
        feasible.append(b)
    aligned = [b for b in feasible if (b * H * W) % 8 == 0]
    return max(aligned) if aligned else max(feasible)


def conv3_nhwc_padded(x_pad, w_k, b2d, *, block_b=None):
    """Core pallas call on pre-padded NHWC bf16 input.

    x_pad : (N, H+2, W+2, Cin) bf16
    w_k   : (9*Cin, Cout)      bf16
    b2d   : (1, Cout)          f32
    returns (N, H*W, Cout)     f32
    """
    N, Hp, Wp, Cin = x_pad.shape
    assert Cin == C_IN
    H, W = Hp - 2, Wp - 2

    budget, vmem_limit = _vmem_budget_and_limit()
    B = block_b if block_b is not None else _pick_batch_block(N, H, W, budget)
    assert N % B == 0
    grid = (N // B,)

    flops = 2 * N * H * W * KH * KW * C_IN * C_OUT
    bytes_accessed = (
        N * Hp * Wp * C_IN * 2                 # bf16 input
        + KH * KW * C_IN * C_OUT * 2           # bf16 weights (constant block)
        + C_OUT * 4                            # f32 bias
        + N * H * W * C_OUT * 4                # f32 output
    )

    return pl.pallas_call(
        conv3_kernel,
        out_shape=jax.ShapeDtypeStruct((N, H * W, C_OUT), jnp.float32),
        grid=grid,
        in_specs=[
            pl.BlockSpec((B, Hp, Wp, C_IN), lambda n: (n, 0, 0, 0)),
            pl.BlockSpec((KH * KW * C_IN, C_OUT), lambda n: (0, 0)),
            pl.BlockSpec((1, C_OUT), lambda n: (0, 0)),
        ],
        out_specs=pl.BlockSpec((B, H * W, C_OUT), lambda n: (n, 0, 0)),
        scratch_shapes=[
            pltpu.VMEM((B * H * W, KH * KW * C_IN), jnp.bfloat16),  # im2col LHS scratch
        ],
        compiler_params=pltpu.CompilerParams(
            dimension_semantics=("parallel",),
            vmem_limit_bytes=vmem_limit),
        cost_estimate=pl.CostEstimate(
            flops=flops, transcendentals=0, bytes_accessed=bytes_accessed),
    )(x_pad, w_k, b2d)


def conv3_forward(x_nchw, w_oihw, b, *, block_b=None):
    """Conv2d(256, 384, kernel_size=3, padding=1) + ReLU, matching PyTorch semantics.

    x_nchw : (N, 256, H, W) float32
    w_oihw : (384, 256, 3, 3) float32
    b      : (384,) float32
    returns: (N, 384, H, W) float32
    """
    N, Cin, H, W = x_nchw.shape
    assert Cin == C_IN and w_oihw.shape == (C_OUT, C_IN, KH, KW)

    # Layout glue + bf16 operand cast (DMA moves bf16; MXU is bf16-native on all gens).
    # TODO(synk): in a full NHWC network this transpose/pad (and the one on the way out)
    # should be fused into the neighbouring layers instead of living here.
    x_nhwc = jnp.transpose(x_nchw, (0, 2, 3, 1)).astype(jnp.bfloat16)        # (N,H,W,Cin)
    x_pad = jnp.pad(x_nhwc, ((0, 0), (1, 1), (1, 1), (0, 0)))                # (N,H+2,W+2,Cin)
    # (Cout,Cin,3,3) -> (3,3,Cin,Cout) -> (9*Cin, Cout): K index = (dh*3+dw)*Cin + c,
    # matching the in-kernel im2col ordering.
    w_k = jnp.transpose(w_oihw, (2, 3, 1, 0)).reshape(KH * KW * C_IN, C_OUT)
    w_k = w_k.astype(jnp.bfloat16)
    b2d = b.reshape(1, C_OUT).astype(jnp.float32)

    out_flat = conv3_nhwc_padded(x_pad, w_k, b2d, block_b=block_b)           # (N,H*W,Cout)
    out_nhwc = out_flat.reshape(N, H, W, C_OUT)
    return jnp.transpose(out_nhwc, (0, 3, 1, 2)).astype(x_nchw.dtype)        # back to NCHW


if __name__ == "__main__":
    key = jax.random.PRNGKey(0)
    kx, kw, kb = jax.random.split(key, 3)

    # Small spatial size; channel counts are fixed by the module definition (256 -> 384).
    N, H, W = 2, 8, 8
    x = jax.random.normal(kx, (N, C_IN, H, W), jnp.float32)

    # Deterministic parameter init (same shapes as nn.Conv2d(256, 384, 3, padding=1)).
    fan_in = C_IN * KH * KW
    bound = 1.0 / (fan_in ** 0.5)
    w = jax.random.uniform(kw, (C_OUT, C_IN, KH, KW), jnp.float32, -bound, bound)
    b = jax.random.uniform(kb, (C_OUT,), jnp.float32, -bound, bound)

    fwd = jax.jit(conv3_forward)
    out = jax.block_until_ready(fwd(x, w, b))
    assert out.shape == (N, C_OUT, H, W)

    # Reference: same bf16 operand quantization, f32 accumulation (what the kernel does).
    x_bf = x.astype(jnp.bfloat16).astype(jnp.float32)
    w_bf = w.astype(jnp.bfloat16).astype(jnp.float32)
    ref = jax.lax.conv_general_dilated(
        x_bf, w_bf, window_strides=(1, 1), padding=((1, 1), (1, 1)),
        dimension_numbers=("NCHW", "OIHW", "NCHW"))
    ref = jnp.maximum(ref + b.reshape(1, C_OUT, 1, 1), 0.0)
    assert jnp.allclose(out, ref, rtol=2e-2, atol=2e-2), float(jnp.max(jnp.abs(out - ref)))

    print("KERNEL_OK")
</pallas_src>

<mosaic_0001>
module attributes {stable_mosaic.version = 11 : i64} {
  func.func @conv3_kernel(%arg0: i32, %arg1: memref<1x10x10x256xbf16, #tpu.memory_space<vmem>>, %arg2: memref<2304x384xbf16, #tpu.memory_space<vmem>>, %arg3: memref<1x384xf32, #tpu.memory_space<vmem>>, %arg4: memref<1x64x384xf32, #tpu.memory_space<vmem>>, %arg5: memref<64x2304xbf16, #tpu.memory_space<vmem>>) attributes {dimension_semantics = [#tpu.dimension_semantics<parallel>], iteration_bounds = array<i64: 2>, scalar_prefetch = 0 : i64, scratch_operands = 1 : i64, tpu.core_type = #tpu.core_type<tc>, window_params = [{transform_indices = @transform_0, window_bounds = array<i64: 1, 10, 10, 256>}, {pipeline_mode = #tpu.pipeline_mode<synchronous>, transform_indices = @transform_1, window_bounds = array<i64: 2304, 384>}, {pipeline_mode = #tpu.pipeline_mode<synchronous>, transform_indices = @transform_2, window_bounds = array<i64: 1, 384>}, {transform_indices = @transform_3, window_bounds = array<i64: 1, 64, 384>}]} {
    %c0 = arith.constant 0 : index
    %c0_0 = arith.constant 0 : index
    %c0_1 = arith.constant 0 : index
    %c0_2 = arith.constant 0 : index
    %0 = vector.load %arg1[%c0, %c0_0, %c0_1, %c0_2] : memref<1x10x10x256xbf16, #tpu.memory_space<vmem>>, vector<1x8x8x256xbf16>
    %1 = vector.shape_cast %0 : vector<1x8x8x256xbf16> to vector<64x256xbf16>
    %c0_3 = arith.constant 0 : index
    %c0_4 = arith.constant 0 : index
    %2 = vector.load %arg5[%c0_3, %c0_4] : memref<64x2304xbf16, #tpu.memory_space<vmem>>, vector<64x256xbf16>
    tpu.vector_store %arg5[%c0_3, %c0_4], %1 {strides = array<i32>} : memref<64x2304xbf16, #tpu.memory_space<vmem>>, vector<64x256xbf16>,
    %c0_5 = arith.constant 0 : index
    %c0_6 = arith.constant 0 : index
    %c1 = arith.constant 1 : index
    %c0_7 = arith.constant 0 : index
    %3 = vector.load %arg1[%c0_5, %c0_6, %c1, %c0_7] : memref<1x10x10x256xbf16, #tpu.memory_space<vmem>>, vector<1x8x8x256xbf16>
    %4 = vector.shape_cast %3 : vector<1x8x8x256xbf16> to vector<64x256xbf16>
    %c0_8 = arith.constant 0 : index
    %c256 = arith.constant 256 : index
    %5 = vector.load %arg5[%c0_8, %c256] : memref<64x2304xbf16, #tpu.memory_space<vmem>>, vector<64x256xbf16>
    tpu.vector_store %arg5[%c0_8, %c256], %4 {strides = array<i32>} : memref<64x2304xbf16, #tpu.memory_space<vmem>>, vector<64x256xbf16>,
    %c0_9 = arith.constant 0 : index
    %c0_10 = arith.constant 0 : index
    %c2 = arith.constant 2 : index
    %c0_11 = arith.constant 0 : index
    %6 = vector.load %arg1[%c0_9, %c0_10, %c2, %c0_11] : memref<1x10x10x256xbf16, #tpu.memory_space<vmem>>, vector<1x8x8x256xbf16>
    %7 = vector.shape_cast %6 : vector<1x8x8x256xbf16> to vector<64x256xbf16>
    %c0_12 = arith.constant 0 : index
    %c512 = arith.constant 512 : index
    %8 = vector.load %arg5[%c0_12, %c512] : memref<64x2304xbf16, #tpu.memory_space<vmem>>, vector<64x256xbf16>
    tpu.vector_store %arg5[%c0_12, %c512], %7 {strides = array<i32>} : memref<64x2304xbf16, #tpu.memory_space<vmem>>, vector<64x256xbf16>,
    %c0_13 = arith.constant 0 : index
    %c1_14 = arith.constant 1 : index
    %c0_15 = arith.constant 0 : index
    %c0_16 = arith.constant 0 : index
    %9 = vector.load %arg1[%c0_13, %c1_14, %c0_15, %c0_16] : memref<1x10x10x256xbf16, #tpu.memory_space<vmem>>, vector<1x8x8x256xbf16>
    %10 = vector.shape_cast %9 : vector<1x8x8x256xbf16> to vector<64x256xbf16>
    %c0_17 = arith.constant 0 : index
    %c768 = arith.constant 768 : index
    %11 = vector.load %arg5[%c0_17, %c768] : memref<64x2304xbf16, #tpu.memory_space<vmem>>, vector<64x256xbf16>
    tpu.vector_store %arg5[%c0_17, %c768], %10 {strides = array<i32>} : memref<64x2304xbf16, #tpu.memory_space<vmem>>, vector<64x256xbf16>,
    %c0_18 = arith.constant 0 : index
    %c1_19 = arith.constant 1 : index
    %c1_20 = arith.constant 1 : index
    %c0_21 = arith.constant 0 : index
    %12 = vector.load %arg1[%c0_18, %c1_19, %c1_20, %c0_21] : memref<1x10x10x256xbf16, #tpu.memory_space<vmem>>, vector<1x8x8x256xbf16>
    %13 = vector.shape_cast %12 : vector<1x8x8x256xbf16> to vector<64x256xbf16>
    %c0_22 = arith.constant 0 : index
    %c1024 = arith.constant 1024 : index
    %14 = vector.load %arg5[%c0_22, %c1024] : memref<64x2304xbf16, #tpu.memory_space<vmem>>, vector<64x256xbf16>
    tpu.vector_store %arg5[%c0_22, %c1024], %13 {strides = array<i32>} : memref<64x2304xbf16, #tpu.memory_space<vmem>>, vector<64x256xbf16>,
    %c0_23 = arith.constant 0 : index
    %c1_24 = arith.constant 1 : index
    %c2_25 = arith.constant 2 : index
    %c0_26 = arith.constant 0 : index
    %15 = vector.load %arg1[%c0_23, %c1_24, %c2_25, %c0_26] : memref<1x10x10x256xbf16, #tpu.memory_space<vmem>>, vector<1x8x8x256xbf16>
    %16 = vector.shape_cast %15 : vector<1x8x8x256xbf16> to vector<64x256xbf16>
    %c0_27 = arith.constant 0 : index
    %c1280 = arith.constant 1280 : index
    %17 = vector.load %arg5[%c0_27, %c1280] : memref<64x2304xbf16, #tpu.memory_space<vmem>>, vector<64x256xbf16>
    tpu.vector_store %arg5[%c0_27, %c1280], %16 {strides = array<i32>} : memref<64x2304xbf16, #tpu.memory_space<vmem>>, vector<64x256xbf16>,
    %c0_28 = arith.constant 0 : index
    %c2_29 = arith.constant 2 : index
    %c0_30 = arith.constant 0 : index
    %c0_31 = arith.constant 0 : index
    %18 = vector.load %arg1[%c0_28, %c2_29, %c0_30, %c0_31] : memref<1x10x10x256xbf16, #tpu.memory_space<vmem>>, vector<1x8x8x256xbf16>
    %19 = vector.shape_cast %18 : vector<1x8x8x256xbf16> to vector<64x256xbf16>
    %c0_32 = arith.constant 0 : index
    %c1536 = arith.constant 1536 : index
    %20 = vector.load %arg5[%c0_32, %c1536] : memref<64x2304xbf16, #tpu.memory_space<vmem>>, vector<64x256xbf16>
    tpu.vector_store %arg5[%c0_32, %c1536], %19 {strides = array<i32>} : memref<64x2304xbf16, #tpu.memory_space<vmem>>, vector<64x256xbf16>,
    %c0_33 = arith.constant 0 : index
    %c2_34 = arith.constant 2 : index
    %c1_35 = arith.constant 1 : index
    %c0_36 = arith.constant 0 : index
    %21 = vector.load %arg1[%c0_33, %c2_34, %c1_35, %c0_36] : memref<1x10x10x256xbf16, #tpu.memory_space<vmem>>, vector<1x8x8x256xbf16>
    %22 = vector.shape_cast %21 : vector<1x8x8x256xbf16> to vector<64x256xbf16>
    %c0_37 = arith.constant 0 : index
    %c1792 = arith.constant 1792 : index
    %23 = vector.load %arg5[%c0_37, %c1792] : memref<64x2304xbf16, #tpu.memory_space<vmem>>, vector<64x256xbf16>
    tpu.vector_store %arg5[%c0_37, %c1792], %22 {strides = array<i32>} : memref<64x2304xbf16, #tpu.memory_space<vmem>>, vector<64x256xbf16>,
    %c0_38 = arith.constant 0 : index
    %c2_39 = arith.constant 2 : index
    %c2_40 = arith.constant 2 : index
    %c0_41 = arith.constant 0 : index
    %24 = vector.load %arg1[%c0_38, %c2_39, %c2_40, %c0_41] : memref<1x10x10x256xbf16, #tpu.memory_space<vmem>>, vector<1x8x8x256xbf16>
    %25 = vector.shape_cast %24 : vector<1x8x8x256xbf16> to vector<64x256xbf16>
    %c0_42 = arith.constant 0 : index
    %c2048 = arith.constant 2048 : index
    %26 = vector.load %arg5[%c0_42, %c2048] : memref<64x2304xbf16, #tpu.memory_space<vmem>>, vector<64x256xbf16>
    tpu.vector_store %arg5[%c0_42, %c2048], %25 {strides = array<i32>} : memref<64x2304xbf16, #tpu.memory_space<vmem>>, vector<64x256xbf16>,
    %c0_43 = arith.constant 0 : index
    %c0_44 = arith.constant 0 : index
    %27 = vector.load %arg5[%c0_43, %c0_44] : memref<64x2304xbf16, #tpu.memory_space<vmem>>, vector<64x2304xbf16>
    %c0_45 = arith.constant 0 : index
    %c0_46 = arith.constant 0 : index
    %28 = vector.load %arg2[%c0_45, %c0_46] : memref<2304x384xbf16, #tpu.memory_space<vmem>>, vector<2304x384xbf16>
    %cst = arith.constant dense<0.000000e+00> : vector<64x384xf32>
    %29 = tpu.matmul %27, %28, %cst {dimension_numbers = #tpu.dot_dimension_numbers<[1], [0], [0], [1], [0, 0, 1, 1], [], []>} : vector<64x2304xbf16>, vector<2304x384xbf16>, vector<64x384xf32> -> vector<64x384xf32>
    %c0_47 = arith.constant 0 : index
    %c0_48 = arith.constant 0 : index
    %30 = vector.load %arg3[%c0_47, %c0_48] : memref<1x384xf32, #tpu.memory_space<vmem>>, vector<1x384xf32>
    %31 = vector.broadcast %30 : vector<1x384xf32> to vector<64x384xf32>
    %32 = arith.addf %29, %31 : vector<64x384xf32>
    %cst_49 = arith.constant 0.000000e+00 : f32
    %33 = vector.broadcast %cst_49 : f32 to vector<64x384xf32>
    %34 = arith.maximumf %32, %33 : vector<64x384xf32>
    %35 = vector.shape_cast %34 : vector<64x384xf32> to vector<1x64x384xf32>
    %c0_50 = arith.constant 0 : index
    %c0_51 = arith.constant 0 : index
    %c0_52 = arith.constant 0 : index
    %36 = vector.load %arg4[%c0_50, %c0_51, %c0_52] : memref<1x64x384xf32, #tpu.memory_space<vmem>>, vector<1x64x384xf32>
    tpu.vector_store %arg4[%c0_50, %c0_51, %c0_52], %35 {strides = array<i32>} : memref<1x64x384xf32, #tpu.memory_space<vmem>>, vector<1x64x384xf32>,
    return
  }
  func.func @transform_0(%arg0: i32) -> (i32, i32, i32, i32) {
    %c0_i32 = arith.constant 0 : i32
    %c0_i32_0 = arith.constant 0 : i32
    %c0_i32_1 = arith.constant 0 : i32
    %c0_i32_2 = arith.constant 0 : i32
    return %arg0, %c0_i32, %c0_i32_0, %c0_i32_1 : i32, i32, i32, i32
  }
  func.func @transform_1(%arg0: i32) -> (i32, i32) {
    %c0_i32 = arith.constant 0 : i32
    %c0_i32_0 = arith.constant 0 : i32
    %c0_i32_1 = arith.constant 0 : i32
    return %c0_i32, %c0_i32_0 : i32, i32
  }
  func.func @transform_2(%arg0: i32) -> (i32, i32) {
    %c0_i32 = arith.constant 0 : i32
    %c0_i32_0 = arith.constant 0 : i32
    %c0_i32_1 = arith.constant 0 : i32
    return %c0_i32, %c0_i32_0 : i32, i32
  }
  func.func @transform_3(%arg0: i32) -> (i32, i32, i32) {
    %c0_i32 = arith.constant 0 : i32
    %c0_i32_0 = arith.constant 0 : i32
    %c0_i32_1 = arith.constant 0 : i32
    return %arg0, %c0_i32, %c0_i32_0 : i32, i32, i32
  }
}

</mosaic_0001>

<bundles_post_ra>
// kernel: conv3_forward.1
= control target key start
LH: loop header
LB: loop body
LE: loop exit
PB: predicated region body
PF: predicated region fallthrough
CT: control target
= control target key end

     0   :  { %8 = vsyncpa [#allocation4], 0  ;;  %s12707_s0 = inlined_call_operand.vmem [shape: bf16[2,10,10,256], index: 0, kind: input, shape index: {}]   ;;  %s12708_s1 = inlined_call_operand.vmem [shape: bf16[2304,384], index: 1, kind: input, shape index: {}]   ;;  %s12709_s2 = inlined_call_operand.vmem [shape: f32[1,384], index: 2, kind: input, shape index: {}]   ;;  %s12710_s3 = inlined_call_operand.hbm [shape: f32[2,64,384], index: 3, kind: output, shape index: {}]  }
   0x1   :  { %10 = vsyncpa [#allocation4 + $0x1], 0  ;;  %s8689_s12 = smov 0   ;;  %s8691_s13 = smov 0  }
   0x2   :  { %s8693_s14 = smov 0   ;;  %s8695_s15 = smov 0  }
   0x3 LB: > { %s8710_s16 = sadd.s32 4294967295, %s8665_s15   ;;  %s5909_s17 = sadd.s32 4294967294, %s8665_s15   ;;  %s8665_s15 = sphi %s8695_s15, %s12996_s15   ;;  %s8661_s14 = sphi %s8693_s14, %s12995_s14   ;;  %s8657_s13 = sphi %s8691_s13, %s12994_s13   ;;  %s8653_s12 = sphi %s8689_s12, %s12993_s12  }
   0x4   : > { %s8714_s18 = sadd.s32 1, %s8665_s15   ;;  %s91_s19 = sadd.s32 1, %s8661_s14 }
   0x5   : > { %s88_s20 = ssub.s32 %s8665_s15, %s8714_s18  ;;  %p101_p0 = scmp.ne.s32.totalorder %s8661_s14, %s8657_s13 }
   0x6   : > { %p89_p1 = scmp.eq.s32.totalorder %s88_s20, 0  ;;  %p102_p2 = scmp.eq.s32.totalorder %s8710_s16, 1 }
   0x7   : > { %p107_p3 = scmp.ne.s32.totalorder %s8657_s13, %s8653_s12  ;;  %p108_p4 = scmp.eq.s32.totalorder %s5909_s17, 1 }
   0x8   : > { %s8725_s21 = scalar_select %p89_p1, %s8661_s14, %s91_s19  }
   0x9   : > { %p8727_p5 = por %p102_p2, %p101_p0  ;;  %p8731_p6 = por %p108_p4, %p107_p3 }
   0xa   : > { %p5912_p7 = scmp.ge.s32.totalorder %s8665_s15, 1  ;;  %p140_p8 = scmp.lt.s32.totalorder %s8665_s15, 3 }
   0xc   : > { %p141_p9 = pnand %p5912_p7, %p140_p8 }
   0xe   : > { %144 = sbr.rel (%p141_p9) target bundleno = 1056 (0x420), region = 32 }
  0x13   : > { %v6392_v0 = vld [vmem:[%s12708_s1 + $0xa8] sm:$0xf]  ;;  %v8131_v1 = vld [vmem:[%s12708_s1 + $0xb0] sm:$0xf0]  ;;  %v6380_v5 = vld [vmem:[%s12708_s1 + $0x90] sm:$0xf] }
  0x14   : > { %v6488_v2 = vld [vmem:[%s12708_s1 + $0x168] sm:$0xf]  ;;  %v6393_v3 = vor.u32 %v8131_v1, %v6392_v0  ;;  %v8155_v4 = vld [vmem:[%s12708_s1 + $0x170] sm:$0xf0]  ;;  %v8128_v6 = vld [vmem:[%s12708_s1 + $0x98] sm:$0xf0] }
  0x15   : > { %v6489_v7 = vor.u32 %v8155_v4, %v6488_v2  ;;  %v6476_v8 = vld [vmem:[%s12708_s1 + $0x150] sm:$0xf]  ;;  %v8152_v9 = vld [vmem:[%s12708_s1 + $0x158] sm:$0xf0]  ;;  %v6381_v10 = vor.u32 %v8128_v6, %v6380_v5  ;;  %v6368_v12 = vld [vmem:[%s12708_s1 + $0x78] sm:$0xf] }
  0x16   : > { %8541 = vmatpush.bf16.msra.mxu2 %v6393_v3  ;;  %4217 = vmatpush.bf16.msra.mxu0 %v6393_v3  ;;  %v6477_v11 = vor.u32 %v8152_v9, %v6476_v8  ;;  %v8125_v13 = vld [vmem:[%s12708_s1 + $0x80] sm:$0xf0]  ;;  %v6464_v14 = vld [vmem:[%s12708_s1 + $0x138] sm:$0xf]  ;;  %v6356_v18 = vld [vmem:[%s12708_s1 + $0x60] sm:$0xf] }
  0x17   : > { %8549 = vmatpush.bf16.msra.mxu3 %v6489_v7  ;;  %4246 = vmatpush.bf16.msra.mxu1 %v6489_v7  ;;  %v8149_v15 = vld [vmem:[%s12708_s1 + $0x140] sm:$0xf0]  ;;  %v6369_v16 = vor.u32 %v8125_v13, %v6368_v12  ;;  %v8122_v19 = vld [vmem:[%s12708_s1 + $0x68] sm:$0xf0]  ;;  %v6452_v20 = vld [vmem:[%s12708_s1 + $0x120] sm:$0xf] }
  0x18   : > { %v6465_v17 = vor.u32 %v8149_v15, %v6464_v14  ;;  %v8146_v21 = vld [vmem:[%s12708_s1 + $0x128] sm:$0xf0]  ;;  %p164_p10 = scmp.lt.s32.totalorder %s8710_s16, 1  ;;  %v6357_v22 = vor.u32 %v8122_v19, %v6356_v18  ;;  %v6344_v24 = vld [vmem:[%s12708_s1 + $0x48] sm:$0xf]  ;;  %vm364_vm3 = vcmask 1042432  }
  0x19   : > { %v6453_v23 = vor.u32 %v8146_v21, %v6452_v20  ;;  %v8119_v25 = vld [vmem:[%s12708_s1 + $0x50] sm:$0xf0]  ;;  %v6440_v26 = vld [vmem:[%s12708_s1 + $0x108] sm:$0xf]  ;;  %v6332_v29 = vld [vmem:[%s12708_s1 + $0x30] sm:$0xf] }
  0x1a   : > { %8542 = vmatpush.bf16.msra.mxu2 %v6381_v10  ;;  %4218 = vmatpush.bf16.msra.mxu0 %v6381_v10  ;;  %s165_s24 = scalar_select %p164_p10, %s8710_s16, 1  ;;  %v8143_v27 = vld [vmem:[%s12708_s1 + $0x110] sm:$0xf0]  ;;  %v6345_v28 = vor.u32 %v8119_v25, %v6344_v24  ;;  %v8116_v31 = vld [vmem:[%s12708_s1 + $0x38] sm:$0xf0]  ;;  %vm365_vm4 = vcmask 1046532  }
  0x1b   : > { %8550 = vmatpush.bf16.msra.mxu3 %v6477_v11  ;;  %4247 = vmatpush.bf16.msra.mxu1 %v6477_v11  ;;  %v6441_v30 = vor.u32 %v8143_v27, %v6440_v26  ;;  %v6428_v32 = vld [vmem:[%s12708_s1 + $0xf0] sm:$0xf]  ;;  %v8140_v33 = vld [vmem:[%s12708_s1 + $0xf8] sm:$0xf0]  ;;  %v6333_v38 = vor.u32 %v8116_v31, %v6332_v29  ;;  %v6320_v40 = vld [vmem:[%s12708_s1 + $0x18] sm:$0xf] }
  0x1c   : > { %s8558_s29 = smul.u32 160, %s165_s24  ;;  %v6429_v39 = vor.u32 %v8140_v33, %v6428_v32  ;;  %v8113_v41 = vld [vmem:[%s12708_s1 + $0x20] sm:$0xf0]  ;;  %v6416_v42 = vld [vmem:[%s12708_s1 + $0xd8] sm:$0xf]  ;;  %vm9133_vm5 = vmor %vm364_vm3, %vm365_vm4  ;;  %s161_s5 = sand.u32 1, %s8657_s13  }
  0x1d   : > { %v8137_v43 = vld [vmem:[%s12708_s1 + $0xe0] sm:$0xf0]  ;;  %v6308_v45 = vld [vmem:[%s12708_s1] sm:$0xf]  ;;  %v6321_v47 = vor.u32 %v8113_v41, %v6320_v40  ;;  %v8110_v48 = vld [vmem:[%s12708_s1 + $0x8] sm:$0xf0] }
  0x1e   : > { %8543 = vmatpush.bf16.msra.mxu2 %v6369_v16  ;;  %4219 = vmatpush.bf16.msra.mxu0 %v6369_v16  ;;  %s8814_s19 = scalar_lea.vmem %s12707_s0, %s8558_s29  ;;  %v6404_v49 = vld [vmem:[%s12708_s1 + $0xc0] sm:$0xf]  ;;  %v8134_v50 = vld [vmem:[%s12708_s1 + $0xc8] sm:$0xf0]  ;;  %v6417_v51 = vor.u32 %v8137_v43, %v6416_v42  ;;  %v6584_v52 = vld [vmem:[%s12708_s1 + $0x228] sm:$0xf]  ;;  %v6309_v60 = vor.u32 %v8110_v48, %v6308_v45 }
  0x1f   : > { %8551 = vmatpush.bf16.msra.mxu3 %v6465_v17  ;;  %4248 = vmatpush.bf16.msra.mxu1 %v6465_v17  ;;  %v8817_v34 = vld [vmem:[%s8814_s19 + $0x40] sm:$0xff]  ;;  %v8820_v35 = vld [vmem:[%s8814_s19 + $0x50] sm:$0xff]  ;;  %v6680_v54 = vld [vmem:[%s12708_s1 + $0x2e8] sm:$0xf]  ;;  %v6405_v2 = vor.u32 %v8134_v50, %v6404_v49  ;;  %vm201_vm0 = vsmask.f32 3328 }
  0x20   : > { %v8823_v36 = vld [vmem:[%s8814_s19] sm:$0xff]  ;;  %181 = vst [vmem:[#allocation2 + $0x120] sm:$0xff] %v8817_v34  ;;  %v8827_v37 = vld [vmem:[%s8814_s19 + $0x10] sm:$0xff]  ;;  %v6776_v56 = vld [vmem:[%s12708_s1 + $0x3a8] sm:$0xf]  ;;  %s10911_s6 = smul.u32 192, %s161_s5 }
  0x21   : > { %182 = vst [vmem:[#allocation2 + $0x168] sm:$0xff] %v8820_v35  ;;  %v8845_v44 = vld [vmem:[%s8814_s19 + $0x60] sm:$0xff]  ;;  %v8851_v46 = vld [vmem:[%s8814_s19 + $0x70] sm:$0xff]  ;;  %v8176_v1 = vld [vmem:[%s12708_s1 + $0x218] sm:$0xf0]  ;;  %v205_v32 = vshrl.u32 %v8823_v36, 16 }
  0x22   : > { %8544 = vmatpush.bf16.msra.mxu2 %v6357_v22  ;;  %4220 = vmatpush.bf16.msra.mxu0 %v6357_v22  ;;  %177 = vst [vmem:[#allocation2] sm:$0xff] %v8823_v36  ;;  %v8179_v53 = vld [vmem:[%s12708_s1 + $0x230] sm:$0xf0]  ;;  %v8883_v58 = vld [vmem:[%s8814_s19 + $0x20] sm:$0xff]  ;;  %v6572_v0 = vld [vmem:[%s12708_s1 + $0x210] sm:$0xf] }
  0x23   : > { %8552 = vmatpush.bf16.msra.mxu3 %v6453_v23  ;;  %4249 = vmatpush.bf16.msra.mxu1 %v6453_v23  ;;  %178 = vst [vmem:[#allocation2 + $0x48] sm:$0xff] %v8827_v37  ;;  %v8203_v55 = vld [vmem:[%s12708_s1 + $0x2f0] sm:$0xf0]  ;;  %v6585_v5 = vor.u32 %v8179_v53, %v6584_v52  ;;  %v6668_v7 = vld [vmem:[%s12708_s1 + $0x2d0] sm:$0xf]  ;;  %v6573_v21 = vor.u32 %v8176_v1, %v6572_v0  ;;  %s10946_s7 = scalar_lea.vmem [#allocation3], %s10911_s6 }
  0x24   : > { %183 = vst [vmem:[#allocation2 + $0x1b0] sm:$0xff] %v8845_v44  ;;  %v8227_v57 = vld [vmem:[%s12708_s1 + $0x3b0] sm:$0xf0]  ;;  %v8200_v8 = vld [vmem:[%s12708_s1 + $0x2d8] sm:$0xf0]  ;;  %v6681_v9 = vor.u32 %v8203_v55, %v6680_v54  ;;  %s8559_s8 = smul.u32 192, %s8710_s16 }
  0x25   : > { %184 = vst [vmem:[#allocation2 + $0x1f8] sm:$0xff] %v8851_v46  ;;  %v8886_v59 = vld [vmem:[%s8814_s19 + $0x30] sm:$0xff]  ;;  %v6872_v14 = vld [vmem:[%s12708_s1 + $0x468] sm:$0xf]  ;;  %v6777_v17 = vor.u32 %v8227_v57, %v6776_v56  ;;  %v8224_v19 = vld [vmem:[%s12708_s1 + $0x398] sm:$0xf0]  ;;  %v6669_v25 = vor.u32 %v8200_v8, %v6668_v7 }
  0x26   : > { %8545 = vmatpush.bf16.msra.mxu2 %v6345_v28  ;;  %4221 = vmatpush.bf16.msra.mxu0 %v6345_v28  ;;  %179 = vst [vmem:[#allocation2 + $0x90] sm:$0xff] %v8883_v58  ;;  %v8251_v15 = vld [vmem:[%s12708_s1 + $0x470] sm:$0xf0]  ;;  %v6764_v18 = vld [vmem:[%s12708_s1 + $0x390] sm:$0xf]  ;;  %s5843_s11 = scalar_lea.hbm %s12710_s3, %s8559_s8  ;;  %s5844_s17 = sshll.u32 %s10946_s7, 4  ;;  %s5845_s17 = int_to_ptr.vmem [resolvable:$true] %s5844_s17 }
  0x27   : > { %8553 = vmatpush.bf16.msra.mxu3 %v6441_v30  ;;  %4250 = vmatpush.bf16.msra.mxu1 %v6441_v30  ;;  %v6164_v61 = vld [vmem:[#allocation2 + $0x120] sm:$0xf]  ;;  %v8073_v3 = vld [vmem:[#allocation2 + $0x124] sm:$0xf]  ;;  %180 = vst [vmem:[#allocation2 + $0xd8] sm:$0xff] %v8886_v59  ;;  %v6873_v26 = vor.u32 %v8251_v15, %v6872_v14  ;;  %v6765_v33 = vor.u32 %v8224_v19, %v6764_v18  ;;  %s5846_s16 = sshll.u32 %s5843_s11, 4  ;;  %s5847_s16 = int_to_ptr.hbm [resolvable:$true] %s5846_s16 }
  0x28   : > { %v8082_v62 = vld [vmem:[#allocation2 + $0x164] sm:$0xf0]  ;;  %v6166_v4 = vld [vmem:[#allocation2 + $0x168] sm:$0xf0]  ;;  %v6560_v22 = vld [vmem:[%s12708_s1 + $0x1f8] sm:$0xf] }
  0x29   : > { %v6020_v63 = vld [vmem:[#allocation2] sm:$0xf]  ;;  %v8037_v10 = vld [vmem:[#allocation2 + $0x4] sm:$0xf]  ;;  %v8901_v12 = vor.u32 %v8082_v62, %v6164_v61  ;;  %v8912_v16 = vor.u32 %v8073_v3, %v6166_v4  ;;  %v6656_v24 = vld [vmem:[%s12708_s1 + $0x2b8] sm:$0xf] }
  0x2a   : > { %8546 = vmatpush.bf16.msra.mxu2 %v6333_v38  ;;  %4222 = vmatpush.bf16.msra.mxu0 %v6333_v38  ;;  %v8046_v6 = vld [vmem:[#allocation2 + $0x44] sm:$0xf0]  ;;  %v6022_v11 = vld [vmem:[#allocation2 + $0x48] sm:$0xf0]  ;;  %v8173_v23 = vld [vmem:[%s12708_s1 + $0x200] sm:$0xf0] }
  0x2b   : > { %8554 = vmatpush.bf16.msra.mxu3 %v6429_v39  ;;  %4251 = vmatpush.bf16.msra.mxu1 %v6429_v39  ;;  %12824 = vst [vmem:[#allocation6_spill] sm:$0xff] %v8901_v12  ;;  %v8903_v13 = vor.u32 %v8046_v6, %v6020_v63  ;;  %v8920_v20 = vor.u32 %v8037_v10, %v6022_v11  ;;  %v8197_v27 = vld [vmem:[%s12708_s1 + $0x2c0] sm:$0xf0]  ;;  %v6860_v28 = vld [vmem:[%s12708_s1 + $0x450] sm:$0xf]  ;;  %v207_v61 = vrot.slane %v205_v32, 4 }
  0x2c   : > { %12825 = vst [vmem:[#allocation7_spill] sm:$0xff] %v8912_v16  ;;  %v8248_v29 = vld [vmem:[%s12708_s1 + $0x458] sm:$0xf0]  ;;  %v6752_v30 = vld [vmem:[%s12708_s1 + $0x378] sm:$0xf]  ;;  %v6561_v48 = vor.u32 %v8173_v23, %v6560_v22  ;;  %v6657_v52 = vor.u32 %v8197_v27, %v6656_v24  ;;  %v208_v62 = vshll.u32 %v8823_v36, 16 }
  0x2d   : > { %v8221_v31 = vld [vmem:[%s12708_s1 + $0x380] sm:$0xf0]  ;;  %v6548_v38 = vld [vmem:[%s12708_s1 + $0x1e0] sm:$0xf]  ;;  %v8170_v39 = vld [vmem:[%s12708_s1 + $0x1e8] sm:$0xf0]  ;;  %v6861_v53 = vor.u32 %v8248_v29, %v6860_v28 }
  0x2e   : > { %8547 = vmatpush.bf16.msra.mxu2 %v6321_v47  ;;  %4223 = vmatpush.bf16.msra.mxu0 %v6321_v47  ;;  %v8959_v40 = vld [vmem:[%s12708_s1 + $0x2a0] sm:$0xf]  ;;  %v8964_v41 = vld [vmem:[%s12708_s1 + $0x2a8] sm:$0xf0]  ;;  %v8969_v42 = vld [vmem:[%s12708_s1 + $0x438] sm:$0xf]  ;;  %v6753_v63 = vor.u32 %v8221_v31, %v6752_v30  ;;  %v6549_v3 = vor.u32 %v8170_v39, %v6548_v38 }
  0x2f   : > { %8555 = vmatpush.bf16.msra.mxu3 %v6417_v51  ;;  %4252 = vmatpush.bf16.msra.mxu1 %v6417_v51  ;;  %v8974_v43 = vld [vmem:[%s12708_s1 + $0x440] sm:$0xf0]  ;;  %v8979_v45 = vld [vmem:[%s12708_s1 + $0x360] sm:$0xf]  ;;  %v8984_v47 = vld [vmem:[%s12708_s1 + $0x368] sm:$0xf0]  ;;  %v6645_v4 = vor.u32 %v8964_v41, %v8959_v40 }
  0x30   : > { %v8990_v49 = vld [vmem:[%s12708_s1 + $0x1c8] sm:$0xf]  ;;  %v8995_v50 = vld [vmem:[%s12708_s1 + $0x1d0] sm:$0xf0]  ;;  %v9010_v55 = vld [vmem:[%s12708_s1 + $0x420] sm:$0xf]  ;;  %v6741_v36 = vor.u32 %v8984_v47, %v8979_v45 }
  0x31   : > { %v9000_v51 = vld [vmem:[%s12708_s1 + $0x288] sm:$0xf]  ;;  %v9005_v54 = vld [vmem:[%s12708_s1 + $0x290] sm:$0xf0]  ;;  %v9015_v56 = vld [vmem:[%s12708_s1 + $0x428] sm:$0xf0] }
  0x32   : > { %8548 = vmatpush.bf16.msra.mxu2 %v6309_v60  ;;  %4224 = vmatpush.bf16.msra.mxu0 %v6309_v60  ;;  %v9020_v57 = vld [vmem:[%s12708_s1 + $0x348] sm:$0xf]  ;;  %v9025_v60 = vld [vmem:[%s12708_s1 + $0x350] sm:$0xf0]  ;;  %v6236_v0 = vld [vmem:[#allocation2 + $0x1b0] sm:$0xf]  ;;  %v6633_v10 = vor.u32 %v9005_v54, %v9000_v51  ;;  %v6837_v11 = vor.u32 %v9015_v56, %v9010_v55 }
  0x33   : > { %8556 = vmatpush.bf16.msra.mxu3 %v6405_v2  ;;  %4253 = vmatpush.bf16.msra.mxu1 %v6405_v2  ;;  %v8091_v1 = vld [vmem:[#allocation2 + $0x1b4] sm:$0xf]  ;;  %v9031_v2 = vld [vmem:[%s12708_s1 + $0x1b0] sm:$0xf]  ;;  %v8100_v6 = vld [vmem:[#allocation2 + $0x1f4] sm:$0xf0] }
  0x34   : > { %v6238_v7 = vld [vmem:[#allocation2 + $0x1f8] sm:$0xf0]  ;;  %v6092_v14 = vld [vmem:[#allocation2 + $0x90] sm:$0xf]  ;;  %v186_v18 = vld [vmem:[%s8814_s19 + $0x8] sm:$0x11]  ;;  %v9067_v28 = vor.u32 %v8100_v6, %v6236_v0 }
  0x35   : > { %4235 = vmatmul.bf16.vlgmr.msra.gmra.mxu2 %v8901_v12  ;;  %4225 = vmatmul.bf16.vlgmr.msra.gmra.mxu0 %v8903_v13  ;;  %v9042_v8 = vld [vmem:[%s12708_s1 + $0x1b8] sm:$0xf0]  ;;  %v9053_v15 = vld [vmem:[%s12708_s1 + $0x270] sm:$0xf]  ;;  %vm202_vm1 = vsmask.f32 7440  ;;  %v9069_v29 = vor.u32 %v8091_v1, %v6238_v7 }
  0x36   : > { %4275 = vmatpush.bf16.msrb.mxu2 %v6585_v5  ;;  %4264 = vmatmul.bf16.vlgmr.msra.gmra.mxu3 %v8912_v16  ;;  %v6849_v5 = vor.u32 %v8974_v43, %v8969_v42  ;;  %v188_v19 = vld [vmem:[%s8814_s19 + $0x18] sm:$0x11]  ;;  %v210_v22 = vrot.slane %v208_v62, 5  ;;  %424 = vst [vmem:[#allocation2 + $0x18] sm:$0xff] %v8827_v37  ;;  %v214_v24 = vshll.u32 %v186_v18, 16  ;;  %v6525_v32 = vor.u32 %v9042_v8, %v9031_v2  ;;  %vm9085_vm2 = vmor %vm201_vm0, %vm202_vm1  ;;  %s5832_s20 = scalar_lea.sflag [#allocation4], %s161_s5 }
  0x37   : > { %4304 = vmatpush.bf16.msrb.mxu3 %v6681_v9  ;;  %4333 = vmatpush.bf16.msrb.mxu0 %v6777_v17  ;;  %v6537_v9 = vor.u32 %v8995_v50, %v8990_v49  ;;  %v9058_v17 = vld [vmem:[%s12708_s1 + $0x278] sm:$0xf0]  ;;  %v8064_v23 = vld [vmem:[#allocation2 + $0xd4] sm:$0xf0]  ;;  %v228_v27 = vshll.u32 %v188_v19, 16  ;;  %12826 = vst [vmem:[#allocation8_spill] sm:$0xff] %v9067_v28 }
  0x38   : > { %4254 = vmatmul.bf16.vlgmr.msra.gmra.mxu1 %v8920_v20  ;;  %12827 = vst [vmem:[#allocation9_spill] sm:$0xff] %v9069_v29  ;;  %v8055_v30 = vld [vmem:[#allocation2 + $0x94] sm:$0xf]  ;;  %v6094_v31 = vld [vmem:[#allocation2 + $0xd8] sm:$0xf0]  ;;  %v211_v38 = vor.u32 %v210_v22, %v207_v61  ;;  %v216_v40 = vrot.slane %v214_v24, 5  ;;  %v9090_v47 = vor.u32 %v8064_v23, %v6092_v14 }
  0x39   : > { %4362 = vmatpush.bf16.msrb.mxu1 %v6873_v26  ;;  %v222_v26 = vshll.u32 %v8827_v37, 16  ;;  %v230_v43 = vrot.slane %v228_v27, 5  ;;  %v332_v45 = vld [vmem:[%s8814_s19] sm:$0xee]  ;;  %v9097_v49 = vld [vmem:[%s12708_s1 + $0x330] sm:$0xf]  ;;  %v9118_v0 = vor.u32 %v8055_v30, %v6094_v31 }
  0x3a   : > { %4276 = vmatpush.bf16.msrb.mxu2 %v6573_v21  ;;  %v6729_v21 = vor.u32 %v9025_v60, %v9020_v57  ;;  %12830 = vst [vmem:[#allocation10_spill] sm:$0xff] %v9090_v47  ;;  %v9102_v50 = vld [vmem:[%s12708_s1 + $0x338] sm:$0xf0]  ;;  %v212_v51 = vrot.slane %v211_v38, 4  ;;  %v9109_v54 = vld [vmem:[%s12708_s1 + $0x198] sm:$0xf] }
  0x3b   : > { %4305 = vmatpush.bf16.msrb.mxu3 %v6669_v25  ;;  %4334 = vmatpush.bf16.msrb.mxu0 %v6765_v33  ;;  %v219_v25 = vshrl.u32 %v8827_v37, 16  ;;  %v9076_v33 = vld [vmem:[%s12708_s1 + $0x408] sm:$0xf]  ;;  %v9081_v37 = vld [vmem:[%s12708_s1 + $0x410] sm:$0xf0]  ;;  %v224_v42 = vrot.slane %v222_v26, 5  ;;  %v6717_v18 = vor.u32 %v9102_v50, %v9097_v49 }
  0x3c   : > { %v9114_v55 = vld [vmem:[%s12708_s1 + $0x1a0] sm:$0xf0]  ;;  %v335_v61 = vld [vmem:[%s8814_s19 + $0x18] sm:$0x11]  ;;  %v5914_v62 = vrot.slane %v332_v45, 9  ;;  %425 = vst [vmem:[#allocation2 + $0x60] sm:$0xff] %v8883_v58  ;;  %v6825_v6 = vor.u32 %v9081_v37, %v9076_v33 }
  0x3d   : > { %4363 = vmatpush.bf16.msrb.mxu1 %v6861_v53  ;;  %v221_v41 = vrot.slane %v219_v25, 4  ;;  %v334_v53 = vld [vmem:[%s8814_s19 + $0x10] sm:$0xee]  ;;  %12831 = vst [vmem:[#allocation11_spill] sm:$0xff] %v9118_v0  ;;  %v9123_v1 = vld [vmem:[%s12708_s1 + $0x258] sm:$0xf]  ;;  %v6513_v24 = vor.u32 %v9114_v55, %v9109_v54 }
  0x3e   : > { %4277 = vmatpush.bf16.msrb.mxu2 %v6561_v48  ;;  %v6621_v48 = vor.u32 %v9058_v17, %v9053_v15  ;;  %v9128_v2 = vld [vmem:[%s12708_s1 + $0x260] sm:$0xf0]  ;;  %v9142_v7 = vld [vmem:[%s12708_s1 + $0x3f0] sm:$0xf]  ;;  %v8236_v8 = vld [vmem:[%s12708_s1 + $0x3f8] sm:$0xf0] }
  0x3f   : > { %4306 = vmatpush.bf16.msrb.mxu3 %v6657_v52  ;;  %4335 = vmatpush.bf16.msrb.mxu0 %v6753_v63  ;;  %v333_v52 = vld [vmem:[%s8814_s19 + $0x8] sm:$0x11]  ;;  %v225_v56 = vor.u32 %v224_v42, %v221_v41  ;;  %v233_v17 = vshrl.u32 %v8883_v58, 16  ;;  %v9173_v19 = vld [vmem:[%s12708_s1 + $0x180] sm:$0xf]  ;;  %v6609_v31 = vor.u32 %v9128_v2, %v9123_v1  ;;  %v247_v41 = vshrl.u32 %v8886_v59, 16 }
  0x40   : > { %v369_v63 = vrot.slane %v333_v52, 5  ;;  %v9178_v22 = vld [vmem:[%s12708_s1 + $0x188] sm:$0xf0]  ;;  %v9183_v23 = vld [vmem:[%s12708_s1 + $0x240] sm:$0xf]  ;;  %426 = vst [vmem:[#allocation2 + $0xa8] sm:$0xff] %v8886_v59 }
  0x41   : > { %4364 = vmatpush.bf16.msrb.mxu1 %v6849_v5  ;;  %v5915_v5 = vrot.slane %v334_v53, 9  ;;  %v9188_v57 = vld [vmem:[%s12708_s1 + $0x248] sm:$0xf0]  ;;  %v9199_v25 = vld [vmem:[%s12708_s1 + $0x3d8] sm:$0xf]  ;;  %v235_v30 = vrot.slane %v233_v17, 4 }
  0x42   : > { %4278 = vmatpush.bf16.msrb.mxu2 %v6549_v3  ;;  %v217_v3 = vsel %vm9085_vm2, %v212_v51, %v216_v40  ;;  %v370_v14 = vsel %vm9133_vm5, %v5914_v62, %v369_v63  ;;  %v9204_v26 = vld [vmem:[%s12708_s1 + $0x3e0] sm:$0xf0]  ;;  %v9214_v27 = vld [vmem:[%s12708_s1 + $0x530] sm:$0xf0]  ;;  %v9222_v33 = vld [vmem:[%s12708_s1 + $0x5e8] sm:$0xf]  ;;  %v6501_v63 = vor.u32 %v9178_v22, %v9173_v19  ;;  %v6597_v1 = vor.u32 %v9188_v57, %v9183_v23 }
  0x43   : > { %4307 = vmatpush.bf16.msrb.mxu3 %v6645_v4  ;;  %4336 = vmatpush.bf16.msrb.mxu0 %v6741_v36  ;;  %v373_v36 = vrot.slane %v335_v61, 5  ;;  %324 = vst [vmem:[#allocation2 + $0x8] sm:$0xff] %v217_v3  ;;  %v190_v37 = vld [vmem:[%s8814_s19 + $0x28] sm:$0x11]  ;;  %v192_v38 = vld [vmem:[%s8814_s19 + $0x38] sm:$0x11] }
  0x44   : > { %407 = vst [vmem:[#allocation2 + $0x10] sm:$0xff] %v370_v14  ;;  %v9230_v42 = vld [vmem:[%s12708_s1 + $0x300] sm:$0xf]  ;;  %v8299_v49 = vld [vmem:[%s12708_s1 + $0x5f0] sm:$0xf0]  ;;  %v242_v50 = vshll.u32 %v190_v37, 16 }
  0x45   : > { %4365 = vmatpush.bf16.msrb.mxu1 %v6837_v11  ;;  %4240 = vmatmul.bf16.gmra.mxu2 %v9067_v28  ;;  %v9159_v11 = vld [vmem:[%s12708_s1 + $0x320] sm:$0xf0]  ;;  %v374_v15 = vsel %vm9133_vm5, %v5915_v5, %v373_v36  ;;  %v9240_v45 = vld [vmem:[%s12708_s1 + $0x3c0] sm:$0xf]  ;;  %v250_v51 = vshll.u32 %v8886_v59, 16  ;;  %v256_v52 = vshll.u32 %v192_v38, 16  ;;  %v7065_v17 = vor.u32 %v8299_v49, %v9222_v33 }
  0x46   : > { %4279 = vmatpush.bf16.msrb.mxu2 %v6537_v9  ;;  %v226_v9 = vrot.slane %v225_v56, 4  ;;  %4230 = vmatmul.bf16.gmra.mxu0 %v9090_v47  ;;  %408 = vst [vmem:[#allocation2 + $0x58] sm:$0xff] %v374_v15  ;;  %v9256_v54 = vld [vmem:[%s12708_s1 + $0x510] sm:$0xf]  ;;  %v9261_v55 = vld [vmem:[%s12708_s1 + $0x518] sm:$0xf0] }
  0x47   : > { %4308 = vmatpush.bf16.msrb.mxu3 %v6633_v10  ;;  %v9154_v10 = vld [vmem:[%s12708_s1 + $0x318] sm:$0xf]  ;;  %4337 = vmatpush.bf16.msrb.mxu0 %v6729_v21  ;;  %v236_v21 = vshll.u32 %v8883_v58, 16  ;;  %v9209_v58 = vld [vmem:[%s12708_s1 + $0x528] sm:$0xf]  ;;  %v249_v62 = vrot.slane %v247_v41, 4 }
  0x48   : > { %4269 = vmatmul.bf16.gmra.mxu3 %v9069_v29  ;;  %v231_v60 = vsel %vm9085_vm2, %v226_v9, %v230_v43  ;;  %4259 = vmatmul.bf16.gmra.mxu1 %v9118_v0  ;;  %v9235_v43 = vld [vmem:[%s12708_s1 + $0x308] sm:$0xf0]  ;;  %v6705_v53 = vor.u32 %v9159_v11, %v9154_v10  ;;  %v9266_v56 = vld [vmem:[%s12708_s1 + $0x6a8] sm:$0xf]  ;;  %v8323_v2 = vld [vmem:[%s12708_s1 + $0x6b0] sm:$0xf0] }
  0x49   : > { %325 = vst [vmem:[#allocation2 + $0x50] sm:$0xff] %v231_v60  ;;  %4366 = vmatpush.bf16.msrb.mxu1 %v6825_v6  ;;  %v238_v40 = vrot.slane %v236_v21, 5  ;;  %v244_v3 = vrot.slane %v242_v50, 5  ;;  %v252_v5 = vrot.slane %v250_v51, 5  ;;  %v336_v36 = vld [vmem:[%s8814_s19 + $0x20] sm:$0xee]  ;;  %v6801_v6 = vor.u32 %v9204_v26, %v9199_v25 }
  0x4a   : > { %4280 = vmatpush.bf16.msrb.mxu2 %v6525_v32  ;;  %v6813_v32 = vor.u32 %v8236_v8, %v9142_v7  ;;  %v6028_v7 = vld [vmem:[#allocation2 + $0x8] sm:$0xf]  ;;  %v6969_v8 = vor.u32 %v9214_v27, %v9209_v58  ;;  %v261_v10 = vshrl.u32 %v8817_v34, 16  ;;  %v8038_v11 = vld [vmem:[#allocation2 + $0xc] sm:$0xf]  ;;  %v258_v19 = vrot.slane %v256_v52, 5 }
  0x4b   : > { %4309 = vmatpush.bf16.msrb.mxu3 %v6621_v48  ;;  %v9245_v48 = vld [vmem:[%s12708_s1 + $0x3c8] sm:$0xf0]  ;;  %4338 = vmatpush.bf16.msrb.mxu0 %v6717_v18  ;;  %v239_v61 = vor.u32 %v238_v40, %v235_v30  ;;  %v6036_v9 = vld [vmem:[#allocation2 + $0x10] sm:$0xf]  ;;  %v253_v18 = vor.u32 %v252_v5, %v249_v62  ;;  %v264_v23 = vshll.u32 %v8817_v34, 16  ;;  %v6693_v57 = vor.u32 %v9235_v43, %v9230_v42  ;;  %s8617_s24 = sshra.s32 %s5847_s16, 4  ;;  %s8618_s24 = int_to_ptr.hbm [resolvable:$true] %s8617_s24 }
  0x4c   : > { %v337_v22 = vld [vmem:[%s8814_s19 + $0x28] sm:$0x11]  ;;  %v8039_v25 = vld [vmem:[#allocation2 + $0x14] sm:$0xf]  ;;  %v7052_v26 = vld [vmem:[%s12708_s1 + $0x5d0] sm:$0xf]  ;;  %v6957_v30 = vor.u32 %v9261_v55, %v9256_v54  ;;  %p8624_p0 = scmp.lt.s32.totalorder %s8618_s24, %s12710_s3 }
  0x4d   : > { %4367 = vmatpush.bf16.msrb.mxu1 %v6813_v32  ;;  %v9280_v14 = vrot.slane %v239_v61, 4  ;;  %v8048_v15 = vld [vmem:[#allocation2 + $0x54] sm:$0xf0]  ;;  %v8296_v58 = vld [vmem:[%s12708_s1 + $0x5d8] sm:$0xf0]  ;;  %v9306_v33 = vrot.slane %v253_v18, 4 }
  0x4e   : > { %4281 = vmatpush.bf16.msrb.mxu2 %v6513_v24  ;;  %v6789_v24 = vor.u32 %v9245_v48, %v9240_v45  ;;  %v338_v27 = vld [vmem:[%s8814_s19 + $0x30] sm:$0xee]  ;;  %v7256_v32 = vld [vmem:[%s12708_s1 + $0x768] sm:$0xf]  ;;  %v339_v37 = vld [vmem:[%s8814_s19 + $0x38] sm:$0x11]  ;;  %v9311_v49 = vor.u32 %v8048_v15, %v6036_v9 }
  0x4f   : > { %4310 = vmatpush.bf16.msrb.mxu3 %v6609_v31  ;;  %4339 = vmatpush.bf16.msrb.mxu0 %v6705_v53  ;;  %v245_v34 = vsel %vm9085_vm2, %v9280_v14, %v244_v3  ;;  %v7161_v31 = vor.u32 %v8323_v2, %v9266_v56  ;;  %v5916_v38 = vrot.slane %v336_v36, 9  ;;  %v6038_v40 = vld [vmem:[#allocation2 + $0x58] sm:$0xf0]  ;;  %v377_v41 = vrot.slane %v337_v22, 5  ;;  %v8347_v50 = vld [vmem:[%s12708_s1 + $0x770] sm:$0xf0] }
  0x50   : > { %v8047_v60 = vld [vmem:[#allocation2 + $0x4c] sm:$0xf0]  ;;  %v6030_v21 = vld [vmem:[#allocation2 + $0x50] sm:$0xf0]  ;;  %326 = vst [vmem:[#allocation2 + $0x98] sm:$0xff] %v245_v34  ;;  %v5917_v42 = vrot.slane %v338_v27, 9  ;;  %v259_v51 = vsel %vm9085_vm2, %v9306_v33, %v258_v19  ;;  %v7053_v2 = vor.u32 %v8296_v58, %v7052_v26 }
  0x51   : > { %4368 = vmatpush.bf16.msrb.mxu1 %v6801_v6  ;;  %v381_v43 = vrot.slane %v339_v37, 5  ;;  %v263_v45 = vrot.slane %v261_v10, 4  ;;  %v9309_v48 = vor.u32 %v8047_v60, %v6028_v7  ;;  %v7148_v52 = vld [vmem:[%s12708_s1 + $0x690] sm:$0xf]  ;;  %v8320_v53 = vld [vmem:[%s12708_s1 + $0x698] sm:$0xf0]  ;;  %v9325_v54 = vor.u32 %v8038_v11, %v6030_v21 }
  0x52   : > { %4282 = vmatpush.bf16.msrb.mxu2 %v6501_v63  ;;  %327 = vst [vmem:[#allocation2 + $0xe0] sm:$0xff] %v259_v51  ;;  %v6944_v55 = vld [vmem:[%s12708_s1 + $0x4f8] sm:$0xf]  ;;  %v8269_v56 = vld [vmem:[%s12708_s1 + $0x500] sm:$0xf0]  ;;  %v378_v61 = vsel %vm9133_vm5, %v5916_v38, %v377_v41  ;;  %v266_v63 = vrot.slane %v264_v23, 5  ;;  %v7257_v6 = vor.u32 %v8347_v50, %v7256_v32  ;;  %v7149_v7 = vor.u32 %v8320_v53, %v7148_v52 }
  0x53   : > { %4311 = vmatpush.bf16.msrb.mxu3 %v6597_v1  ;;  %12834 = vst [vmem:[#allocation12_spill] sm:$0xff] %v9309_v48  ;;  %4340 = vmatpush.bf16.msrb.mxu0 %v6693_v57  ;;  %v382_v62 = vsel %vm9133_vm5, %v5917_v42, %v381_v43  ;;  %v9337_v1 = vor.u32 %v8039_v25, %v6038_v40  ;;  %v7040_v3 = vld [vmem:[%s12708_s1 + $0x5b8] sm:$0xf]  ;;  %v8293_v5 = vld [vmem:[%s12708_s1 + $0x5c0] sm:$0xf0]  ;;  %v275_v36 = vshrl.u32 %v8820_v35, 16 }
  0x54   : > { %12835 = vst [vmem:[#allocation13_spill] sm:$0xff] %v9325_v54  ;;  %v8344_v9 = vld [vmem:[%s12708_s1 + $0x758] sm:$0xf0]  ;;  %v267_v10 = vor.u32 %v266_v63, %v263_v45  ;;  %v278_v11 = vshll.u32 %v8820_v35, 16  ;;  %v7136_v15 = vld [vmem:[%s12708_s1 + $0x678] sm:$0xf]  ;;  %v6945_v18 = vor.u32 %v8269_v56, %v6944_v55  ;;  %v7041_v19 = vor.u32 %v8293_v5, %v7040_v3 }
  0x55   : > { %409 = vst [vmem:[#allocation2 + $0xa0] sm:$0xff] %v378_v61  ;;  %4369 = vmatpush.bf16.msrb.mxu1 %v6789_v24  ;;  %4283 = vmatmul.bf16.vlgmr.msrb.gmra.mxu2 %v9309_v48  ;;  %v6932_v35 = vld [vmem:[%s12708_s1 + $0x4e0] sm:$0xf]  ;;  %v8266_v22 = vld [vmem:[%s12708_s1 + $0x4e8] sm:$0xf0]  ;;  %v277_v26 = vrot.slane %v275_v36, 4 }
  0x56   : > { %4391 = vmatpush.bf16.msra.mxu2 %v6969_v8  ;;  %410 = vst [vmem:[#allocation2 + $0xe8] sm:$0xff] %v382_v62  ;;  %v7244_v8 = vld [vmem:[%s12708_s1 + $0x750] sm:$0xf]  ;;  %4341 = vmatmul.bf16.vlgmr.msrb.gmra.mxu0 %v9311_v49  ;;  %v7028_v23 = vld [vmem:[%s12708_s1 + $0x5a0] sm:$0xf]  ;;  %v268_v25 = vrot.slane %v267_v10, 4  ;;  %v6933_v38 = vor.u32 %v8266_v22, %v6932_v35 }
  0x57   : > { %4420 = vmatpush.bf16.msra.mxu3 %v7065_v17  ;;  %4449 = vmatpush.bf16.msra.mxu0 %v7161_v31  ;;  %v8317_v17 = vld [vmem:[%s12708_s1 + $0x680] sm:$0xf0]  ;;  %v7245_v57 = vor.u32 %v8344_v9, %v7244_v8  ;;  %v194_v21 = vld [vmem:[%s8814_s19 + $0x48] sm:$0x11]  ;;  %v196_v24 = vld [vmem:[%s8814_s19 + $0x58] sm:$0x11] }
  0x58   : > { %4312 = vmatmul.bf16.vlgmr.msrb.gmra.mxu3 %v9325_v54  ;;  %4370 = vmatmul.bf16.vlgmr.msrb.gmra.mxu1 %v9337_v1  ;;  %v7137_v60 = vor.u32 %v8317_v17, %v7136_v15  ;;  %v8290_v58 = vld [vmem:[%s12708_s1 + $0x5a8] sm:$0xf0]  ;;  %v270_v34 = vshll.u32 %v194_v21, 16  ;;  %v280_v27 = vrot.slane %v278_v11, 5  ;;  %v289_v31 = vshrl.u32 %v8845_v44, 16  ;;  %s8619_s6 = scalar_lea.hbm %s8618_s24, 192 }
  0x59   : > { %4478 = vmatpush.bf16.msra.mxu1 %v7257_v6  ;;  %v7232_v32 = vld [vmem:[%s12708_s1 + $0x738] sm:$0xf]  ;;  %v8341_v37 = vld [vmem:[%s12708_s1 + $0x740] sm:$0xf0]  ;;  %v6920_v42 = vld [vmem:[%s12708_s1 + $0x4c8] sm:$0xf]  ;;  %v7029_v51 = vor.u32 %v8290_v58, %v7028_v23  ;;  %p8620_p11 = scmp.ne.s32.totalorder %s8618_s24, %s8619_s6 }
  0x5a   : > { %4392 = vmatpush.bf16.msra.mxu2 %v6957_v30  ;;  %v284_v30 = vshll.u32 %v196_v24, 16  ;;  %v272_v40 = vrot.slane %v270_v34, 5  ;;  %v281_v41 = vor.u32 %v280_v27, %v277_v26  ;;  %v8263_v43 = vld [vmem:[%s12708_s1 + $0x4d0] sm:$0xf0]  ;;  %v6100_v45 = vld [vmem:[#allocation2 + $0x98] sm:$0xf]  ;;  %v7233_v56 = vor.u32 %v8341_v37, %v7232_v32 }
  0x5b   : > { %4421 = vmatpush.bf16.msra.mxu3 %v7053_v2  ;;  %4450 = vmatpush.bf16.msra.mxu0 %v7149_v7  ;;  %v8065_v50 = vld [vmem:[#allocation2 + $0xdc] sm:$0xf0]  ;;  %v341_v2 = vld [vmem:[%s8814_s19 + $0x48] sm:$0x11]  ;;  %v291_v3 = vrot.slane %v289_v31, 4  ;;  %v6921_v36 = vor.u32 %v8263_v43, %v6920_v42  ;;  %v292_v23 = vshll.u32 %v8845_v44, 16  ;;  %p8621_p12 = pnand %p8620_p11, %p8727_p5 }
  0x5c   : > { %v286_v52 = vrot.slane %v284_v30, 5  ;;  %v6108_v53 = vld [vmem:[#allocation2 + $0xa0] sm:$0xf]  ;;  %v273_v61 = vsel %vm9085_vm2, %v268_v25, %v272_v40  ;;  %v282_v62 = vrot.slane %v281_v41, 4  ;;  %v8056_v59 = vld [vmem:[#allocation2 + $0x9c] sm:$0xf] }
  0x5d   : > { %v8066_v55 = vld [vmem:[#allocation2 + $0xe4] sm:$0xf0]  ;;  %4479 = vmatpush.bf16.msra.mxu1 %v7245_v57  ;;  %v340_v63 = vld [vmem:[%s8814_s19 + $0x40] sm:$0xee]  ;;  %328 = vst [vmem:[#allocation2 + $0x128] sm:$0xff] %v273_v61  ;;  %v385_v15 = vrot.slane %v341_v2, 5  ;;  %v9409_v57 = vor.u32 %v8065_v50, %v6100_v45  ;;  %p8622_p13 = pneg %p8621_p12 }
  0x5e   : > { %4393 = vmatpush.bf16.msra.mxu2 %v6945_v18  ;;  %v6102_v5 = vld [vmem:[#allocation2 + $0xe0] sm:$0xf0]  ;;  %v342_v6 = vld [vmem:[%s8814_s19 + $0x50] sm:$0xee]  ;;  %v343_v7 = vld [vmem:[%s8814_s19 + $0x58] sm:$0x11]  ;;  %v287_v11 = vsel %vm9085_vm2, %v282_v62, %v286_v52  ;;  %v9424_v58 = vor.u32 %v8066_v55, %v6108_v53 }
  0x5f   : > { %4422 = vmatpush.bf16.msra.mxu3 %v7041_v19  ;;  %4451 = vmatpush.bf16.msra.mxu0 %v7137_v60  ;;  %v5918_v8 = vrot.slane %v340_v63, 9  ;;  %v8057_v9 = vld [vmem:[#allocation2 + $0xa4] sm:$0xf]  ;;  %v6110_v10 = vld [vmem:[#allocation2 + $0xe8] sm:$0xf0]  ;;  %v5919_v17 = vrot.slane %v342_v6, 9  ;;  %v9432_v37 = vor.u32 %v8056_v59, %v6102_v5 }
  0x60   : > { %v389_v18 = vrot.slane %v343_v7, 5  ;;  %v7016_v19 = vld [vmem:[%s12708_s1 + $0x588] sm:$0xf]  ;;  %329 = vst [vmem:[#allocation2 + $0x170] sm:$0xff] %v287_v11  ;;  %v8287_v35 = vld [vmem:[%s12708_s1 + $0x590] sm:$0xf0]  ;;  %v9441_v43 = vor.u32 %v8057_v9, %v6110_v10 }
  0x61   : > { %v7124_v22 = vld [vmem:[%s12708_s1 + $0x660] sm:$0xf]  ;;  %12836 = vst [vmem:[#allocation14_spill] sm:$0xff] %v9409_v57  ;;  %4480 = vmatpush.bf16.msra.mxu1 %v7233_v56  ;;  %v386_v60 = vsel %vm9133_vm5, %v5918_v8, %v385_v15  ;;  %v7017_v24 = vor.u32 %v8287_v35, %v7016_v19  ;;  %v8314_v25 = vld [vmem:[%s12708_s1 + $0x668] sm:$0xf0]  ;;  %v294_v32 = vrot.slane %v292_v23, 5 }
  0x62   : > { %4394 = vmatpush.bf16.msra.mxu2 %v6933_v38  ;;  %v390_v21 = vsel %vm9133_vm5, %v5919_v17, %v389_v18  ;;  %v7220_v26 = vld [vmem:[%s12708_s1 + $0x720] sm:$0xf]  ;;  %v8338_v44 = vld [vmem:[%s12708_s1 + $0x728] sm:$0xf0]  ;;  %12837 = vst [vmem:[#allocation15_spill] sm:$0xff] %v9424_v58  ;;  %v7125_v34 = vor.u32 %v8314_v25, %v7124_v22  ;;  %v303_v42 = vshrl.u32 %v8851_v46, 16 }
  0x63   : > { %4423 = vmatpush.bf16.msra.mxu3 %v7029_v51  ;;  %411 = vst [vmem:[#allocation2 + $0x130] sm:$0xff] %v386_v60  ;;  %v7221_v27 = vor.u32 %v8338_v44, %v7220_v26  ;;  %v6908_v30 = vld [vmem:[%s12708_s1 + $0x4b0] sm:$0xf]  ;;  %v8260_v31 = vld [vmem:[%s12708_s1 + $0x4b8] sm:$0xf0]  ;;  %v295_v53 = vor.u32 %v294_v32, %v291_v3  ;;  %v306_v3 = vshll.u32 %v8851_v46, 16 }
  0x64   : > { %12838 = vst [vmem:[#allocation16_spill] sm:$0xff] %v9432_v37  ;;  %v6909_v38 = vor.u32 %v8260_v31, %v6908_v30  ;;  %v7004_v40 = vld [vmem:[%s12708_s1 + $0x570] sm:$0xf]  ;;  %v8284_v41 = vld [vmem:[%s12708_s1 + $0x578] sm:$0xf0]  ;;  %4452 = vmatpush.bf16.msra.mxu0 %v7125_v34  ;;  %v305_v5 = vrot.slane %v303_v42, 4 }
  0x65   : > { %412 = vst [vmem:[#allocation2 + $0x178] sm:$0xff] %v390_v21  ;;  %v7005_v45 = vor.u32 %v8284_v41, %v7004_v40  ;;  %v7112_v50 = vld [vmem:[%s12708_s1 + $0x648] sm:$0xf]  ;;  %v8311_v51 = vld [vmem:[%s12708_s1 + $0x650] sm:$0xf0]  ;;  %4481 = vmatpush.bf16.msra.mxu1 %v7221_v27  ;;  %4288 = vmatmul.bf16.gmra.mxu2 %v9409_v57  ;;  %v296_v2 = vrot.slane %v295_v53, 4 }
  0x66   : > { %4395 = vmatpush.bf16.msra.mxu2 %v6921_v36  ;;  %12839 = vst [vmem:[#allocation17_spill] sm:$0xff] %v9441_v43  ;;  %v7208_v52 = vld [vmem:[%s12708_s1 + $0x708] sm:$0xf]  ;;  %v7113_v55 = vor.u32 %v8311_v51, %v7112_v50  ;;  %v8335_v56 = vld [vmem:[%s12708_s1 + $0x710] sm:$0xf0]  ;;  %4346 = vmatmul.bf16.gmra.mxu0 %v9424_v58  ;;  %v308_v9 = vrot.slane %v306_v3, 5 }
  0x67   : > { %4424 = vmatpush.bf16.msra.mxu3 %v7017_v24  ;;  %v7209_v61 = vor.u32 %v8335_v56, %v7208_v52  ;;  %v198_v62 = vld [vmem:[%s8814_s19 + $0x68] sm:$0x11]  ;;  %v200_v63 = vld [vmem:[%s8814_s19 + $0x78] sm:$0x11]  ;;  %v8257_v7 = vld [vmem:[%s12708_s1 + $0x4a0] sm:$0xf0] }
  0x68   : > { %4317 = vmatmul.bf16.gmra.mxu3 %v9432_v37  ;;  %v298_v59 = vshll.u32 %v198_v62, 16  ;;  %4375 = vmatmul.bf16.gmra.mxu1 %v9441_v43  ;;  %v312_v36 = vshll.u32 %v200_v63, 16  ;;  %v6896_v6 = vld [vmem:[%s12708_s1 + $0x498] sm:$0xf]  ;;  %v309_v15 = vor.u32 %v308_v9, %v305_v5  ;;  %v344_v17 = vld [vmem:[%s8814_s19 + $0x60] sm:$0xee] }
  0x69   : > { %4453 = vmatpush.bf16.msra.mxu0 %v7113_v55  ;;  %4482 = vmatpush.bf16.msra.mxu1 %v7209_v61  ;;  %v6897_v46 = vor.u32 %v8257_v7, %v6896_v6  ;;  %v345_v18 = vld [vmem:[%s8814_s19 + $0x68] sm:$0x11]  ;;  %v346_v19 = vld [vmem:[%s8814_s19 + $0x70] sm:$0xee]  ;;  %v347_v35 = vld [vmem:[%s8814_s19 + $0x78] sm:$0x11] }
  0x6a   : > { %4396 = vmatpush.bf16.msra.mxu2 %v6909_v38  ;;  %v300_v8 = vrot.slane %v298_v59, 5  ;;  %v314_v10 = vrot.slane %v312_v36, 5  ;;  %v5920_v22 = vrot.slane %v344_v17, 9  ;;  %v393_v23 = vrot.slane %v345_v18, 5  ;;  %v6172_v21 = vld [vmem:[#allocation2 + $0x128] sm:$0xf] }
  0x6b   : > { %4425 = vmatpush.bf16.msra.mxu3 %v7005_v45  ;;  %v5921_v60 = vrot.slane %v346_v19, 9  ;;  %v8083_v24 = vld [vmem:[#allocation2 + $0x16c] sm:$0xf0]  ;;  %v310_v44 = vrot.slane %v309_v15, 4  ;;  %v397_v34 = vrot.slane %v347_v35, 5  ;;  %s8623_s26 = scalar_lea.hbm %s12710_s3, 384 }
  0x6c   : > { %v301_v11 = vsel %vm9085_vm2, %v296_v2, %v300_v8  ;;  %v6180_v25 = vld [vmem:[#allocation2 + $0x130] sm:$0xf]  ;;  %v8084_v26 = vld [vmem:[#allocation2 + $0x174] sm:$0xf0]  ;;  %v8281_v30 = vld [vmem:[%s12708_s1 + $0x560] sm:$0xf0]  ;;  %v394_v38 = vsel %vm9133_vm5, %v5920_v22, %v393_v23  ;;  %v9514_v6 = vor.u32 %v8083_v24, %v6172_v21  ;;  %p8625_p1 = scmp.lt.s32.totalorder %s8623_s26, %s8619_s6 }
  0x6d   : > { %330 = vst [vmem:[#allocation2 + $0x1b8] sm:$0xff] %v301_v11  ;;  %v6992_v27 = vld [vmem:[%s12708_s1 + $0x558] sm:$0xf]  ;;  %v8074_v31 = vld [vmem:[#allocation2 + $0x12c] sm:$0xf]  ;;  %v315_v52 = vsel %vm9085_vm2, %v310_v44, %v314_v10  ;;  %v398_v53 = vsel %vm9133_vm5, %v5921_v60, %v397_v34  ;;  %v5930_v59 = vld [vmem:[%s8814_s19 + $0x10] sm:$0xff]  ;;  %v9516_v7 = vor.u32 %v8084_v26, %v6180_v25 }
  0x6e   : > { %4397 = vmatpush.bf16.msra.mxu2 %v6897_v46  ;;  %v6174_v32 = vld [vmem:[#allocation2 + $0x170] sm:$0xf0]  ;;  %v6993_v40 = vor.u32 %v8281_v30, %v6992_v27  ;;  %v7100_v41 = vld [vmem:[%s12708_s1 + $0x630] sm:$0xf]  ;;  %v8308_v42 = vld [vmem:[%s12708_s1 + $0x638] sm:$0xf0]  ;;  %p8626_p2 = por %p8625_p1, %p8624_p0 }
  0x6f   : > { %v7196_v45 = vld [vmem:[%s12708_s1 + $0x6f0] sm:$0xf]  ;;  %v8075_v50 = vld [vmem:[#allocation2 + $0x134] sm:$0xf]  ;;  %v6182_v51 = vld [vmem:[#allocation2 + $0x178] sm:$0xf0]  ;;  %v7101_v55 = vor.u32 %v8308_v42, %v7100_v41  ;;  %v9527_v11 = vor.u32 %v8074_v31, %v6174_v32 }
  0x70   : > { %413 = vst [vmem:[#allocation2 + $0x1c0] sm:$0xff] %v394_v38  ;;  %v8332_v56 = vld [vmem:[%s12708_s1 + $0x6f8] sm:$0xf0]  ;;  %v6884_v61 = vld [vmem:[%s12708_s1 + $0x480] sm:$0xf]  ;;  %4426 = vmatpush.bf16.msra.mxu3 %v6993_v40  ;;  %v449_v19 = vshrl.u32 %v5930_v59, 16  ;;  %v9532_v35 = vor.u32 %v8075_v50, %v6182_v51  ;;  %p8627_p3 = pnand %p8626_p2, %p8622_p13 }
  0x71   : > { %331 = vst [vmem:[#allocation2 + $0x200] sm:$0xff] %v315_v52  ;;  %v7197_v62 = vor.u32 %v8332_v56, %v7196_v45  ;;  %v8254_v63 = vld [vmem:[%s12708_s1 + $0x488] sm:$0xf0]  ;;  %v6980_v2 = vld [vmem:[%s12708_s1 + $0x540] sm:$0xf]  ;;  %4454 = vmatpush.bf16.msra.mxu0 %v7101_v55  ;;  %v452_v21 = vshll.u32 %v5930_v59, 16 }
  0x72   : > { %414 = vst [vmem:[#allocation2 + $0x208] sm:$0xff] %v398_v53  ;;  %v6885_v5 = vor.u32 %v8254_v63, %v6884_v61  ;;  %v8278_v3 = vld [vmem:[%s12708_s1 + $0x548] sm:$0xf0]  ;;  %v7088_v36 = vld [vmem:[%s12708_s1 + $0x618] sm:$0xf]  ;;  %v451_v44 = vrot.slane %v449_v19, 4 }
  0x73   : > { %12840 = vst [vmem:[#allocation18_spill] sm:$0xff] %v9514_v6  ;;  %4483 = vmatpush.bf16.msra.mxu1 %v7197_v62  ;;  %v6981_v8 = vor.u32 %v8278_v3, %v6980_v2  ;;  %v8305_v9 = vld [vmem:[%s12708_s1 + $0x620] sm:$0xf0]  ;;  %v7184_v46 = vld [vmem:[%s12708_s1 + $0x6d8] sm:$0xf]  ;;  %v454_v32 = vrot.slane %v452_v21, 5 }
  0x74   : > { %12841 = vst [vmem:[#allocation19_spill] sm:$0xff] %v9516_v7  ;;  %v8329_v10 = vld [vmem:[%s12708_s1 + $0x6e0] sm:$0xf0]  ;;  %4398 = vmatpush.bf16.msra.mxu2 %v6885_v5  ;;  %v7089_v15 = vor.u32 %v8305_v9, %v7088_v36  ;;  %v7076_v18 = vld [vmem:[%s12708_s1 + $0x600] sm:$0xf] }
  0x75   : > { %12842 = vst [vmem:[#allocation20_spill] sm:$0xff] %v9527_v11  ;;  %v7185_v17 = vor.u32 %v8329_v10, %v7184_v46  ;;  %4427 = vmatpush.bf16.msra.mxu3 %v6981_v8  ;;  %v8302_v22 = vld [vmem:[%s12708_s1 + $0x608] sm:$0xf0]  ;;  %v7172_v60 = vld [vmem:[%s12708_s1 + $0x6c0] sm:$0xf]  ;;  %4293 = vmatmul.bf16.gmra.mxu2 %v9514_v6  ;;  %v455_v50 = vor.u32 %v454_v32, %v451_v44 }
  0x76   : > { %12843 = vst [vmem:[#allocation21_spill] sm:$0xff] %v9532_v35  ;;  %4455 = vmatpush.bf16.msra.mxu0 %v7089_v15  ;;  %v7077_v23 = vor.u32 %v8302_v22, %v7076_v18  ;;  %v8326_v24 = vld [vmem:[%s12708_s1 + $0x6c8] sm:$0xf0]  ;;  %v7352_v25 = vld [vmem:[%s12708_s1 + $0x828] sm:$0xf]  ;;  %v5925_v45 = vld [vmem:[%s8814_s19 + $0x40] sm:$0xff] }
  0x77   : > { %4351 = vmatmul.bf16.gmra.mxu0 %v9516_v7  ;;  %4484 = vmatpush.bf16.msra.mxu1 %v7185_v17  ;;  %v7173_v26 = vor.u32 %v8326_v24, %v7172_v60  ;;  %v8371_v34 = vld [vmem:[%s12708_s1 + $0x830] sm:$0xf0]  ;;  %v5931_v30 = vld [vmem:[%s8814_s19 + $0x18] sm:$0x11]  ;;  %v5933_v31 = vld [vmem:[%s8814_s19 + $0x28] sm:$0x11] }
  0x78   : > { %4322 = vmatmul.bf16.gmra.mxu3 %v9527_v11  ;;  %4380 = vmatmul.bf16.gmra.mxu1 %v9532_v35  ;;  %v7353_v27 = vor.u32 %v8371_v34, %v7352_v25  ;;  %v458_v38 = vshll.u32 %v5931_v30, 16  ;;  %v472_v40 = vshll.u32 %v5933_v31, 16  ;;  %v7448_v41 = vld [vmem:[%s12708_s1 + $0x8e8] sm:$0xf]  ;;  %v8395_v42 = vld [vmem:[%s12708_s1 + $0x8f0] sm:$0xf0] }
  0x79   : > { %v7449_v51 = vor.u32 %v8395_v42, %v7448_v41  ;;  %v7340_v52 = vld [vmem:[%s12708_s1 + $0x810] sm:$0xf]  ;;  %v8368_v53 = vld [vmem:[%s12708_s1 + $0x818] sm:$0xf0]  ;;  %v7544_v2 = vld [vmem:[%s12708_s1 + $0x9a8] sm:$0xf] }
  0x7a   : > { %4456 = vmatpush.bf16.msra.mxu0 %v7077_v23  ;;  %4507 = vmatpush.bf16.msrb.mxu2 %v7353_v27  ;;  %v7436_v55 = vld [vmem:[%s12708_s1 + $0x8d0] sm:$0xf]  ;;  %v460_v56 = vrot.slane %v458_v38, 5  ;;  %v474_v61 = vrot.slane %v472_v40, 5  ;;  %v7341_v62 = vor.u32 %v8368_v53, %v7340_v52  ;;  %v8392_v63 = vld [vmem:[%s12708_s1 + $0x8d8] sm:$0xf0] }
  0x7b   : > { %4485 = vmatpush.bf16.msra.mxu1 %v7173_v26  ;;  %v6244_v59 = vld [vmem:[#allocation2 + $0x1b8] sm:$0xf]  ;;  %v8101_v5 = vld [vmem:[#allocation2 + $0x1fc] sm:$0xf0]  ;;  %v456_v36 = vrot.slane %v455_v50, 4  ;;  %4536 = vmatpush.bf16.msrb.mxu3 %v7449_v51  ;;  %v7437_v8 = vor.u32 %v8392_v63, %v7436_v55  ;;  %427 = vst [vmem:[#allocation2 + $0xf0] sm:$0xff] %v5925_v45 }
  0x7c   : > { %v6252_v3 = vld [vmem:[#allocation2 + $0x1c0] sm:$0xf]  ;;  %v8419_v9 = vld [vmem:[%s12708_s1 + $0x9b0] sm:$0xf0]  ;;  %v7640_v46 = vld [vmem:[%s12708_s1 + $0xa68] sm:$0xf]  ;;  %v475_v17 = vsel %vm9085_vm2, %v9280_v14, %v474_v61  ;;  %v9593_v32 = vor.u32 %v8101_v5, %v6244_v59 }
  0x7d   : > { %v8092_v10 = vld [vmem:[#allocation2 + $0x1bc] sm:$0xf]  ;;  %v8102_v15 = vld [vmem:[#allocation2 + $0x204] sm:$0xf0]  ;;  %v7545_v18 = vor.u32 %v8419_v9, %v7544_v2  ;;  %v8443_v19 = vld [vmem:[%s12708_s1 + $0xa70] sm:$0xf0]  ;;  %v461_v60 = vsel %vm9085_vm2, %v456_v36, %v460_v56 }
  0x7e   : > { %v5935_v22 = vld [vmem:[%s8814_s19 + $0x38] sm:$0x11]  ;;  %v8093_v23 = vld [vmem:[#allocation2 + $0x1c4] sm:$0xf]  ;;  %569 = vst [vmem:[#allocation2 + $0x68] sm:$0xff] %v475_v17  ;;  %4508 = vmatpush.bf16.msrb.mxu2 %v7341_v62  ;;  %v7641_v21 = vor.u32 %v8443_v19, %v7640_v46  ;;  %v491_v26 = vshrl.u32 %v5925_v45, 16  ;;  %v9595_v38 = vor.u32 %v8102_v15, %v6252_v3 }
  0x7f   : > { %v5937_v24 = vld [vmem:[%s8814_s19 + $0x48] sm:$0x11]  ;;  %v486_v25 = vshll.u32 %v5935_v22, 16  ;;  %v6246_v44 = vld [vmem:[#allocation2 + $0x200] sm:$0xf0]  ;;  %568 = vst [vmem:[#allocation2 + $0x20] sm:$0xff] %v461_v60  ;;  %4565 = vmatpush.bf16.msrb.mxu0 %v7545_v18  ;;  %4537 = vmatpush.bf16.msrb.mxu3 %v7437_v8 }
  0x80   : > { %v494_v14 = vshll.u32 %v5925_v45, 16  ;;  %v500_v34 = vshll.u32 %v5937_v24, 16  ;;  %v6254_v27 = vld [vmem:[#allocation2 + $0x208] sm:$0xf0]  ;;  %4594 = vmatpush.bf16.msrb.mxu1 %v7641_v21  ;;  %v493_v31 = vrot.slane %v491_v26, 4  ;;  %667 = vst [vmem:[#allocation2 + $0xc0] sm:$0xff] %v5925_v45  ;;  %v9597_v41 = vor.u32 %v8092_v10, %v6246_v44 }
  0x81   : > { %v488_v30 = vrot.slane %v486_v25, 5  ;;  %12844 = vst [vmem:[#allocation22_spill] sm:$0xff] %v9593_v32  ;;  %v9602_v50 = vor.u32 %v8093_v23, %v6254_v27  ;;  %v5926_v53 = vld [vmem:[%s8814_s19 + $0x50] sm:$0xff]  ;;  %v7328_v55 = vld [vmem:[%s12708_s1 + $0x7f8] sm:$0xf]  ;;  %v5927_v60 = vld [vmem:[%s8814_s19 + $0x60] sm:$0xff] }
  0x82   : > { %12845 = vst [vmem:[#allocation23_spill] sm:$0xff] %v9595_v38  ;;  %v496_v40 = vrot.slane %v494_v14, 5  ;;  %v502_v52 = vrot.slane %v500_v34, 5  ;;  %v7424_v61 = vld [vmem:[%s12708_s1 + $0x8b8] sm:$0xf]  ;;  %v505_v3 = vshrl.u32 %v5926_v53, 16 }
  0x83   : > { %12846 = vst [vmem:[#allocation24_spill] sm:$0xff] %v9597_v41  ;;  %v489_v42 = vsel %vm9085_vm2, %v9306_v33, %v488_v30  ;;  %v8365_v33 = vld [vmem:[%s12708_s1 + $0x800] sm:$0xf0]  ;;  %v7532_v59 = vld [vmem:[%s12708_s1 + $0x990] sm:$0xf] }
  0x84   : > { %12847 = vst [vmem:[#allocation25_spill] sm:$0xff] %v9602_v50  ;;  %v497_v51 = vor.u32 %v496_v40, %v493_v31  ;;  %v8389_v62 = vld [vmem:[%s12708_s1 + $0x8c0] sm:$0xf0]  ;;  %v7329_v63 = vor.u32 %v8365_v33, %v7328_v55  ;;  %v8416_v5 = vld [vmem:[%s12708_s1 + $0x998] sm:$0xf0] }
  0x85   : > { %570 = vst [vmem:[#allocation2 + $0xb0] sm:$0xff] %v489_v42  ;;  %4298 = vmatmul.bf16.gmra.mxu2 %v9593_v32  ;;  %v7425_v2 = vor.u32 %v8389_v62, %v7424_v61  ;;  %v7533_v36 = vor.u32 %v8416_v5, %v7532_v59  ;;  %v7628_v8 = vld [vmem:[%s12708_s1 + $0xa50] sm:$0xf]  ;;  %v8440_v9 = vld [vmem:[%s12708_s1 + $0xa58] sm:$0xf0]  ;;  %v507_v42 = vrot.slane %v505_v3, 4 }
  0x86   : > { %v498_v45 = vrot.slane %v497_v51, 4  ;;  %428 = vst [vmem:[#allocation2 + $0x138] sm:$0xff] %v5926_v53  ;;  %v7316_v46 = vld [vmem:[%s12708_s1 + $0x7e0] sm:$0xf]  ;;  %4509 = vmatpush.bf16.msrb.mxu2 %v7329_v63  ;;  %v7629_v10 = vor.u32 %v8440_v9, %v7628_v8  ;;  %v8362_v15 = vld [vmem:[%s12708_s1 + $0x7e8] sm:$0xf0] }
  0x87   : > { %4356 = vmatmul.bf16.gmra.mxu0 %v9595_v38  ;;  %4538 = vmatpush.bf16.msrb.mxu3 %v7425_v2  ;;  %v7412_v17 = vld [vmem:[%s12708_s1 + $0x8a0] sm:$0xf]  ;;  %v8386_v18 = vld [vmem:[%s12708_s1 + $0x8a8] sm:$0xf0]  ;;  %v7317_v19 = vor.u32 %v8362_v15, %v7316_v46  ;;  %v7520_v23 = vld [vmem:[%s12708_s1 + $0x978] sm:$0xf] }
  0x88   : > { %4327 = vmatmul.bf16.gmra.mxu3 %v9597_v41  ;;  %4385 = vmatmul.bf16.gmra.mxu1 %v9602_v50  ;;  %v503_v56 = vsel %vm9085_vm2, %v498_v45, %v502_v52  ;;  %v7413_v22 = vor.u32 %v8386_v18, %v7412_v17  ;;  %v6044_v21 = vld [vmem:[#allocation2 + $0x18] sm:$0xf]  ;;  %v8049_v24 = vld [vmem:[#allocation2 + $0x5c] sm:$0xf0]  ;;  %v8050_v25 = vld [vmem:[#allocation2 + $0x64] sm:$0xf0] }
  0x89   : > { %571 = vst [vmem:[#allocation2 + $0xf8] sm:$0xff] %v503_v56  ;;  %4566 = vmatpush.bf16.msrb.mxu0 %v7533_v36  ;;  %4595 = vmatpush.bf16.msrb.mxu1 %v7629_v10  ;;  %v8413_v26 = vld [vmem:[%s12708_s1 + $0x980] sm:$0xf0]  ;;  %v7616_v44 = vld [vmem:[%s12708_s1 + $0xa38] sm:$0xf]  ;;  %v508_v51 = vshll.u32 %v5926_v53, 16  ;;  %v9662_v59 = vor.u32 %v8049_v24, %v6044_v21 }
  0x8a   : > { %v8437_v14 = vld [vmem:[%s12708_s1 + $0xa40] sm:$0xf0]  ;;  %v6052_v34 = vld [vmem:[#allocation2 + $0x20] sm:$0xf]  ;;  %v7521_v27 = vor.u32 %v8413_v26, %v7520_v23  ;;  %429 = vst [vmem:[#allocation2 + $0x180] sm:$0xff] %v5927_v60  ;;  %4510 = vmatpush.bf16.msrb.mxu2 %v7317_v19  ;;  %v519_v45 = vshrl.u32 %v5927_v60, 16 }
  0x8b   : > { %v7617_v30 = vor.u32 %v8437_v14, %v7616_v44  ;;  %v5939_v31 = vld [vmem:[%s8814_s19 + $0x58] sm:$0x11]  ;;  %4539 = vmatpush.bf16.msrb.mxu3 %v7413_v22  ;;  %v5941_v40 = vld [vmem:[%s8814_s19 + $0x68] sm:$0x11]  ;;  %v6046_v33 = vld [vmem:[#allocation2 + $0x60] sm:$0xf0]  ;;  %v9664_v5 = vor.u32 %v8050_v25, %v6052_v34 }
  0x8c   : > { %v514_v52 = vshll.u32 %v5939_v31, 16  ;;  %v8040_v55 = vld [vmem:[#allocation2 + $0x1c] sm:$0xf]  ;;  %v522_v56 = vshll.u32 %v5927_v60, 16  ;;  %v528_v61 = vshll.u32 %v5941_v40, 16  ;;  %v510_v2 = vrot.slane %v508_v51, 5 }
  0x8d   : > { %4567 = vmatpush.bf16.msrb.mxu0 %v7521_v27  ;;  %v8041_v62 = vld [vmem:[#allocation2 + $0x24] sm:$0xf]  ;;  %v6054_v63 = vld [vmem:[#allocation2 + $0x68] sm:$0xf0]  ;;  %4596 = vmatpush.bf16.msrb.mxu1 %v7617_v30  ;;  %668 = vst [vmem:[#allocation2 + $0x108] sm:$0xff] %v5926_v53  ;;  %v521_v3 = vrot.slane %v519_v45, 4  ;;  %v9666_v8 = vor.u32 %v8040_v55, %v6046_v33 }
  0x8e   : > { %12848 = vst [vmem:[#allocation26_spill] sm:$0xff] %v9664_v5  ;;  %v524_v36 = vrot.slane %v522_v56, 5  ;;  %v511_v9 = vor.u32 %v510_v2, %v507_v42  ;;  %v516_v46 = vrot.slane %v514_v52, 5  ;;  %v9668_v10 = vor.u32 %v8041_v62, %v6054_v63  ;;  %v5928_v19 = vld [vmem:[%s8814_s19 + $0x70] sm:$0xff]  ;;  %v5929_v22 = vld [vmem:[%s8814_s19 + $0x80] sm:$0xff] }
  0x8f   : > { %669 = vst [vmem:[#allocation2 + $0x150] sm:$0xff] %v5927_v60  ;;  %v530_v17 = vrot.slane %v528_v61, 5  ;;  %v533_v23 = vshrl.u32 %v5928_v19, 16  ;;  %v7304_v60 = vld [vmem:[%s12708_s1 + $0x7c8] sm:$0xf]  ;;  %v536_v42 = vshll.u32 %v5928_v19, 16 }
  0x90   : > { %12849 = vst [vmem:[#allocation27_spill] sm:$0xff] %v9666_v8  ;;  %v525_v15 = vor.u32 %v524_v36, %v521_v3  ;;  %v512_v18 = vrot.slane %v511_v9, 4  ;;  %v8359_v21 = vld [vmem:[%s12708_s1 + $0x7d0] sm:$0xf0]  ;;  %v7400_v25 = vld [vmem:[%s12708_s1 + $0x888] sm:$0xf] }
  0x91   : > { %12850 = vst [vmem:[#allocation28_spill] sm:$0xff] %v9668_v10  ;;  %v7305_v26 = vor.u32 %v8359_v21, %v7304_v60  ;;  %v8383_v14 = vld [vmem:[%s12708_s1 + $0x890] sm:$0xf0]  ;;  %v7508_v34 = vld [vmem:[%s12708_s1 + $0x960] sm:$0xf]  ;;  %v535_v27 = vrot.slane %v533_v23, 4 }
  0x92   : > { %v526_v53 = vrot.slane %v525_v15, 4  ;;  %430 = vst [vmem:[#allocation2 + $0x1c8] sm:$0xff] %v5928_v19  ;;  %v517_v24 = vsel %vm9085_vm2, %v512_v18, %v516_v46  ;;  %v7401_v30 = vor.u32 %v8383_v14, %v7400_v25  ;;  %v8410_v31 = vld [vmem:[%s12708_s1 + $0x968] sm:$0xf0]  ;;  %v5943_v40 = vld [vmem:[%s8814_s19 + $0x78] sm:$0x11] }
  0x93   : > { %572 = vst [vmem:[#allocation2 + $0x140] sm:$0xff] %v517_v24  ;;  %4511 = vmatpush.bf16.msrb.mxu2 %v7305_v26  ;;  %v7509_v51 = vor.u32 %v8410_v31, %v7508_v34  ;;  %v542_v52 = vshll.u32 %v5943_v40, 16  ;;  %v547_v45 = vshrl.u32 %v5929_v22, 16  ;;  %v5945_v55 = vld [vmem:[%s8814_s19 + $0x88] sm:$0x11]  ;;  %v538_v33 = vrot.slane %v536_v42, 5 }
  0x94   : > { %v531_v44 = vsel %vm9085_vm2, %v526_v53, %v530_v17  ;;  %431 = vst [vmem:[#allocation2 + $0x210] sm:$0xff] %v5929_v22  ;;  %4540 = vmatpush.bf16.msrb.mxu3 %v7401_v30  ;;  %v550_v56 = vshll.u32 %v5929_v22, 16  ;;  %v7604_v61 = vld [vmem:[%s12708_s1 + $0xa20] sm:$0xf]  ;;  %v8434_v62 = vld [vmem:[%s12708_s1 + $0xa28] sm:$0xf0] }
  0x95   : > { %4399 = vmatmul.bf16.vlgmr.msra.gmra.mxu2 %v9662_v59  ;;  %573 = vst [vmem:[#allocation2 + $0x188] sm:$0xff] %v531_v44  ;;  %4568 = vmatpush.bf16.msrb.mxu0 %v7509_v51  ;;  %v7292_v63 = vld [vmem:[%s12708_s1 + $0x7b0] sm:$0xf]  ;;  %v6116_v2 = vld [vmem:[#allocation2 + $0xa8] sm:$0xf]  ;;  %v7605_v36 = vor.u32 %v8434_v62, %v7604_v61  ;;  %v539_v46 = vor.u32 %v538_v33, %v535_v27  ;;  %v544_v15 = vrot.slane %v542_v52, 5 }
  0x96   : > { %670 = vst [vmem:[#allocation2 + $0x198] sm:$0xff] %v5928_v19  ;;  %v8067_v3 = vld [vmem:[#allocation2 + $0xec] sm:$0xf0]  ;;  %v8356_v9 = vld [vmem:[%s12708_s1 + $0x7b8] sm:$0xf0]  ;;  %v549_v17 = vrot.slane %v547_v45, 4 }
  0x97   : > { %4457 = vmatmul.bf16.vlgmr.msra.gmra.mxu0 %v9664_v5  ;;  %671 = vst [vmem:[#allocation2 + $0x1e0] sm:$0xff] %v5929_v22  ;;  %v8058_v18 = vld [vmem:[#allocation2 + $0xac] sm:$0xf]  ;;  %v7293_v19 = vor.u32 %v8356_v9, %v7292_v63  ;;  %v7388_v53 = vld [vmem:[%s12708_s1 + $0x870] sm:$0xf]  ;;  %4597 = vmatpush.bf16.msrb.mxu1 %v7605_v36  ;;  %v540_v14 = vrot.slane %v539_v46, 4  ;;  %v9724_v40 = vor.u32 %v8067_v3, %v6116_v2 }
  0x98   : > { %4428 = vmatmul.bf16.vlgmr.msra.gmra.mxu3 %v9666_v8  ;;  %4486 = vmatmul.bf16.vlgmr.msra.gmra.mxu1 %v9668_v10  ;;  %v8380_v23 = vld [vmem:[%s12708_s1 + $0x878] sm:$0xf0]  ;;  %v7496_v60 = vld [vmem:[%s12708_s1 + $0x948] sm:$0xf]  ;;  %v6124_v21 = vld [vmem:[#allocation2 + $0xb0] sm:$0xf] }
  0x99   : > { %v8068_v24 = vld [vmem:[#allocation2 + $0xf4] sm:$0xf0]  ;;  %v7389_v25 = vor.u32 %v8380_v23, %v7388_v53  ;;  %v8407_v22 = vld [vmem:[%s12708_s1 + $0x950] sm:$0xf0]  ;;  %4512 = vmatpush.bf16.msrb.mxu2 %v7293_v19  ;;  %v552_v34 = vrot.slane %v550_v56, 5  ;;  %v556_v27 = vshll.u32 %v5945_v55, 16  ;;  %v545_v51 = vsel %vm9085_vm2, %v540_v14, %v544_v15 }
  0x9a   : > { %v6118_v26 = vld [vmem:[#allocation2 + $0xf0] sm:$0xf0]  ;;  %v7497_v44 = vor.u32 %v8407_v22, %v7496_v60  ;;  %v6126_v31 = vld [vmem:[#allocation2 + $0xf8] sm:$0xf0]  ;;  %12851 = vst [vmem:[#allocation29_spill] sm:$0xff] %v9724_v40  ;;  %v9726_v42 = vor.u32 %v8068_v24, %v6124_v21 }
  0x9b   : > { %v8059_v30 = vld [vmem:[#allocation2 + $0xb4] sm:$0xf]  ;;  %4541 = vmatpush.bf16.msrb.mxu3 %v7389_v25  ;;  %v553_v52 = vor.u32 %v552_v34, %v549_v17  ;;  %v9730_v45 = vor.u32 %v8058_v18, %v6118_v26  ;;  %574 = vst [vmem:[#allocation2 + $0x1d0] sm:$0xff] %v545_v51  ;;  %v7592_v55 = vld [vmem:[%s12708_s1 + $0xa08] sm:$0xf]  ;;  %v558_v61 = vrot.slane %v556_v27, 5 }
  0x9c   : > { %12852 = vst [vmem:[#allocation30_spill] sm:$0xff] %v9726_v42  ;;  %4569 = vmatpush.bf16.msrb.mxu0 %v7497_v44  ;;  %v9732_v33 = vor.u32 %v8059_v30, %v6126_v31  ;;  %v8431_v56 = vld [vmem:[%s12708_s1 + $0xa10] sm:$0xf0]  ;;  %v7280_v2 = vld [vmem:[%s12708_s1 + $0x798] sm:$0xf] }
  0x9d   : > { %12853 = vst [vmem:[#allocation31_spill] sm:$0xff] %v9730_v45  ;;  %v7593_v62 = vor.u32 %v8431_v56, %v7592_v55  ;;  %v554_v63 = vrot.slane %v553_v52, 4  ;;  %v8353_v3 = vld [vmem:[%s12708_s1 + $0x7a0] sm:$0xf0]  ;;  %v7376_v36 = vld [vmem:[%s12708_s1 + $0x858] sm:$0xf] }
  0x9e   : > { %12854 = vst [vmem:[#allocation32_spill] sm:$0xff] %v9732_v33  ;;  %v7281_v9 = vor.u32 %v8353_v3, %v7280_v2  ;;  %v8377_v15 = vld [vmem:[%s12708_s1 + $0x860] sm:$0xf0]  ;;  %v7484_v17 = vld [vmem:[%s12708_s1 + $0x930] sm:$0xf] }
  0x9f   : > { %4598 = vmatpush.bf16.msrb.mxu1 %v7593_v62  ;;  %v559_v46 = vsel %vm9085_vm2, %v554_v63, %v558_v61  ;;  %v8404_v18 = vld [vmem:[%s12708_s1 + $0x938] sm:$0xf0]  ;;  %v7377_v19 = vor.u32 %v8377_v15, %v7376_v36  ;;  %v5946_v23 = vld [vmem:[%s8814_s19 + $0x10] sm:$0xee]  ;;  %v5948_v21 = vld [vmem:[%s8814_s19 + $0x20] sm:$0xee] }
  0xa0   : > { %575 = vst [vmem:[#allocation2 + $0x218] sm:$0xff] %v559_v46  ;;  %v7485_v53 = vor.u32 %v8404_v18, %v7484_v17  ;;  %v5947_v60 = vld [vmem:[%s8814_s19 + $0x18] sm:$0x11]  ;;  %4513 = vmatpush.bf16.msrb.mxu2 %v7281_v9  ;;  %v5949_v24 = vld [vmem:[%s8814_s19 + $0x28] sm:$0x11]  ;;  %v5962_v25 = vrot.slane %v5946_v23, 9 }
  0xa1   : > { %4542 = vmatpush.bf16.msrb.mxu3 %v7377_v19  ;;  %v610_v22 = vrot.slane %v5947_v60, 5  ;;  %v5963_v26 = vrot.slane %v5948_v21, 9  ;;  %v7580_v44 = vld [vmem:[%s12708_s1 + $0x9f0] sm:$0xf]  ;;  %v8428_v14 = vld [vmem:[%s12708_s1 + $0x9f8] sm:$0xf0] }
  0xa2   : > { %4570 = vmatpush.bf16.msrb.mxu0 %v7485_v53  ;;  %v7268_v34 = vld [vmem:[%s12708_s1 + $0x780] sm:$0xf]  ;;  %v6188_v30 = vld [vmem:[#allocation2 + $0x138] sm:$0xf]  ;;  %v8086_v52 = vld [vmem:[#allocation2 + $0x184] sm:$0xf0]  ;;  %v7581_v55 = vor.u32 %v8428_v14, %v7580_v44 }
  0xa3   : > { %v1545_v27 = vld [vmem:[%s12709_s2] sm:$0x7]  ;;  %v8350_v56 = vld [vmem:[%s12708_s1 + $0x788] sm:$0xf0]  ;;  %v611_v61 = vsel %vm9133_vm5, %v5962_v25, %v610_v22  ;;  %v614_v62 = vrot.slane %v5949_v24, 5  ;;  %v9803_v53 = vld [vmem:[%s8814_s19 + $0x30] sm:$0xff] }
  0xa4   : > { %v8085_v31 = vld [vmem:[#allocation2 + $0x17c] sm:$0xf0]  ;;  %v8076_v63 = vld [vmem:[#allocation2 + $0x13c] sm:$0xf]  ;;  %v6190_v2 = vld [vmem:[#allocation2 + $0x180] sm:$0xf0]  ;;  %v7269_v3 = vor.u32 %v8350_v56, %v7268_v34  ;;  %4599 = vmatpush.bf16.msrb.mxu1 %v7581_v55 }
  0xa5   : > { %4404 = vmatmul.bf16.gmra.mxu2 %v9724_v40  ;;  %v6196_v51 = vld [vmem:[#allocation2 + $0x140] sm:$0xf]  ;;  %v8374_v9 = vld [vmem:[%s12708_s1 + $0x848] sm:$0xf0]  ;;  %v7472_v46 = vld [vmem:[%s12708_s1 + $0x918] sm:$0xf]  ;;  %v615_v18 = vsel %vm9133_vm5, %v5963_v26, %v614_v62  ;;  %v9814_v26 = vor.u32 %v8085_v31, %v6188_v30  ;;  %v9819_v55 = vor.u32 %v8076_v63, %v6190_v2 }
  0xa6   : > { %v7364_v36 = vld [vmem:[%s12708_s1 + $0x840] sm:$0xf]  ;;  %v8401_v17 = vld [vmem:[%s12708_s1 + $0x920] sm:$0xf0]  ;;  %648 = vst [vmem:[#allocation2 + $0x28] sm:$0xff] %v611_v61  ;;  %4514 = vmatpush.bf16.msrb.mxu2 %v7269_v3  ;;  %v9812_v22 = vperm.slane %v1545_v27, 0  ;;  %v9816_v44 = vor.u32 %v8086_v52, %v6196_v51 }
  0xa7   : > { %4462 = vmatmul.bf16.gmra.mxu0 %v9726_v42  ;;  %v7365_v15 = vor.u32 %v8374_v9, %v7364_v36  ;;  %v9800_v19 = vld [vmem:[%s8814_s19 + $0x20] sm:$0xff]  ;;  %v6198_v60 = vld [vmem:[#allocation2 + $0x188] sm:$0xf0]  ;;  %v7473_v21 = vor.u32 %v8401_v17, %v7472_v46  ;;  %649 = vst [vmem:[#allocation2 + $0x70] sm:$0xff] %v615_v18  ;;  %v7568_v24 = vld [vmem:[%s12708_s1 + $0x9d8] sm:$0xf] }
  0xa8   : > { %4433 = vmatmul.bf16.gmra.mxu3 %v9730_v45  ;;  %4491 = vmatmul.bf16.gmra.mxu1 %v9732_v33  ;;  %v8077_v23 = vld [vmem:[#allocation2 + $0x144] sm:$0xf]  ;;  %665 = vst [vmem:[#allocation2 + $0x30] sm:$0xff] %v9800_v19  ;;  %v7460_v56 = vld [vmem:[%s12708_s1 + $0x900] sm:$0xf] }
  0xa9   : > { %4543 = vmatpush.bf16.msrb.mxu3 %v7365_v15  ;;  %v8425_v25 = vld [vmem:[%s12708_s1 + $0x9e0] sm:$0xf0]  ;;  %12855 = vst [vmem:[#allocation33_spill] sm:$0xff] %v9814_v26  ;;  %4571 = vmatpush.bf16.msrb.mxu0 %v7473_v21  ;;  %v8398_v27 = vld [vmem:[%s12708_s1 + $0x908] sm:$0xf0]  ;;  %v9828_v31 = vor.u32 %v8077_v23, %v6198_v60 }
  0xaa   : > { %12856 = vst [vmem:[#allocation34_spill] sm:$0xff] %v9816_v44  ;;  %v7569_v14 = vor.u32 %v8425_v25, %v7568_v24  ;;  %v7461_v51 = vor.u32 %v8398_v27, %v7460_v56  ;;  %v7556_v61 = vld [vmem:[%s12708_s1 + $0x9c0] sm:$0xf]  ;;  %v8422_v62 = vld [vmem:[%s12708_s1 + $0x9c8] sm:$0xf0] }
  0xab   : > { %666 = vst [vmem:[#allocation2 + $0x78] sm:$0xff] %v9803_v53  ;;  %v7557_v2 = vor.u32 %v8422_v62, %v7556_v61  ;;  %v7736_v3 = vld [vmem:[%s12708_s1 + $0xb28] sm:$0xf]  ;;  %v8467_v36 = vld [vmem:[%s12708_s1 + $0xb30] sm:$0xf0] }
  0xac   : > { %12857 = vst [vmem:[#allocation35_spill] sm:$0xff] %v9819_v55  ;;  %4600 = vmatpush.bf16.msrb.mxu1 %v7569_v14  ;;  %v7832_v9 = vld [vmem:[%s12708_s1 + $0xbe8] sm:$0xf]  ;;  %v7737_v15 = vor.u32 %v8467_v36, %v7736_v3  ;;  %v8491_v17 = vld [vmem:[%s12708_s1 + $0xbf0] sm:$0xf0] }
  0xad   : > { %12858 = vst [vmem:[#allocation36_spill] sm:$0xff] %v9828_v31  ;;  %4572 = vmatpush.bf16.msrb.mxu0 %v7461_v51  ;;  %v7833_v60 = vor.u32 %v8491_v17, %v7832_v9  ;;  %v5950_v21 = vld [vmem:[%s8814_s19 + $0x30] sm:$0xee]  ;;  %v5951_v24 = vld [vmem:[%s8814_s19 + $0x38] sm:$0x11] }
  0xae   : > { %4623 = vmatpush.bf16.msra.mxu2 %v7737_v15  ;;  %v5952_v14 = vld [vmem:[%s8814_s19 + $0x40] sm:$0xee]  ;;  %v5964_v56 = vrot.slane %v5950_v21, 9  ;;  %v618_v27 = vrot.slane %v5951_v24, 5  ;;  %v8103_v3 = vld [vmem:[#allocation2 + $0x20c] sm:$0xf0] }
  0xaf   : > { %4652 = vmatpush.bf16.msra.mxu3 %v7833_v60  ;;  %v6268_v36 = vld [vmem:[#allocation2 + $0x1d0] sm:$0xf]  ;;  %v8104_v9 = vld [vmem:[#allocation2 + $0x214] sm:$0xf0]  ;;  %v8488_v24 = vld [vmem:[%s12708_s1 + $0xbd8] sm:$0xf0] }
  0xb0   : > { %4601 = vmatpush.bf16.msrb.mxu1 %v7557_v2  ;;  %v6260_v2 = vld [vmem:[#allocation2 + $0x1c8] sm:$0xf]  ;;  %v7724_v17 = vld [vmem:[%s12708_s1 + $0xb10] sm:$0xf]  ;;  %v8061_v35 = vld [vmem:[#allocation2 + $0xc4] sm:$0xf] }
  0xb1   : > { %v8521_v40 = vld [vmem:[%s12708_s1 + $0xce0] sm:$0xf0]  ;;  %v8190_v39 = vld [vmem:[%s12708_s1 + $0x28c] sm:$0xf] }
  0xb2   : > { %v4226_v34 = vpop.f32.mrf.mxu0  ;;  %v6070_v38 = vld [vmem:[#allocation2 + $0x78] sm:$0xf0] }
  0xb3   : > { %v4227_v30 = vadd.f32 %v4226_v34, %v9812_v22  ;;  %v5953_v34 = vld [vmem:[%s8814_s19 + $0x48] sm:$0x11] }
  0xb4   : > { %v622_v61 = vrot.slane %v5953_v34, 5  ;;  %v8094_v34 = vld [vmem:[#allocation2 + $0x1cc] sm:$0xf] }
  0xb5   : > { %v4255_v52 = vpop.f32.mrf.mxu1  ;;  %4409 = vmatmul.bf16.gmra.mxu2 %v9814_v26  ;;  %v6142_v26 = vld [vmem:[#allocation2 + $0x108] sm:$0xf0] }
  0xb6   : > { %v9837_v63 = vadd.f32 %v4255_v52, %v4227_v30  ;;  %v5965_v52 = vrot.slane %v5952_v14, 9  ;;  %v8515_v14 = vld [vmem:[%s12708_s1 + $0xcb0] sm:$0xf0] }
  0xb7   : > { %4467 = vmatmul.bf16.gmra.mxu0 %v9816_v44  ;;  %v9889_v44 = vor.u32 %v8104_v9, %v6268_v36  ;;  %v7712_v36 = vld [vmem:[%s12708_s1 + $0xaf8] sm:$0xf]  ;;  %v8461_v9 = vld [vmem:[%s12708_s1 + $0xb00] sm:$0xf0] }
  0xb8   : > { %4438 = vmatmul.bf16.gmra.mxu3 %v9819_v55  ;;  %4496 = vmatmul.bf16.gmra.mxu1 %v9828_v31  ;;  %v4236_v46 = vpop.f32.mrf.mxu2  ;;  %v623_v60 = vsel %vm9133_vm5, %v5965_v52, %v622_v61  ;;  %v8095_v52 = vld [vmem:[#allocation2 + $0x1d4] sm:$0xf]  ;;  %v6270_v61 = vld [vmem:[#allocation2 + $0x218] sm:$0xf0]  ;;  %v9887_v31 = vor.u32 %v8103_v3, %v6260_v2  ;;  %v8024_v2 = vld [vmem:[%s12708_s1 + $0xd68] sm:$0xf] }
  0xb9   : > { %v4237_v18 = vadd.f32 %v4236_v46, %v9812_v22  ;;  %v4265_v23 = vpop.f32.mrf.mxu3  ;;  %v619_v46 = vsel %vm9133_vm5, %v5964_v56, %v618_v27  ;;  %v6262_v56 = vld [vmem:[#allocation2 + $0x210] sm:$0xf0]  ;;  %651 = vst [vmem:[#allocation2 + $0x100] sm:$0xff] %v623_v60 }
  0xba   : > { %v4228_v25 = vpop.f32.mrf.mxu0  ;;  %650 = vst [vmem:[#allocation2 + $0xb8] sm:$0xff] %v619_v46  ;;  %v9891_v42 = vor.u32 %v8094_v34, %v6262_v56  ;;  %v8539_v3 = vld [vmem:[%s12708_s1 + $0xd70] sm:$0xf0]  ;;  %v7808_v34 = vld [vmem:[%s12708_s1 + $0xbb8] sm:$0xf] }
  0xbb   : > { %v9859_v30 = vadd.f32 %v4265_v23, %v4237_v18  ;;  %v4229_v51 = vadd.f32 %v4228_v25, %v9812_v22  ;;  %v8464_v18 = vld [vmem:[%s12708_s1 + $0xb18] sm:$0xf0]  ;;  %v7820_v23 = vld [vmem:[%s12708_s1 + $0xbd0] sm:$0xf]  ;;  %v7928_v25 = vld [vmem:[%s12708_s1 + $0xca8] sm:$0xf] }
  0xbc   : > { %v7725_v21 = vor.u32 %v8464_v18, %v7724_v17  ;;  %v7821_v27 = vor.u32 %v8488_v24, %v7820_v23  ;;  %12859 = vst [vmem:[#allocation37_spill] sm:$0xff] %v9887_v31  ;;  %v9896_v24 = vor.u32 %v8095_v52, %v6270_v61  ;;  %v8485_v56 = vld [vmem:[%s12708_s1 + $0xbc0] sm:$0xf0]  ;;  %v7916_v52 = vld [vmem:[%s12708_s1 + $0xc90] sm:$0xf] }
  0xbd   : > { %v4257_v62 = vpop.f32.mrf.mxu1  ;;  %12860 = vst [vmem:[#allocation38_spill] sm:$0xff] %v9889_v44  ;;  %v8512_v61 = vld [vmem:[%s12708_s1 + $0xc98] sm:$0xf0] }
  0xbe   : > { %v9864_v15 = vadd.f32 %v4257_v62, %v4229_v51  ;;  %v7929_v51 = vor.u32 %v8515_v14, %v7928_v25  ;;  %4624 = vmatpush.bf16.msra.mxu2 %v7725_v21  ;;  %4653 = vmatpush.bf16.msra.mxu3 %v7821_v27  ;;  %12861 = vst [vmem:[#allocation39_spill] sm:$0xff] %v9891_v42 }
  0xbf   : > { %12862 = vst [vmem:[#allocation40_spill] sm:$0xff] %v9896_v24  ;;  %v7713_v14 = vor.u32 %v8461_v9, %v7712_v36  ;;  %v5957_v36 = vld [vmem:[%s8814_s19 + $0x68] sm:$0x11] }
  0xc0   : > { %v4238_v62 = vpop.f32.mrf.mxu2  ;;  %4681 = vmatpush.bf16.msra.mxu0 %v7929_v51 }
  0xc1   : > { %v4239_v17 = vadd.f32 %v4238_v62, %v9812_v22  ;;  %v4267_v18 = vpop.f32.mrf.mxu3  ;;  %v7809_v62 = vor.u32 %v8485_v56, %v7808_v34  ;;  %v6060_v34 = vld [vmem:[#allocation2 + $0x28] sm:$0xf]  ;;  %v8051_v56 = vld [vmem:[#allocation2 + $0x6c] sm:$0xf0] }
  0xc2   : > { %4625 = vmatpush.bf16.msra.mxu2 %v7713_v14  ;;  %v630_v14 = vrot.slane %v5957_v36, 5 }
  0xc3   : > { %v4231_v33 = vpop.f32.mrf.mxu0  ;;  %v9893_v23 = vadd.f32 %v4267_v18, %v4239_v17  ;;  %v7917_v18 = vor.u32 %v8512_v61, %v7916_v52  ;;  %4654 = vmatpush.bf16.msra.mxu3 %v7809_v62  ;;  %v8042_v61 = vld [vmem:[#allocation2 + $0x2c] sm:$0xf]  ;;  %v8536_v62 = vld [vmem:[%s12708_s1 + $0xd58] sm:$0xf0] }
  0xc4   : > { %v4232_v46 = vadd.f32 %v4231_v33, %v9812_v22  ;;  %v8025_v33 = vor.u32 %v8539_v3, %v8024_v2 }
  0xc5   : > { %v4260_v21 = vpop.f32.mrf.mxu1  ;;  %4414 = vmatmul.bf16.gmra.mxu2 %v9887_v31  ;;  %4682 = vmatpush.bf16.msra.mxu0 %v7917_v18  ;;  %v8043_v31 = vld [vmem:[#allocation2 + $0x34] sm:$0xf] }
  0xc6   : > { %v9899_v60 = vadd.f32 %v4260_v21, %v4232_v46  ;;  %4710 = vmatpush.bf16.msra.mxu1 %v8025_v33  ;;  %v5954_v46 = vld [vmem:[%s8814_s19 + $0x50] sm:$0xee]  ;;  %v5955_v21 = vld [vmem:[%s8814_s19 + $0x58] sm:$0x11]  ;;  %v5956_v33 = vld [vmem:[%s8814_s19 + $0x60] sm:$0xee] }
  0xc7   : > { %4472 = vmatmul.bf16.gmra.mxu0 %v9889_v44  ;;  %v5966_v9 = vrot.slane %v5954_v46, 9  ;;  %v8052_v44 = vld [vmem:[#allocation2 + $0x74] sm:$0xf0]  ;;  %v626_v10 = vrot.slane %v5955_v21, 5  ;;  %v5967_v5 = vrot.slane %v5956_v33, 9 }
  0xc8   : > { %4443 = vmatmul.bf16.gmra.mxu3 %v9891_v42  ;;  %4501 = vmatmul.bf16.gmra.mxu1 %v9896_v24  ;;  %v4241_v25 = vpop.f32.mrf.mxu2  ;;  %v6068_v24 = vld [vmem:[#allocation2 + $0x30] sm:$0xf]  ;;  %v8458_v46 = vld [vmem:[%s12708_s1 + $0xae8] sm:$0xf0]  ;;  %v7796_v21 = vld [vmem:[%s12708_s1 + $0xba0] sm:$0xf] }
  0xc9   : > { %v4242_v27 = vadd.f32 %v4241_v25, %v9812_v22  ;;  %v627_v33 = vsel %vm9133_vm5, %v5966_v9, %v626_v10  ;;  %v631_v36 = vsel %vm9133_vm5, %v5967_v5, %v630_v14  ;;  %v8509_v42 = vld [vmem:[%s12708_s1 + $0xc80] sm:$0xf0]  ;;  %v9967_v9 = vor.u32 %v8051_v56, %v6060_v34  ;;  %v8479_v34 = vld [vmem:[%s12708_s1 + $0xb90] sm:$0xf0] }
  0xca   : > { %652 = vst [vmem:[#allocation2 + $0x148] sm:$0xff] %v627_v33  ;;  %v9969_v14 = vor.u32 %v8052_v44, %v6068_v24  ;;  %v8455_v44 = vld [vmem:[%s12708_s1 + $0xad0] sm:$0xf0]  ;;  %v7784_v24 = vld [vmem:[%s12708_s1 + $0xb88] sm:$0xf] }
  0xcb   : > { %v4270_v51 = vpop.f32.mrf.mxu3  ;;  %v4233_v17 = vpop.f32.mrf.mxu0  ;;  %653 = vst [vmem:[#allocation2 + $0x190] sm:$0xff] %v631_v36  ;;  %v7892_v33 = vld [vmem:[%s12708_s1 + $0xc60] sm:$0xf]  ;;  %v8506_v36 = vld [vmem:[%s12708_s1 + $0xc68] sm:$0xf0] }
  0xcc   : > { %v9931_v2 = vadd.f32 %v4270_v51, %v4242_v27  ;;  %v4234_v3 = vadd.f32 %v4233_v17, %v9812_v22  ;;  %v6062_v27 = vld [vmem:[#allocation2 + $0x70] sm:$0xf0]  ;;  %v8012_v51 = vld [vmem:[%s12708_s1 + $0xd50] sm:$0xf]  ;;  %v7700_v17 = vld [vmem:[%s12708_s1 + $0xae0] sm:$0xf] }
  0xcd   : > { %v4262_v25 = vpop.f32.mrf.mxu1  ;;  %v8013_v18 = vor.u32 %v8536_v62, %v8012_v51  ;;  %v7904_v62 = vld [vmem:[%s12708_s1 + $0xc78] sm:$0xf]  ;;  %12863 = vst [vmem:[#allocation41_spill] sm:$0xff] %v9967_v9 }
  0xce   : > { %v9936_v52 = vadd.f32 %v4262_v25, %v4234_v3  ;;  %v8482_v3 = vld [vmem:[%s12708_s1 + $0xba8] sm:$0xf0]  ;;  %v7701_v25 = vor.u32 %v8458_v46, %v7700_v17  ;;  %v7905_v55 = vor.u32 %v8509_v42, %v7904_v62  ;;  %12864 = vst [vmem:[#allocation42_spill] sm:$0xff] %v9969_v14  ;;  %v9971_v46 = vor.u32 %v8042_v61, %v6062_v27  ;;  %v8533_v42 = vld [vmem:[%s12708_s1 + $0xd40] sm:$0xf0] }
  0xcf   : > { %v7797_v51 = vor.u32 %v8482_v3, %v7796_v21  ;;  %4711 = vmatpush.bf16.msra.mxu1 %v8013_v18  ;;  %v9975_v3 = vor.u32 %v8043_v31, %v6070_v38  ;;  %v7688_v38 = vld [vmem:[%s12708_s1 + $0xac8] sm:$0xf]  ;;  %v7785_v27 = vor.u32 %v8479_v34, %v7784_v24  ;;  %v5958_v62 = vld [vmem:[%s8814_s19 + $0x70] sm:$0xee]  ;;  %v6140_v24 = vld [vmem:[#allocation2 + $0xc0] sm:$0xf] }
  0xd0   : > { %v4243_v50 = vpop.f32.mrf.mxu2  ;;  %4626 = vmatpush.bf16.msra.mxu2 %v7701_v25  ;;  %12865 = vst [vmem:[#allocation43_spill] sm:$0xff] %v9971_v46  ;;  %4683 = vmatpush.bf16.msra.mxu0 %v7905_v55  ;;  %v7689_v31 = vor.u32 %v8455_v44, %v7688_v38  ;;  %v6132_v44 = vld [vmem:[#allocation2 + $0xb8] sm:$0xf]  ;;  %v8070_v34 = vld [vmem:[#allocation2 + $0x104] sm:$0xf0] }
  0xd1   : > { %v4244_v10 = vadd.f32 %v4243_v50, %v9812_v22  ;;  %4655 = vmatpush.bf16.msra.mxu3 %v7797_v51  ;;  %12866 = vst [vmem:[#allocation44_spill] sm:$0xff] %v9975_v3  ;;  %v8000_v50 = vld [vmem:[%s12708_s1 + $0xd38] sm:$0xf]  ;;  %v7893_v51 = vor.u32 %v8506_v36, %v7892_v33 }
  0xd2   : > { %v8001_v22 = vor.u32 %v8533_v42, %v8000_v50  ;;  %v5960_v50 = vld [vmem:[%s8814_s19 + $0x80] sm:$0xee]  ;;  %v5961_v42 = vld [vmem:[%s8814_s19 + $0x88] sm:$0x11] }
  0xd3   : > { %v4272_v5 = vpop.f32.mrf.mxu3  ;;  %v4342_v17 = vpop.f32.mrf.mxu0 }
  0xd4   : > { %v9973_v21 = vadd.f32 %v4272_v5, %v4244_v10  ;;  %4712 = vmatpush.bf16.msra.mxu1 %v8001_v22  ;;  %4627 = vmatpush.bf16.msra.mxu2 %v7689_v31  ;;  %v5959_v10 = vld [vmem:[%s8814_s19 + $0x78] sm:$0x11]  ;;  %v6134_v31 = vld [vmem:[#allocation2 + $0x100] sm:$0xf0] }
  0xd5   : > { %v4371_v18 = vpop.f32.mrf.mxu1  ;;  %4515 = vmatmul.bf16.vlgmr.msrb.gmra.mxu2 %v9967_v9  ;;  %4656 = vmatpush.bf16.msra.mxu3 %v7785_v27  ;;  %v634_v22 = vrot.slane %v5959_v10, 5  ;;  %v8060_v9 = vld [vmem:[#allocation2 + $0xbc] sm:$0xf]  ;;  %v7676_v27 = vld [vmem:[%s12708_s1 + $0xab0] sm:$0xf] }
  0xd6   : > { %4684 = vmatpush.bf16.msra.mxu0 %v7893_v51  ;;  %v7772_v51 = vld [vmem:[%s12708_s1 + $0xb70] sm:$0xf] }
  0xd7   : > { %4573 = vmatmul.bf16.vlgmr.msrb.gmra.mxu0 %v9969_v14  ;;  %v638_v14 = vrot.slane %v5961_v42, 5  ;;  %v7880_v42 = vld [vmem:[%s12708_s1 + $0xc48] sm:$0xf] }
  0xd8   : > { %4544 = vmatmul.bf16.vlgmr.msrb.gmra.mxu3 %v9971_v46  ;;  %4602 = vmatmul.bf16.vlgmr.msrb.gmra.mxu1 %v9975_v3  ;;  %v4284_v55 = vpop.f32.mrf.mxu2  ;;  %v5969_v3 = vrot.slane %v5960_v50, 9 }
  0xd9   : > { %v4285_v56 = vadd.f32 %v4284_v55, %v9837_v63  ;;  %v5968_v63 = vrot.slane %v5958_v62, 9  ;;  %v8069_v55 = vld [vmem:[#allocation2 + $0xfc] sm:$0xf0]  ;;  %v8476_v62 = vld [vmem:[%s12708_s1 + $0xb78] sm:$0xf0] }
  0xda   : > { %v639_v10 = vsel %vm9133_vm5, %v5969_v3, %v638_v14  ;;  %v7773_v50 = vor.u32 %v8476_v62, %v7772_v51  ;;  %v10046_v51 = vor.u32 %v8070_v34, %v6140_v24  ;;  %v10051_v62 = vor.u32 %v8061_v35, %v6142_v26  ;;  %v7664_v35 = vld [vmem:[%s12708_s1 + $0xa98] sm:$0xf]  ;;  %v8449_v26 = vld [vmem:[%s12708_s1 + $0xaa0] sm:$0xf0] }
  0xdb   : > { %v4313_v61 = vpop.f32.mrf.mxu3  ;;  %v4344_v25 = vpop.f32.mrf.mxu0  ;;  %v635_v33 = vsel %vm9133_vm5, %v5968_v63, %v634_v22  ;;  %v8503_v63 = vld [vmem:[%s12708_s1 + $0xc50] sm:$0xf0]  ;;  %655 = vst [vmem:[#allocation2 + $0x220] sm:$0xff] %v639_v10 }
  0xdc   : > { %v4314_v5 = vadd.f32 %v4313_v61, %v4285_v56  ;;  %v7988_v56 = vld [vmem:[%s12708_s1 + $0xd20] sm:$0xf]  ;;  %v8530_v61 = vld [vmem:[%s12708_s1 + $0xd28] sm:$0xf0]  ;;  %654 = vst [vmem:[#allocation2 + $0x1d8] sm:$0xff] %v635_v33  ;;  %v10039_v22 = vld [vmem:[%s8814_s19 + $0x90] sm:$0xff]  ;;  %v7881_v14 = vor.u32 %v8503_v63, %v7880_v42  ;;  %4657 = vmatpush.bf16.msra.mxu3 %v7773_v50 }
  0xdd   : > { %v4373_v38 = vpop.f32.mrf.mxu1  ;;  %v7989_v36 = vor.u32 %v8530_v61, %v7988_v56  ;;  %12868 = vst [vmem:[#allocation46_spill] sm:$0xff] %v10046_v51  ;;  %v8473_v50 = vld [vmem:[%s12708_s1 + $0xb60] sm:$0xf0]  ;;  %v704_v42 = vshrl.u32 %v9803_v53, 16 }
  0xde   : > { %v4343_v46 = vadd.f32 %v4342_v17, %v4314_v5  ;;  %v8452_v17 = vld [vmem:[%s12708_s1 + $0xab8] sm:$0xf0]  ;;  %672 = vst [vmem:[#allocation2 + $0x228] sm:$0xff] %v10039_v22  ;;  %4685 = vmatpush.bf16.msra.mxu0 %v7881_v14 }
  0xdf   : > { %v7677_v5 = vor.u32 %v8452_v17, %v7676_v27  ;;  %4713 = vmatpush.bf16.msra.mxu1 %v7989_v36  ;;  %v10044_v17 = vor.u32 %v8069_v55, %v6132_v44  ;;  %12870 = vst [vmem:[#allocation48_spill] sm:$0xff] %v10051_v62  ;;  %v693_v55 = vshll.u32 %v9800_v19, 16  ;;  %v8500_v14 = vld [vmem:[%s12708_s1 + $0xc38] sm:$0xf0] }
  0xe0   : > { %v10041_v56 = vadd.f32 %v4371_v18, %v4343_v46  ;;  %v4286_v61 = vpop.f32.mrf.mxu2  ;;  %v10049_v46 = vor.u32 %v8060_v9, %v6134_v31  ;;  %v8527_v9 = vld [vmem:[%s12708_s1 + $0xd10] sm:$0xf0]  ;;  %v7665_v31 = vor.u32 %v8449_v26, %v7664_v35  ;;  %v5981_v35 = vld [vmem:[%s8814_s19 + $0x38] sm:$0x11] }
  0xe1   : > { %v4287_v3 = vadd.f32 %v4286_v61, %v9864_v15  ;;  %12867 = vst [vmem:[#allocation45_spill] sm:$0xff] %v10044_v17  ;;  %4628 = vmatpush.bf16.msra.mxu2 %v7677_v5  ;;  %v7976_v15 = vld [vmem:[%s12708_s1 + $0xd08] sm:$0xf]  ;;  %v7760_v5 = vld [vmem:[%s12708_s1 + $0xb58] sm:$0xf] }
  0xe2   : > { %12869 = vst [vmem:[#allocation47_spill] sm:$0xff] %v10049_v46  ;;  %v7977_v44 = vor.u32 %v8527_v9, %v7976_v15  ;;  %v7868_v61 = vld [vmem:[%s12708_s1 + $0xc30] sm:$0xf]  ;;  %v5979_v15 = vld [vmem:[%s8814_s19 + $0x28] sm:$0x11] }
  0xe3   : > { %v4315_v27 = vpop.f32.mrf.mxu3  ;;  %v4347_v33 = vpop.f32.mrf.mxu0 }
  0xe4   : > { %v4316_v18 = vadd.f32 %v4315_v27, %v4287_v3  ;;  %4714 = vmatpush.bf16.msra.mxu1 %v7977_v44  ;;  %v6204_v27 = vld [vmem:[#allocation2 + $0x148] sm:$0xf]  ;;  %v8088_v44 = vld [vmem:[#allocation2 + $0x194] sm:$0xf0] }
  0xe5   : > { %v10053_v36 = vpop.f32.mrf.mxu1  ;;  %4520 = vmatmul.bf16.gmra.mxu2 %v10044_v17  ;;  %v8497_v17 = vld [vmem:[%s12708_s1 + $0xc20] sm:$0xf0] }
  0xe6   : > { %v4345_v10 = vadd.f32 %v4344_v25, %v4316_v18  ;;  %v690_v25 = vshrl.u32 %v9800_v19, 16  ;;  %v8087_v18 = vld [vmem:[#allocation2 + $0x18c] sm:$0xf0]  ;;  %4629 = vmatpush.bf16.msra.mxu2 %v7665_v31  ;;  %v8524_v31 = vld [vmem:[%s12708_s1 + $0xcf8] sm:$0xf0] }
  0xe7   : > { %4578 = vmatmul.bf16.gmra.mxu0 %v10046_v51 }
  0xe8   : > { %4549 = vmatmul.bf16.gmra.mxu3 %v10049_v46  ;;  %4607 = vmatmul.bf16.gmra.mxu1 %v10051_v62  ;;  %v10073_v24 = vadd.f32 %v4373_v38, %v4345_v10  ;;  %v4289_v34 = vpop.f32.mrf.mxu2  ;;  %v7761_v38 = vor.u32 %v8473_v50, %v7760_v5  ;;  %v7869_v10 = vor.u32 %v8500_v14, %v7868_v61  ;;  %v692_v26 = vrot.slane %v690_v25, 4  ;;  %v7964_v62 = vld [vmem:[%s12708_s1 + $0xcf0] sm:$0xf]  ;;  %v10103_v61 = vld [vmem:[%s8814_s19 + $0x20] sm:$0xee] }
  0xe9   : > { %v4290_v63 = vadd.f32 %v4289_v34, %v9899_v60  ;;  %v6212_v60 = vld [vmem:[#allocation2 + $0x150] sm:$0xf]  ;;  %v695_v34 = vrot.slane %v693_v55, 5  ;;  %v707_v5 = vshll.u32 %v9803_v53, 16  ;;  %v8078_v25 = vld [vmem:[#allocation2 + $0x14c] sm:$0xf]  ;;  %v7965_v51 = vor.u32 %v8524_v31, %v7964_v62 }
  0xea   : > { %4658 = vmatpush.bf16.msra.mxu3 %v7761_v38  ;;  %4686 = vmatpush.bf16.msra.mxu0 %v7869_v10  ;;  %v6206_v55 = vld [vmem:[#allocation2 + $0x190] sm:$0xf0]  ;;  %v6214_v53 = vld [vmem:[#allocation2 + $0x198] sm:$0xf0]  ;;  %v7652_v10 = vld [vmem:[%s12708_s1 + $0xa80] sm:$0xf] }
  0xeb   : > { %v4318_v19 = vpop.f32.mrf.mxu3  ;;  %v10089_v3 = vpop.f32.mrf.mxu0  ;;  %v8079_v14 = vld [vmem:[#allocation2 + $0x154] sm:$0xf]  ;;  %v8446_v46 = vld [vmem:[%s12708_s1 + $0xa88] sm:$0xf0]  ;;  %v7856_v31 = vld [vmem:[%s12708_s1 + $0xc18] sm:$0xf]  ;;  %4715 = vmatpush.bf16.msra.mxu1 %v7965_v51 }
  0xec   : > { %v4319_v9 = vadd.f32 %v4318_v19, %v4290_v63  ;;  %v699_v63 = vshll.u32 %v5979_v15, 16  ;;  %v706_v19 = vrot.slane %v704_v42, 4  ;;  %v7748_v42 = vld [vmem:[%s12708_s1 + $0xb40] sm:$0xf]  ;;  %v10114_v15 = vor.u32 %v8087_v18, %v6204_v27  ;;  %v8470_v62 = vld [vmem:[%s12708_s1 + $0xb48] sm:$0xf0] }
  0xed   : > { %v10094_v50 = vpop.f32.mrf.mxu1  ;;  %v7749_v7 = vor.u32 %v8470_v62, %v7748_v42  ;;  %v7857_v45 = vor.u32 %v8497_v17, %v7856_v31  ;;  %v5995_v27 = vld [vmem:[%s8814_s19 + $0x28] sm:$0x11]  ;;  %v709_v51 = vrot.slane %v707_v5, 5  ;;  %v713_v42 = vshll.u32 %v5981_v35, 16 }
  0xee   : > { %v4348_v38 = vadd.f32 %v4347_v33, %v4319_v9  ;;  %v696_v33 = vor.u32 %v695_v34, %v692_v26  ;;  %12871 = vst [vmem:[#allocation49_spill] sm:$0xff] %v10114_v15  ;;  %v7653_v9 = vor.u32 %v8446_v46, %v7652_v10  ;;  %v701_v26 = vrot.slane %v699_v63, 5  ;;  %v5996_v46 = vld [vmem:[%s8814_s19 + $0x30] sm:$0xee]  ;;  %v7952_v10 = vld [vmem:[%s12708_s1 + $0xcd8] sm:$0xf] }
  0xef   : > { %v10127_v34 = vor.u32 %v8088_v44, %v6212_v60  ;;  %4659 = vmatpush.bf16.msra.mxu3 %v7749_v7  ;;  %4687 = vmatpush.bf16.msra.mxu0 %v7857_v45  ;;  %v7953_v60 = vor.u32 %v8521_v40, %v7952_v10  ;;  %v6010_v62 = vrot.slane %v10103_v61, 9  ;;  %v10145_v5 = vor.u32 %v8078_v25, %v6206_v55  ;;  %v8494_v7 = vld [vmem:[%s12708_s1 + $0xc08] sm:$0xf0]  ;;  %v5982_v25 = vld [vmem:[%s8814_s19 + $0x40] sm:$0xff]  ;;  %v5984_v10 = vld [vmem:[%s8814_s19 + $0x50] sm:$0xff] }
  0xf0   : > { %v697_v43 = vrot.slane %v696_v33, 4  ;;  %v4291_v18 = vpop.f32.mrf.mxu2  ;;  %4630 = vmatpush.bf16.msra.mxu2 %v7653_v9  ;;  %v10136_v17 = vadd.f32 %v10053_v36, %v4348_v38  ;;  %v5997_v9 = vld [vmem:[%s8814_s19 + $0x38] sm:$0x11]  ;;  %v10147_v35 = vor.u32 %v8079_v14, %v6214_v53  ;;  %v710_v40 = vor.u32 %v709_v51, %v706_v19  ;;  %v7940_v53 = vld [vmem:[%s12708_s1 + $0xcc0] sm:$0xf] }
  0xf1   : > { %12872 = vst [vmem:[#allocation50_spill] sm:$0xff] %v10127_v34  ;;  %v4292_v63 = vadd.f32 %v4291_v18, %v9936_v52  ;;  %v7844_v52 = vld [vmem:[%s12708_s1 + $0xc00] sm:$0xf]  ;;  %4716 = vmatpush.bf16.msra.mxu1 %v7953_v60  ;;  %v851_v61 = vrot.slane %v5995_v27, 5  ;;  %v6011_v38 = vrot.slane %v5996_v46, 9  ;;  %v718_v51 = vshrl.u32 %v5982_v25, 16 }
  0xf2   : > { %v702_v44 = vsel %vm9085_vm2, %v697_v43, %v701_v26  ;;  %12873 = vst [vmem:[#allocation51_spill] sm:$0xff] %v10145_v5  ;;  %v715_v43 = vrot.slane %v713_v42, 5  ;;  %v7845_v36 = vor.u32 %v8494_v7, %v7844_v52  ;;  %v711_v14 = vrot.slane %v710_v40, 4  ;;  %v8518_v19 = vld [vmem:[%s12708_s1 + $0xcc8] sm:$0xf0] }
  0xf3   : > { %v4320_v33 = vpop.f32.mrf.mxu3  ;;  %12874 = vst [vmem:[#allocation52_spill] sm:$0xff] %v10147_v35  ;;  %v855_v26 = vrot.slane %v5997_v9, 5  ;;  %v7941_v27 = vor.u32 %v8518_v19, %v7940_v53  ;;  %v852_v46 = vsel %vm9133_vm5, %v6010_v62, %v851_v61  ;;  %v721_v60 = vshll.u32 %v5982_v25, 16  ;;  %v8154_v9 = vld [vmem:[%s12708_s1 + $0x16c] sm:$0xf] }
  0xf4   : > { %v10143_v31 = vpop.f32.mrf.mxu0  ;;  %809 = vst [vmem:[#allocation2 + $0x38] sm:$0xff] %v702_v44  ;;  %v4321_v45 = vadd.f32 %v4320_v33, %v4292_v63  ;;  %4688 = vmatpush.bf16.msra.mxu0 %v7845_v36  ;;  %v716_v42 = vsel %vm9085_vm2, %v711_v14, %v715_v43  ;;  %v6394_v63 = vld [vmem:[%s12708_s1 + $0xb4] sm:$0xf0]  ;;  %v720_v52 = vrot.slane %v718_v51, 4  ;;  %v732_v53 = vshrl.u32 %v5984_v10, 16 }
  0xf5   : > { %v10156_v55 = vpop.f32.mrf.mxu1  ;;  %4525 = vmatmul.bf16.gmra.mxu2 %v10114_v15  ;;  %v856_v33 = vsel %vm9133_vm5, %v6011_v38, %v855_v26  ;;  %889 = vst [vmem:[#allocation2 + $0x40] sm:$0xff] %v852_v46  ;;  %v6490_v62 = vld [vmem:[%s12708_s1 + $0x174] sm:$0xf0]  ;;  %4717 = vmatpush.bf16.msra.mxu1 %v7941_v27  ;;  %v723_v61 = vrot.slane %v721_v60, 5  ;;  %v8105_v27 = vld [vmem:[#allocation2 + $0x21c] sm:$0xf0] }
  0xf6   : > { %v4350_v18 = vadd.f32 %v10089_v3, %v4321_v45  ;;  %v8130_v3 = vld [vmem:[%s12708_s1 + $0xac] sm:$0xf]  ;;  %810 = vst [vmem:[#allocation2 + $0x80] sm:$0xff] %v716_v42  ;;  %v6493_v43 = vor.u32 %v8154_v9, %v6490_v62  ;;  %v5985_v36 = vld [vmem:[%s8814_s19 + $0x58] sm:$0x11] }
  0xf7   : > { %4583 = vmatmul.bf16.gmra.mxu0 %v10127_v34  ;;  %v6397_v44 = vor.u32 %v8130_v3, %v6394_v63  ;;  %890 = vst [vmem:[#allocation2 + $0x88] sm:$0xff] %v856_v33  ;;  %v5983_v45 = vld [vmem:[%s8814_s19 + $0x48] sm:$0x11]  ;;  %v724_v26 = vor.u32 %v723_v61, %v720_v52  ;;  %v6276_v46 = vld [vmem:[#allocation2 + $0x1d8] sm:$0xf]  ;;  %v741_v33 = vshll.u32 %v5985_v36, 16 }
  0xf8   : > { %4554 = vmatmul.bf16.gmra.mxu3 %v10145_v5  ;;  %4612 = vmatmul.bf16.gmra.mxu1 %v10147_v35  ;;  %v10189_v7 = vadd.f32 %v10094_v50, %v4350_v18  ;;  %v4294_v40 = vpop.f32.mrf.mxu2  ;;  %v727_v14 = vshll.u32 %v5983_v45, 16  ;;  %v735_v50 = vshll.u32 %v5984_v10, 16  ;;  %v8096_v51 = vld [vmem:[#allocation2 + $0x1dc] sm:$0xf]  ;;  %v6278_v42 = vld [vmem:[#allocation2 + $0x220] sm:$0xf0]  ;;  %v10217_v5 = vor.u32 %v8105_v27, %v6276_v46 }
  0xf9   : > { %v4295_v38 = vadd.f32 %v4294_v40, %v9859_v30  ;;  %4739 = vmatpush.bf16.msrb.mxu2 %v6397_v44  ;;  %4768 = vmatpush.bf16.msrb.mxu3 %v6493_v43  ;;  %v6284_v3 = vld [vmem:[#allocation2 + $0x1e0] sm:$0xf]  ;;  %v734_v30 = vrot.slane %v732_v53, 4  ;;  %v8106_v44 = vld [vmem:[#allocation2 + $0x224] sm:$0xf0]  ;;  %v725_v9 = vrot.slane %v724_v26, 4  ;;  %v10219_v15 = vor.u32 %v8096_v51, %v6278_v42 }
  0xfa   : > { %v729_v63 = vrot.slane %v727_v14, 5  ;;  %v737_v62 = vrot.slane %v735_v50, 5  ;;  %v5998_v40 = vld [vmem:[%s8814_s19 + $0x40] sm:$0xee]  ;;  %v6286_v43 = vld [vmem:[#allocation2 + $0x228] sm:$0xf0] }
  0xfb   : > { %v4323_v25 = vpop.f32.mrf.mxu3  ;;  %v8097_v52 = vld [vmem:[#allocation2 + $0x1e4] sm:$0xf]  ;;  %v8127_v45 = vld [vmem:[%s12708_s1 + $0x94] sm:$0xf]  ;;  %v6382_v61 = vld [vmem:[%s12708_s1 + $0x9c] sm:$0xf0] }
  0xfc   : > { %v10194_v19 = vpop.f32.mrf.mxu0  ;;  %v4324_v18 = vadd.f32 %v4323_v25, %v4295_v38  ;;  %v730_v36 = vsel %vm9085_vm2, %v725_v9, %v729_v63  ;;  %v738_v38 = vor.u32 %v737_v62, %v734_v30  ;;  %v5999_v25 = vld [vmem:[%s8814_s19 + $0x48] sm:$0x11]  ;;  %v6000_v14 = vld [vmem:[%s8814_s19 + $0x50] sm:$0xee]  ;;  %v6385_v53 = vor.u32 %v8127_v45, %v6382_v61  ;;  %v6001_v50 = vld [vmem:[%s8814_s19 + $0x58] sm:$0x11] }
  0xfd   : > { %v10196_v60 = vpop.f32.mrf.mxu1  ;;  %v743_v26 = vrot.slane %v741_v33, 5  ;;  %12875 = vst [vmem:[#allocation53_spill] sm:$0xff] %v10217_v5  ;;  %v10221_v63 = vor.u32 %v8106_v44, %v6284_v3  ;;  %v6478_v30 = vld [vmem:[%s12708_s1 + $0x15c] sm:$0xf0]  ;;  %v8178_v33 = vld [vmem:[%s12708_s1 + $0x22c] sm:$0xf]  ;;  %v10235_v9 = vor.u32 %v8097_v52, %v6286_v43 }
  0xfe   : > { %v4353_v10 = vadd.f32 %v10143_v31, %v4324_v18  ;;  %v8151_v31 = vld [vmem:[%s12708_s1 + $0x154] sm:$0xf]  ;;  %v6012_v18 = vrot.slane %v5998_v40, 9  ;;  %12876 = vst [vmem:[#allocation54_spill] sm:$0xff] %v10219_v15  ;;  %4740 = vmatpush.bf16.msrb.mxu2 %v6385_v53  ;;  %v739_v3 = vrot.slane %v738_v38, 4  ;;  %v859_v62 = vrot.slane %v5999_v25, 5 }
  0xff   : > { %12877 = vst [vmem:[#allocation55_spill] sm:$0xff] %v10221_v63  ;;  %v6481_v51 = vor.u32 %v8151_v31, %v6478_v30  ;;  %v6013_v40 = vrot.slane %v6000_v14, 9  ;;  %v5986_v45 = vld [vmem:[%s8814_s19 + $0x60] sm:$0xff]  ;;  %v5988_v61 = vld [vmem:[%s8814_s19 + $0x70] sm:$0xff]  ;;  %v8202_v14 = vld [vmem:[%s12708_s1 + $0x2ec] sm:$0xf] }
 0x100   : > { %v10215_v35 = vadd.f32 %v10156_v55, %v4353_v10  ;;  %v4296_v34 = vpop.f32.mrf.mxu2  ;;  %v6586_v55 = vld [vmem:[%s12708_s1 + $0x234] sm:$0xf0]  ;;  %811 = vst [vmem:[#allocation2 + $0xc8] sm:$0xff] %v730_v36  ;;  %v863_v10 = vrot.slane %v6001_v50, 5  ;;  %v749_v53 = vshll.u32 %v5986_v45, 16  ;;  %v860_v52 = vsel %vm9133_vm5, %v6012_v18, %v859_v62 }
 0x101   : > { %v4297_v46 = vadd.f32 %v4296_v34, %v9893_v23  ;;  %v6589_v42 = vor.u32 %v8178_v33, %v6586_v55  ;;  %12878 = vst [vmem:[#allocation56_spill] sm:$0xff] %v10235_v9  ;;  %4769 = vmatpush.bf16.msrb.mxu3 %v6481_v51  ;;  %v744_v23 = vsel %vm9085_vm2, %v739_v3, %v743_v26  ;;  %v746_v34 = vshrl.u32 %v5986_v45, 16  ;;  %v6682_v26 = vld [vmem:[%s12708_s1 + $0x2f4] sm:$0xf0]  ;;  %v8148_v55 = vld [vmem:[%s12708_s1 + $0x13c] sm:$0xf] }
 0x102   : > { %812 = vst [vmem:[#allocation2 + $0x110] sm:$0xff] %v744_v23  ;;  %v864_v43 = vsel %vm9133_vm5, %v6013_v40, %v863_v10  ;;  %v760_v36 = vshrl.u32 %v5988_v61, 16  ;;  %v763_v38 = vshll.u32 %v5988_v61, 16  ;;  %v6685_v18 = vor.u32 %v8202_v14, %v6682_v26  ;;  %v6574_v62 = vld [vmem:[%s12708_s1 + $0x21c] sm:$0xf0] }
 0x103   : > { %v4325_v27 = vpop.f32.mrf.mxu3  ;;  %4797 = vmatpush.bf16.msrb.mxu0 %v6589_v42  ;;  %891 = vst [vmem:[#allocation2 + $0xd0] sm:$0xff] %v860_v52  ;;  %v748_v50 = vrot.slane %v746_v34, 4  ;;  %v751_v30 = vrot.slane %v749_v53, 5  ;;  %v5987_v23 = vld [vmem:[%s8814_s19 + $0x68] sm:$0x11] }
 0x104   : > { %v10233_v44 = vpop.f32.mrf.mxu0  ;;  %v4326_v58 = vadd.f32 %v4325_v27, %v4297_v46  ;;  %892 = vst [vmem:[#allocation2 + $0x118] sm:$0xff] %v864_v43  ;;  %v6466_v46 = vld [vmem:[%s12708_s1 + $0x144] sm:$0xf0]  ;;  %v8175_v27 = vld [vmem:[%s12708_s1 + $0x214] sm:$0xf]  ;;  %4826 = vmatpush.bf16.msrb.mxu1 %v6685_v18  ;;  %v762_v53 = vrot.slane %v760_v36, 4 }
 0x105   : > { %v10241_v31 = vpop.f32.mrf.mxu1  ;;  %4530 = vmatmul.bf16.gmra.mxu2 %v10217_v5  ;;  %v6469_v3 = vor.u32 %v8148_v55, %v6466_v46  ;;  %v752_v40 = vor.u32 %v751_v30, %v748_v50  ;;  %v6577_v61 = vor.u32 %v8175_v27, %v6574_v62  ;;  %v5989_v34 = vld [vmem:[%s8814_s19 + $0x78] sm:$0x11]  ;;  %v765_v52 = vrot.slane %v763_v38, 5  ;;  %v8053_v50 = vld [vmem:[#allocation2 + $0x7c] sm:$0xf0] }
 0x106   : > { %v4355_v25 = vadd.f32 %v10194_v19, %v4326_v58  ;;  %v8124_v58 = vld [vmem:[%s12708_s1 + $0x7c] sm:$0xf]  ;;  %v6370_v19 = vld [vmem:[%s12708_s1 + $0x84] sm:$0xf0]  ;;  %v769_v14 = vshll.u32 %v5989_v34, 16 }
 0x107   : > { %4588 = vmatmul.bf16.gmra.mxu0 %v10221_v63  ;;  %v6373_v33 = vor.u32 %v8124_v58, %v6370_v19  ;;  %4770 = vmatpush.bf16.msrb.mxu3 %v6469_v3  ;;  %v753_v43 = vrot.slane %v752_v40, 4  ;;  %v6076_v18 = vld [vmem:[#allocation2 + $0x38] sm:$0xf]  ;;  %v6084_v58 = vld [vmem:[#allocation2 + $0x40] sm:$0xf] }
 0x108   : > { %4559 = vmatmul.bf16.gmra.mxu3 %v10219_v15  ;;  %4617 = vmatmul.bf16.gmra.mxu1 %v10235_v9  ;;  %v10274_v51 = vadd.f32 %v10196_v60, %v4355_v25  ;;  %v4299_v42 = vpop.f32.mrf.mxu2  ;;  %v755_v25 = vshll.u32 %v5987_v23, 16  ;;  %v8054_v19 = vld [vmem:[#allocation2 + $0x84] sm:$0xf0]  ;;  %v6002_v36 = vld [vmem:[%s8814_s19 + $0x60] sm:$0xee] }
 0x109   : > { %v4300_v10 = vadd.f32 %v4299_v42, %v9931_v2  ;;  %4741 = vmatpush.bf16.msrb.mxu2 %v6373_v33  ;;  %4798 = vmatpush.bf16.msrb.mxu0 %v6577_v61  ;;  %v766_v33 = vor.u32 %v765_v52, %v762_v53  ;;  %v8044_v55 = vld [vmem:[#allocation2 + $0x3c] sm:$0xf]  ;;  %v6078_v46 = vld [vmem:[#allocation2 + $0x80] sm:$0xf0]  ;;  %v8199_v27 = vld [vmem:[%s12708_s1 + $0x2d4] sm:$0xf] }
 0x10a   : > { %v757_v30 = vrot.slane %v755_v25, 5  ;;  %v771_v42 = vrot.slane %v769_v14, 5  ;;  %v6003_v3 = vld [vmem:[%s8814_s19 + $0x68] sm:$0x11]  ;;  %v8045_v62 = vld [vmem:[#allocation2 + $0x44] sm:$0xf] }
 0x10b   : > { %v4328_v45 = vpop.f32.mrf.mxu3  ;;  %v6086_v40 = vld [vmem:[#allocation2 + $0x88] sm:$0xf0]  ;;  %v8145_v53 = vld [vmem:[%s12708_s1 + $0x124] sm:$0xf]  ;;  %v6454_v52 = vld [vmem:[%s12708_s1 + $0x12c] sm:$0xf0] }
 0x10c   : > { %v10282_v60 = vpop.f32.mrf.mxu0  ;;  %v4329_v26 = vadd.f32 %v4328_v45, %v4300_v10  ;;  %v6670_v10 = vld [vmem:[%s12708_s1 + $0x2dc] sm:$0xf0]  ;;  %v8121_v45 = vld [vmem:[%s12708_s1 + $0x64] sm:$0xf]  ;;  %v758_v61 = vsel %vm9085_vm2, %v753_v43, %v757_v30  ;;  %v8172_v25 = vld [vmem:[%s12708_s1 + $0x1fc] sm:$0xf]  ;;  %v10315_v43 = vor.u32 %v8053_v50, %v6076_v18  ;;  %v10317_v30 = vor.u32 %v8054_v19, %v6084_v58 }
 0x10d   : > { %v10284_v2 = vpop.f32.mrf.mxu1  ;;  %v6673_v23 = vor.u32 %v8199_v27, %v6670_v10  ;;  %v6457_v27 = vor.u32 %v8145_v53, %v6454_v52  ;;  %v6562_v10 = vld [vmem:[%s12708_s1 + $0x204] sm:$0xf0]  ;;  %813 = vst [vmem:[#allocation2 + $0x158] sm:$0xff] %v758_v61  ;;  %v6014_v18 = vrot.slane %v6002_v36, 9  ;;  %v867_v50 = vrot.slane %v6003_v3, 5  ;;  %v5990_v52 = vld [vmem:[%s8814_s19 + $0x80] sm:$0xff] }
 0x10e   : > { %v4358_v38 = vadd.f32 %v10233_v44, %v4329_v26  ;;  %v6358_v44 = vld [vmem:[%s12708_s1 + $0x6c] sm:$0xf0]  ;;  %12879 = vst [vmem:[#allocation57_spill] sm:$0xff] %v10315_v43  ;;  %v10327_v19 = vor.u32 %v8044_v55, %v6078_v46  ;;  %v774_v3 = vshrl.u32 %v5990_v52, 16  ;;  %v777_v46 = vshll.u32 %v5990_v52, 16 }
 0x10f   : > { %v6361_v34 = vor.u32 %v8121_v45, %v6358_v44  ;;  %12880 = vst [vmem:[#allocation58_spill] sm:$0xff] %v10317_v30  ;;  %v767_v45 = vrot.slane %v766_v33, 4  ;;  %v6004_v44 = vld [vmem:[%s8814_s19 + $0x70] sm:$0xee]  ;;  %4827 = vmatpush.bf16.msrb.mxu1 %v6673_v23  ;;  %4771 = vmatpush.bf16.msrb.mxu3 %v6457_v27  ;;  %v868_v36 = vsel %vm9133_vm5, %v6014_v18, %v867_v50  ;;  %v5991_v18 = vld [vmem:[%s8814_s19 + $0x88] sm:$0x11] }
 0x110   : > { %v10313_v14 = vadd.f32 %v10241_v31, %v4358_v38  ;;  %v4301_v26 = vpop.f32.mrf.mxu2  ;;  %v6565_v31 = vor.u32 %v8172_v25, %v6562_v10  ;;  %v6005_v38 = vld [vmem:[%s8814_s19 + $0x78] sm:$0x11]  ;;  %12881 = vst [vmem:[#allocation59_spill] sm:$0xff] %v10327_v19  ;;  %v6015_v61 = vrot.slane %v6004_v44, 9  ;;  %v8142_v25 = vld [vmem:[%s12708_s1 + $0x10c] sm:$0xf] }
 0x111   : > { %v4302_v9 = vadd.f32 %v4301_v26, %v9973_v21  ;;  %4742 = vmatpush.bf16.msrb.mxu2 %v6361_v34  ;;  %v772_v33 = vsel %vm9085_vm2, %v767_v45, %v771_v42  ;;  %v871_v53 = vrot.slane %v6005_v38, 5  ;;  %v10332_v21 = vor.u32 %v8045_v62, %v6086_v40  ;;  %893 = vst [vmem:[#allocation2 + $0x160] sm:$0xff] %v868_v36  ;;  %v6442_v26 = vld [vmem:[%s12708_s1 + $0x114] sm:$0xf0]  ;;  %v6550_v38 = vld [vmem:[%s12708_s1 + $0x1ec] sm:$0xf0] }
 0x112   : > { %4799 = vmatpush.bf16.msrb.mxu0 %v6565_v31  ;;  %814 = vst [vmem:[#allocation2 + $0x1a0] sm:$0xff] %v772_v33  ;;  %v788_v42 = vshrl.u32 %v10039_v22, 16  ;;  %v791_v62 = vshll.u32 %v10039_v22, 16  ;;  %v776_v27 = vrot.slane %v774_v3, 4  ;;  %v6445_v44 = vor.u32 %v8142_v25, %v6442_v26  ;;  %v8169_v31 = vld [vmem:[%s12708_s1 + $0x1e4] sm:$0xf] }
 0x113   : > { %v4330_v63 = vpop.f32.mrf.mxu3  ;;  %12882 = vst [vmem:[#allocation60_spill] sm:$0xff] %v10332_v21  ;;  %v872_v55 = vsel %vm9133_vm5, %v6015_v61, %v871_v53  ;;  %v6553_v61 = vor.u32 %v8169_v31, %v6550_v38  ;;  %v5993_v53 = vld [vmem:[%s8814_s19 + $0x98] sm:$0x11]  ;;  %v783_v52 = vshll.u32 %v5991_v18, 16  ;;  %v6148_v3 = vld [vmem:[#allocation2 + $0xc8] sm:$0xf] }
 0x114   : > { %v10325_v58 = vpop.f32.mrf.mxu0  ;;  %v4331_v15 = vadd.f32 %v4330_v63, %v4302_v9  ;;  %v8196_v63 = vld [vmem:[%s12708_s1 + $0x2bc] sm:$0xf]  ;;  %v6658_v9 = vld [vmem:[%s12708_s1 + $0x2c4] sm:$0xf0]  ;;  %894 = vst [vmem:[#allocation2 + $0x1a8] sm:$0xff] %v872_v55  ;;  %4772 = vmatpush.bf16.msrb.mxu3 %v6445_v44  ;;  %v790_v55 = vrot.slane %v788_v42, 4 }
 0x115   : > { %v10336_v23 = vpop.f32.mrf.mxu1  ;;  %4631 = vmatmul.bf16.vlgmr.msra.gmra.mxu2 %v10315_v43  ;;  %v6661_v40 = vor.u32 %v8196_v63, %v6658_v9  ;;  %v8071_v9 = vld [vmem:[#allocation2 + $0x10c] sm:$0xf0]  ;;  %v785_v25 = vrot.slane %v783_v52, 5  ;;  %v797_v26 = vshll.u32 %v5993_v53, 16  ;;  %v8062_v31 = vld [vmem:[#allocation2 + $0xcc] sm:$0xf] }
 0x116   : > { %v4360_v34 = vadd.f32 %v10282_v60, %v4331_v15  ;;  %v8118_v15 = vld [vmem:[%s12708_s1 + $0x4c] sm:$0xf]  ;;  %v6346_v60 = vld [vmem:[%s12708_s1 + $0x54] sm:$0xf0]  ;;  %4800 = vmatpush.bf16.msrb.mxu0 %v6553_v61  ;;  %v6150_v38 = vld [vmem:[#allocation2 + $0x110] sm:$0xf0]  ;;  %v10392_v44 = vor.u32 %v8071_v9, %v6148_v3 }
 0x117   : > { %4689 = vmatmul.bf16.vlgmr.msra.gmra.mxu0 %v10317_v30  ;;  %v6349_v22 = vor.u32 %v8118_v15, %v6346_v60  ;;  %4828 = vmatpush.bf16.msrb.mxu1 %v6661_v40  ;;  %v6156_v40 = vld [vmem:[#allocation2 + $0xd0] sm:$0xf]  ;;  %v8072_v15 = vld [vmem:[#allocation2 + $0x114] sm:$0xf0]  ;;  %v8193_v42 = vld [vmem:[%s12708_s1 + $0x2a4] sm:$0xf] }
 0x118   : > { %4660 = vmatmul.bf16.vlgmr.msra.gmra.mxu3 %v10327_v19  ;;  %4718 = vmatmul.bf16.vlgmr.msra.gmra.mxu1 %v10332_v21  ;;  %v10366_v10 = vadd.f32 %v10284_v2, %v4360_v34  ;;  %v4400_v45 = vpop.f32.mrf.mxu2  ;;  %v779_v2 = vrot.slane %v777_v46, 5  ;;  %v793_v34 = vrot.slane %v791_v62, 5  ;;  %v6006_v46 = vld [vmem:[%s8814_s19 + $0x80] sm:$0xee]  ;;  %v6646_v62 = vld [vmem:[%s12708_s1 + $0x2ac] sm:$0xf0]  ;;  %v10394_v18 = vor.u32 %v8072_v15, %v6156_v40 }
 0x119   : > { %v4401_v50 = vadd.f32 %v4400_v45, %v10041_v56  ;;  %4743 = vmatpush.bf16.msrb.mxu2 %v6349_v22  ;;  %12883 = vst [vmem:[#allocation61_spill] sm:$0xff] %v10392_v44  ;;  %v6334_v61 = vld [vmem:[%s12708_s1 + $0x3c] sm:$0xf0]  ;;  %v8139_v53 = vld [vmem:[%s12708_s1 + $0xf4] sm:$0xf]  ;;  %v6016_v30 = vrot.slane %v6006_v46, 9 }
 0x11a   : > { %v780_v60 = vor.u32 %v779_v2, %v776_v27  ;;  %v794_v22 = vor.u32 %v793_v34, %v790_v55  ;;  %v8115_v27 = vld [vmem:[%s12708_s1 + $0x34] sm:$0xf]  ;;  %12884 = vst [vmem:[#allocation62_spill] sm:$0xff] %v10394_v18  ;;  %v6430_v2 = vld [vmem:[%s12708_s1 + $0xfc] sm:$0xf0] }
 0x11b   : > { %v4429_v33 = vpop.f32.mrf.mxu3  ;;  %v6337_v52 = vor.u32 %v8115_v27, %v6334_v61  ;;  %v6433_v3 = vor.u32 %v8139_v53, %v6430_v2  ;;  %v8166_v55 = vld [vmem:[%s12708_s1 + $0x1cc] sm:$0xf]  ;;  %v6538_v34 = vld [vmem:[%s12708_s1 + $0x1d4] sm:$0xf0]  ;;  %v6008_v21 = vld [vmem:[%s8814_s19 + $0x90] sm:$0xee] }
 0x11c   : > { %v10377_v36 = vpop.f32.mrf.mxu0  ;;  %v4430_v63 = vadd.f32 %v4429_v33, %v4401_v50  ;;  %v8063_v50 = vld [vmem:[#allocation2 + $0xd4] sm:$0xf]  ;;  %v6649_v33 = vor.u32 %v8193_v42, %v6646_v62  ;;  %v795_v9 = vrot.slane %v794_v22, 4  ;;  %v6541_v15 = vor.u32 %v8166_v55, %v6538_v34  ;;  %v6007_v62 = vld [vmem:[%s8814_s19 + $0x88] sm:$0x11] }
 0x11d   : > { %v10379_v56 = vpop.f32.mrf.mxu1  ;;  %v799_v42 = vrot.slane %v797_v26, 5  ;;  %4744 = vmatpush.bf16.msrb.mxu2 %v6337_v52  ;;  %4773 = vmatpush.bf16.msrb.mxu3 %v6433_v3  ;;  %v875_v22 = vrot.slane %v6007_v62, 5  ;;  %v6017_v19 = vrot.slane %v6008_v21, 9  ;;  %v10420_v55 = vor.u32 %v8062_v31, %v6150_v38  ;;  %v6634_v38 = vld [vmem:[%s12708_s1 + $0x294] sm:$0xf0] }
 0x11e   : > { %v4459_v45 = vadd.f32 %v10325_v58, %v4430_v63  ;;  %v6158_v58 = vld [vmem:[#allocation2 + $0x118] sm:$0xf0]  ;;  %v781_v63 = vrot.slane %v780_v60, 4  ;;  %4829 = vmatpush.bf16.msrb.mxu1 %v6649_v33  ;;  %4801 = vmatpush.bf16.msrb.mxu0 %v6541_v15  ;;  %v6637_v4 = vor.u32 %v8190_v39, %v6634_v38  ;;  %v8163_v52 = vld [vmem:[%s12708_s1 + $0x1b4] sm:$0xf] }
 0x11f   : > { %v6009_v60 = vld [vmem:[%s8814_s19 + $0x98] sm:$0x11]  ;;  %12885 = vst [vmem:[#allocation63_spill] sm:$0xff] %v10420_v55  ;;  %v800_v26 = vsel %vm9085_vm2, %v795_v9, %v799_v42  ;;  %v6526_v3 = vld [vmem:[%s12708_s1 + $0x1bc] sm:$0xf0] }
 0x120   : > { %v4402_v40 = vpop.f32.mrf.mxu2  ;;  %v10414_v27 = vadd.f32 %v10336_v23, %v4459_v45  ;;  %v786_v2 = vsel %vm9085_vm2, %v781_v63, %v785_v25  ;;  %v879_v23 = vrot.slane %v6009_v60, 5  ;;  %816 = vst [vmem:[#allocation2 + $0x230] sm:$0xff] %v800_v26  ;;  %v876_v45 = vsel %vm9133_vm5, %v6016_v30, %v875_v22  ;;  %v8112_v30 = vld [vmem:[%s12708_s1 + $0x1c] sm:$0xf]  ;;  %v8089_v60 = vld [vmem:[#allocation2 + $0x19c] sm:$0xf0] }
 0x121   : > { %v4403_v61 = vadd.f32 %v4402_v40, %v10073_v24  ;;  %815 = vst [vmem:[#allocation2 + $0x1e8] sm:$0xff] %v786_v2  ;;  %v10424_v24 = vor.u32 %v8063_v50, %v6158_v58  ;;  %v6418_v58 = vld [vmem:[%s12708_s1 + $0xe4] sm:$0xf0]  ;;  %v6529_v40 = vor.u32 %v8163_v52, %v6526_v3  ;;  %v6220_v2 = vld [vmem:[#allocation2 + $0x158] sm:$0xf] }
 0x122   : > { %v880_v21 = vsel %vm9133_vm5, %v6017_v19, %v879_v23  ;;  %895 = vst [vmem:[#allocation2 + $0x1f0] sm:$0xff] %v876_v45  ;;  %v6322_v19 = vld [vmem:[%s12708_s1 + $0x24] sm:$0xf0]  ;;  %4830 = vmatpush.bf16.msrb.mxu1 %v6637_v4  ;;  %v6228_v22 = vld [vmem:[#allocation2 + $0x160] sm:$0xf] }
 0x123   : > { %v4431_v53 = vpop.f32.mrf.mxu3  ;;  %12886 = vst [vmem:[#allocation64_spill] sm:$0xff] %v10424_v24  ;;  %v6325_v50 = vor.u32 %v8112_v30, %v6322_v19  ;;  %4802 = vmatpush.bf16.msrb.mxu0 %v6529_v40  ;;  %v8090_v26 = vld [vmem:[#allocation2 + $0x1a4] sm:$0xf0]  ;;  %v8109_v45 = vld [vmem:[%s12708_s1 + $0x4] sm:$0xf] }
 0x124   : > { %v4463_v33 = vpop.f32.mrf.mxu0  ;;  %v4432_v46 = vadd.f32 %v4431_v53, %v4403_v61  ;;  %896 = vst [vmem:[#allocation2 + $0x238] sm:$0xff] %v880_v21  ;;  %v6310_v21 = vld [vmem:[%s12708_s1 + $0xc] sm:$0xf0]  ;;  %v8133_v38 = vld [vmem:[%s12708_s1 + $0xc4] sm:$0xf] }
 0x125   : > { %v4492_v25 = vpop.f32.mrf.mxu1  ;;  %4636 = vmatmul.bf16.gmra.mxu2 %v10392_v44  ;;  %v6313_v39 = vor.u32 %v8109_v45, %v6310_v21  ;;  %v8160_v4 = vld [vmem:[%s12708_s1 + $0x19c] sm:$0xf]  ;;  %v6222_v30 = vld [vmem:[#allocation2 + $0x1a0] sm:$0xf0]  ;;  %v6230_v3 = vld [vmem:[#allocation2 + $0x1a8] sm:$0xf0] }
 0x126   : > { %v4461_v31 = vadd.f32 %v10377_v36, %v4432_v46  ;;  %v8136_v36 = vld [vmem:[%s12708_s1 + $0xdc] sm:$0xf]  ;;  %4745 = vmatpush.bf16.msrb.mxu2 %v6325_v50  ;;  %v8081_v19 = vld [vmem:[#allocation2 + $0x164] sm:$0xf]  ;;  %v6514_v50 = vld [vmem:[%s12708_s1 + $0x1a4] sm:$0xf0] }
 0x127   : > { %4694 = vmatmul.bf16.gmra.mxu0 %v10394_v18  ;;  %v6421_v9 = vor.u32 %v8136_v36, %v6418_v58  ;;  %v8080_v46 = vld [vmem:[#allocation2 + $0x15c] sm:$0xf]  ;;  %v6610_v40 = vld [vmem:[%s12708_s1 + $0x264] sm:$0xf0]  ;;  %v8157_v45 = vld [vmem:[%s12708_s1 + $0x184] sm:$0xf] }
 0x128   : > { %4665 = vmatmul.bf16.gmra.mxu3 %v10420_v55  ;;  %4723 = vmatmul.bf16.gmra.mxu1 %v10424_v24  ;;  %v10460_v34 = vadd.f32 %v10379_v56, %v4461_v31  ;;  %v4405_v63 = vpop.f32.mrf.mxu2  ;;  %v8187_v56 = vld [vmem:[%s12708_s1 + $0x274] sm:$0xf]  ;;  %v6502_v21 = vld [vmem:[%s12708_s1 + $0x18c] sm:$0xf0] }
 0x129   : > { %v4406_v15 = vadd.f32 %v4405_v63, %v10136_v17  ;;  %4774 = vmatpush.bf16.msrb.mxu3 %v6421_v9  ;;  %v6622_v17 = vld [vmem:[%s12708_s1 + $0x27c] sm:$0xf0]  ;;  %v6517_v63 = vor.u32 %v8160_v4, %v6514_v50  ;;  %v8184_v9 = vld [vmem:[%s12708_s1 + $0x25c] sm:$0xf] }
 0x12a   : > { %v6625_v31 = vor.u32 %v8187_v56, %v6622_v17  ;;  %4746 = vmatpush.bf16.msrb.mxu2 %v6313_v39  ;;  %v6613_v56 = vor.u32 %v8184_v9, %v6610_v40  ;;  %v10500_v17 = vor.u32 %v8080_v46, %v6222_v30  ;;  %v6874_v30 = vld [vmem:[%s12708_s1 + $0x474] sm:$0xf0] }
 0x12b   : > { %v4434_v42 = vpop.f32.mrf.mxu3  ;;  %4803 = vmatpush.bf16.msrb.mxu0 %v6517_v63 }
 0x12c   : > { %v4465_v62 = vpop.f32.mrf.mxu0  ;;  %v4435_v61 = vadd.f32 %v4434_v42, %v4406_v15  ;;  %4831 = vmatpush.bf16.msrb.mxu1 %v6625_v31  ;;  %12889 = vst [vmem:[#allocation67_spill] sm:$0xff] %v10500_v17  ;;  %v10508_v31 = vor.u32 %v8081_v19, %v6230_v3 }
 0x12d   : > { %v4494_v53 = vpop.f32.mrf.mxu1 }
 0x12e   : > { %v4464_v23 = vadd.f32 %v4463_v33, %v4435_v61  ;;  %v6406_v33 = vld [vmem:[%s12708_s1 + $0xcc] sm:$0xf0]  ;;  %v10496_v61 = vor.u32 %v8089_v60, %v6220_v2  ;;  %12890 = vst [vmem:[#allocation68_spill] sm:$0xff] %v10508_v31  ;;  %v6505_v2 = vor.u32 %v8157_v45, %v6502_v21  ;;  %v8108_v45 = vld [vmem:[#allocation2 + $0x234] sm:$0xf0] }
 0x12f   : > { %v6409_v36 = vor.u32 %v8133_v38, %v6406_v33  ;;  %v8226_v38 = vld [vmem:[%s12708_s1 + $0x3ac] sm:$0xf]  ;;  %v6778_v33 = vld [vmem:[%s12708_s1 + $0x3b4] sm:$0xf0] }
 0x130   : > { %v10487_v58 = vadd.f32 %v4492_v25, %v4464_v23  ;;  %v4407_v52 = vpop.f32.mrf.mxu2  ;;  %12887 = vst [vmem:[#allocation65_spill] sm:$0xff] %v10496_v61  ;;  %v10498_v25 = vor.u32 %v8090_v26, %v6228_v22  ;;  %4832 = vmatpush.bf16.msrb.mxu1 %v6613_v56  ;;  %v8181_v22 = vld [vmem:[%s12708_s1 + $0x244] sm:$0xf]  ;;  %v6598_v26 = vld [vmem:[%s12708_s1 + $0x24c] sm:$0xf0]  ;;  %4804 = vmatpush.bf16.msrb.mxu0 %v6505_v2 }
 0x131   : > { %v4408_v15 = vadd.f32 %v4407_v52, %v10189_v7  ;;  %4775 = vmatpush.bf16.msrb.mxu3 %v6409_v36  ;;  %v6601_v39 = vor.u32 %v8181_v22, %v6598_v26  ;;  %v6781_v4 = vor.u32 %v8226_v38, %v6778_v33  ;;  %v6300_v56 = vld [vmem:[#allocation2 + $0x1f0] sm:$0xf]  ;;  %v6862_v22 = vld [vmem:[%s12708_s1 + $0x45c] sm:$0xf0]  ;;  %v6970_v26 = vld [vmem:[%s12708_s1 + $0x534] sm:$0xf0] }
 0x132   : > { %12888 = vst [vmem:[#allocation66_spill] sm:$0xff] %v10498_v25 }
 0x133   : > { %v4436_v42 = vpop.f32.mrf.mxu3  ;;  %4855 = vmatpush.bf16.msra.mxu2 %v6781_v4 }
 0x134   : > { %v4468_v23 = vpop.f32.mrf.mxu0  ;;  %v4437_v7 = vadd.f32 %v4436_v42, %v4408_v15  ;;  %4833 = vmatpush.bf16.msrb.mxu1 %v6601_v39  ;;  %v6292_v15 = vld [vmem:[#allocation2 + $0x1e8] sm:$0xf]  ;;  %v8107_v42 = vld [vmem:[#allocation2 + $0x22c] sm:$0xf0]  ;;  %v6294_v39 = vld [vmem:[#allocation2 + $0x230] sm:$0xf0] }
 0x135   : > { %v4497_v60 = vpop.f32.mrf.mxu1  ;;  %4641 = vmatmul.bf16.gmra.mxu2 %v10496_v61 }
 0x136   : > { %v4466_v46 = vadd.f32 %v4465_v62, %v4437_v7  ;;  %v8250_v62 = vld [vmem:[%s12708_s1 + $0x46c] sm:$0xf]  ;;  %v6766_v7 = vld [vmem:[%s12708_s1 + $0x39c] sm:$0xf0] }
 0x137   : > { %4699 = vmatmul.bf16.gmra.mxu0 %v10498_v25  ;;  %v6877_v50 = vor.u32 %v8250_v62, %v6874_v30  ;;  %v8099_v30 = vld [vmem:[#allocation2 + $0x1f4] sm:$0xf] }
 0x138   : > { %4670 = vmatmul.bf16.gmra.mxu3 %v10500_v17  ;;  %4728 = vmatmul.bf16.gmra.mxu1 %v10508_v31  ;;  %v10532_v19 = vadd.f32 %v4494_v53, %v4466_v46  ;;  %v4410_v36 = vpop.f32.mrf.mxu2  ;;  %v8223_v53 = vld [vmem:[%s12708_s1 + $0x394] sm:$0xf]  ;;  %v8098_v46 = vld [vmem:[#allocation2 + $0x1ec] sm:$0xf] }
 0x139   : > { %v4411_v52 = vadd.f32 %v4410_v36, %v10215_v35  ;;  %4884 = vmatpush.bf16.msra.mxu3 %v6877_v50  ;;  %v8247_v35 = vld [vmem:[%s12708_s1 + $0x454] sm:$0xf]  ;;  %v6769_v2 = vor.u32 %v8223_v53, %v6766_v7  ;;  %v6302_v36 = vld [vmem:[#allocation2 + $0x238] sm:$0xf0]  ;;  %v10560_v7 = vor.u32 %v8098_v46, %v6294_v39  ;;  %v6958_v46 = vld [vmem:[%s12708_s1 + $0x51c] sm:$0xf0] }
 0x13a   : > { %v6865_v38 = vor.u32 %v8247_v35, %v6862_v22  ;;  %v10562_v22 = vor.u32 %v8099_v30, %v6302_v36  ;;  %v8370_v31 = vld [vmem:[%s12708_s1 + $0x82c] sm:$0xf] }
 0x13b   : > { %v4439_v3 = vpop.f32.mrf.mxu3  ;;  %4856 = vmatpush.bf16.msra.mxu2 %v6769_v2  ;;  %12893 = vst [vmem:[#allocation71_spill] sm:$0xff] %v10560_v7 }
 0x13c   : > { %v4470_v63 = vpop.f32.mrf.mxu0  ;;  %v4440_v9 = vadd.f32 %v4439_v3, %v4411_v52  ;;  %v10556_v3 = vor.u32 %v8107_v42, %v6292_v15  ;;  %12894 = vst [vmem:[#allocation72_spill] sm:$0xff] %v10562_v22  ;;  %v7066_v15 = vld [vmem:[%s12708_s1 + $0x5f4] sm:$0xf0] }
 0x13d   : > { %v4499_v40 = vpop.f32.mrf.mxu1  ;;  %4885 = vmatpush.bf16.msra.mxu3 %v6865_v38 }
 0x13e   : > { %v4469_v21 = vadd.f32 %v4468_v23, %v4440_v9  ;;  %v8274_v23 = vld [vmem:[%s12708_s1 + $0x52c] sm:$0xf]  ;;  %12891 = vst [vmem:[#allocation69_spill] sm:$0xff] %v10556_v3  ;;  %v10558_v9 = vor.u32 %v8108_v45, %v6300_v56  ;;  %v8220_v56 = vld [vmem:[%s12708_s1 + $0x37c] sm:$0xf] }
 0x13f   : > { %v6973_v33 = vor.u32 %v8274_v23, %v6970_v26  ;;  %v8244_v45 = vld [vmem:[%s12708_s1 + $0x43c] sm:$0xf]  ;;  %v6850_v23 = vld [vmem:[%s12708_s1 + $0x444] sm:$0xf0]  ;;  %v8271_v26 = vld [vmem:[%s12708_s1 + $0x514] sm:$0xf] }
 0x140   : > { %v10553_v62 = vadd.f32 %v4497_v60, %v4469_v21  ;;  %v4412_v4 = vpop.f32.mrf.mxu2  ;;  %12892 = vst [vmem:[#allocation70_spill] sm:$0xff] %v10558_v9 }
 0x141   : > { %v4413_v50 = vadd.f32 %v4412_v4, %v10274_v51  ;;  %4913 = vmatpush.bf16.msra.mxu0 %v6973_v33  ;;  %v8298_v51 = vld [vmem:[%s12708_s1 + $0x5ec] sm:$0xf]  ;;  %v6853_v33 = vor.u32 %v8244_v45, %v6850_v23  ;;  %v6961_v4 = vor.u32 %v8271_v26, %v6958_v46  ;;  %v6946_v23 = vld [vmem:[%s12708_s1 + $0x504] sm:$0xf0] }
 0x142   : > { %v7069_v42 = vor.u32 %v8298_v51, %v7066_v15  ;;  %v8295_v15 = vld [vmem:[%s12708_s1 + $0x5d4] sm:$0xf] }
 0x143   : > { %v4441_v52 = vpop.f32.mrf.mxu3  ;;  %4886 = vmatpush.bf16.msra.mxu3 %v6853_v33 }
 0x144   : > { %v4473_v53 = vpop.f32.mrf.mxu0  ;;  %v4442_v35 = vadd.f32 %v4441_v52, %v4413_v50  ;;  %4942 = vmatpush.bf16.msra.mxu1 %v7069_v42  ;;  %v6742_v42 = vld [vmem:[%s12708_s1 + $0x36c] sm:$0xf0] }
 0x145   : > { %v4502_v60 = vpop.f32.mrf.mxu1  ;;  %4646 = vmatmul.bf16.gmra.mxu2 %v10556_v3  ;;  %4914 = vmatpush.bf16.msra.mxu0 %v6961_v4 }
 0x146   : > { %v4471_v21 = vadd.f32 %v4470_v63, %v4442_v35  ;;  %v6754_v63 = vld [vmem:[%s12708_s1 + $0x384] sm:$0xf0] }
 0x147   : > { %4704 = vmatmul.bf16.gmra.mxu0 %v10558_v9  ;;  %v6757_v2 = vor.u32 %v8220_v56, %v6754_v63  ;;  %v6838_v56 = vld [vmem:[%s12708_s1 + $0x42c] sm:$0xf0] }
 0x148   : > { %4675 = vmatmul.bf16.gmra.mxu3 %v10560_v7  ;;  %4733 = vmatmul.bf16.gmra.mxu1 %v10562_v22  ;;  %v10592_v39 = vadd.f32 %v4499_v40, %v4471_v21  ;;  %v4415_v38 = vpop.f32.mrf.mxu2  ;;  %v7054_v40 = vld [vmem:[%s12708_s1 + $0x5dc] sm:$0xf0] }
 0x149   : > { %v4416_v30 = vadd.f32 %v4415_v38, %v10313_v14  ;;  %4857 = vmatpush.bf16.msra.mxu2 %v6757_v2  ;;  %v8217_v14 = vld [vmem:[%s12708_s1 + $0x364] sm:$0xf]  ;;  %v7057_v21 = vor.u32 %v8295_v15, %v7054_v40  ;;  %v8268_v2 = vld [vmem:[%s12708_s1 + $0x4fc] sm:$0xf]  ;;  %v8214_v40 = vld [vmem:[%s12708_s1 + $0x34c] sm:$0xf] }
 0x14a   : > { %v6745_v63 = vor.u32 %v8217_v14, %v6742_v42  ;;  %v6949_v38 = vor.u32 %v8268_v2, %v6946_v23  ;;  %v8238_v14 = vld [vmem:[%s12708_s1 + $0x40c] sm:$0xf]  ;;  %v6826_v42 = vld [vmem:[%s12708_s1 + $0x414] sm:$0xf0] }
 0x14b   : > { %v4444_v36 = vpop.f32.mrf.mxu3  ;;  %4943 = vmatpush.bf16.msra.mxu1 %v7057_v21  ;;  %v6829_v2 = vor.u32 %v8238_v14, %v6826_v42  ;;  %v8262_v14 = vld [vmem:[%s12708_s1 + $0x4cc] sm:$0xf] }
 0x14c   : > { %v4475_v50 = vpop.f32.mrf.mxu0  ;;  %v4445_v52 = vadd.f32 %v4444_v36, %v4416_v30  ;;  %4915 = vmatpush.bf16.msra.mxu0 %v6949_v38 }
 0x14d   : > { %v4504_v35 = vpop.f32.mrf.mxu1  ;;  %4858 = vmatpush.bf16.msra.mxu2 %v6745_v63 }
 0x14e   : > { %v4474_v51 = vadd.f32 %v4473_v53, %v4445_v52  ;;  %v8241_v53 = vld [vmem:[%s12708_s1 + $0x424] sm:$0xf] }
 0x14f   : > { %v6841_v45 = vor.u32 %v8241_v53, %v6838_v56  ;;  %v8265_v53 = vld [vmem:[%s12708_s1 + $0x4e4] sm:$0xf]  ;;  %v6934_v56 = vld [vmem:[%s12708_s1 + $0x4ec] sm:$0xf0] }
 0x150   : > { %v10619_v26 = vadd.f32 %v4502_v60, %v4474_v51  ;;  %v4417_v46 = vpop.f32.mrf.mxu2  ;;  %v8292_v60 = vld [vmem:[%s12708_s1 + $0x5bc] sm:$0xf]  ;;  %v6937_v23 = vor.u32 %v8265_v53, %v6934_v56 }
 0x151   : > { %v4418_v33 = vadd.f32 %v4417_v46, %v10366_v10  ;;  %4887 = vmatpush.bf16.msra.mxu3 %v6841_v45  ;;  %v7042_v10 = vld [vmem:[%s12708_s1 + $0x5c4] sm:$0xf0] }
 0x152   : > { %v7045_v51 = vor.u32 %v8292_v60, %v7042_v10  ;;  %4916 = vmatpush.bf16.msra.mxu0 %v6937_v23  ;;  %v6718_v60 = vld [vmem:[%s12708_s1 + $0x33c] sm:$0xf0]  ;;  %v8235_v10 = vld [vmem:[%s12708_s1 + $0x3f4] sm:$0xf] }
 0x153   : > { %v4446_v4 = vpop.f32.mrf.mxu3 }
 0x154   : > { %v10622_v30 = vpop.f32.mrf.mxu0  ;;  %v4447_v36 = vadd.f32 %v4446_v4, %v4418_v33  ;;  %4944 = vmatpush.bf16.msra.mxu1 %v7045_v51  ;;  %v8289_v4 = vld [vmem:[%s12708_s1 + $0x5a4] sm:$0xf]  ;;  %v6814_v51 = vld [vmem:[%s12708_s1 + $0x3fc] sm:$0xf0] }
 0x155   : > { %v10624_v52 = vpop.f32.mrf.mxu1  ;;  %4747 = vmatmul.bf16.vlgmr.msrb.gmra.mxu2 %v8903_v13  ;;  %4888 = vmatpush.bf16.msra.mxu3 %v6829_v2 }
 0x156   : > { %v4476_v15 = vadd.f32 %v4475_v50, %v4447_v36  ;;  %v6730_v50 = vld [vmem:[%s12708_s1 + $0x354] sm:$0xf0]  ;;  %v8211_v36 = vld [vmem:[%s12708_s1 + $0x334] sm:$0xf] }
 0x157   : > { %4805 = vmatmul.bf16.vlgmr.msrb.gmra.mxu0 %v9309_v48  ;;  %v6733_v21 = vor.u32 %v8214_v40, %v6730_v50  ;;  %v6721_v40 = vor.u32 %v8211_v36, %v6718_v60  ;;  %v6817_v50 = vor.u32 %v8235_v10, %v6814_v51  ;;  %v6706_v60 = vld [vmem:[%s12708_s1 + $0x324] sm:$0xf0]  ;;  %v8232_v10 = vld [vmem:[%s12708_s1 + $0x3dc] sm:$0xf] }
 0x158   : > { %4776 = vmatmul.bf16.vlgmr.msrb.gmra.mxu3 %v8920_v20  ;;  %4834 = vmatmul.bf16.vlgmr.msrb.gmra.mxu1 %v9325_v54  ;;  %v10654_v63 = vadd.f32 %v4504_v35, %v4476_v15  ;;  %v10656_v45 = vpop.f32.mrf.mxu2  ;;  %v7030_v35 = vld [vmem:[%s12708_s1 + $0x5ac] sm:$0xf0] }
 0x159   : > { %4859 = vmatpush.bf16.msra.mxu2 %v6733_v21  ;;  %v7033_v15 = vor.u32 %v8289_v4, %v7030_v35  ;;  %v6922_v21 = vld [vmem:[%s12708_s1 + $0x4d4] sm:$0xf0]  ;;  %4889 = vmatpush.bf16.msra.mxu3 %v6817_v50  ;;  %v8286_v4 = vld [vmem:[%s12708_s1 + $0x58c] sm:$0xf]  ;;  %v8259_v50 = vld [vmem:[%s12708_s1 + $0x4b4] sm:$0xf] }
 0x15a   : > { %v6925_v53 = vor.u32 %v8262_v14, %v6922_v21  ;;  %v7018_v35 = vld [vmem:[%s12708_s1 + $0x594] sm:$0xf0]  ;;  %v6910_v14 = vld [vmem:[%s12708_s1 + $0x4bc] sm:$0xf0] }
 0x15b   : > { %v10658_v46 = vpop.f32.mrf.mxu3  ;;  %4945 = vmatpush.bf16.msra.mxu1 %v7033_v15  ;;  %v7021_v36 = vor.u32 %v8286_v4, %v7018_v35  ;;  %v8208_v15 = vld [vmem:[%s12708_s1 + $0x31c] sm:$0xf]  ;;  %v6913_v4 = vor.u32 %v8259_v50, %v6910_v14  ;;  %v6790_v14 = vld [vmem:[%s12708_s1 + $0x3cc] sm:$0xf0] }
 0x15c   : > { %v10660_v38 = vpop.f32.mrf.mxu0  ;;  %4917 = vmatpush.bf16.msra.mxu0 %v6925_v53  ;;  %v6709_v51 = vor.u32 %v8208_v15, %v6706_v60 }
 0x15d   : > { %v10662_v33 = vpop.f32.mrf.mxu1  ;;  %4860 = vmatpush.bf16.msra.mxu2 %v6721_v40  ;;  %v6802_v40 = vld [vmem:[%s12708_s1 + $0x3e4] sm:$0xf0] }
 0x15e   : > { %v6805_v53 = vor.u32 %v8232_v10, %v6802_v40  ;;  %v8205_v10 = vld [vmem:[%s12708_s1 + $0x304] sm:$0xf] }
 0x15f   : > { %4946 = vmatpush.bf16.msra.mxu1 %v7021_v36  ;;  %v8229_v40 = vld [vmem:[%s12708_s1 + $0x3c4] sm:$0xf] }
 0x160   : > { %v10688_v42 = vpop.f32.mrf.mxu2  ;;  %4890 = vmatpush.bf16.msra.mxu3 %v6805_v53  ;;  %4918 = vmatpush.bf16.msra.mxu0 %v6913_v4  ;;  %v6793_v53 = vor.u32 %v8229_v40, %v6790_v14  ;;  %v6886_v40 = vld [vmem:[%s12708_s1 + $0x48c] sm:$0xf0] }
 0x161   : > { %4861 = vmatpush.bf16.msra.mxu2 %v6709_v51  ;;  %v6694_v51 = vld [vmem:[%s12708_s1 + $0x30c] sm:$0xf0] }
 0x162   : > { %v6697_v50 = vor.u32 %v8205_v10, %v6694_v51  ;;  %v8280_v10 = vld [vmem:[%s12708_s1 + $0x55c] sm:$0xf]  ;;  %v6994_v51 = vld [vmem:[%s12708_s1 + $0x564] sm:$0xf0] }
 0x163   : > { %v10690_v56 = vpop.f32.mrf.mxu3  ;;  %v6997_v22 = vor.u32 %v8280_v10, %v6994_v51  ;;  %v8346_v10 = vld [vmem:[%s12708_s1 + $0x76c] sm:$0xf] }
 0x164   : > { %v10692_v2 = vpop.f32.mrf.mxu0  ;;  %4891 = vmatpush.bf16.msra.mxu3 %v6793_v53 }
 0x165   : > { %v10694_v23 = vpop.f32.mrf.mxu1  ;;  %4752 = vmatmul.bf16.gmra.mxu2 %v9090_v47 }
 0x166   : > { %4862 = vmatpush.bf16.msra.mxu2 %v6697_v50 }
 0x167   : > { %4810 = vmatmul.bf16.gmra.mxu0 %v9409_v57  ;;  %v7006_v57 = vld [vmem:[%s12708_s1 + $0x57c] sm:$0xf0] }
 0x168   : > { %4781 = vmatmul.bf16.gmra.mxu3 %v9118_v0  ;;  %4839 = vmatmul.bf16.gmra.mxu1 %v9432_v37  ;;  %v10724_v21 = vpop.f32.mrf.mxu2  ;;  %v8283_v37 = vld [vmem:[%s12708_s1 + $0x574] sm:$0xf] }
 0x169   : > { %v7009_v36 = vor.u32 %v8283_v37, %v7006_v57  ;;  %v8256_v57 = vld [vmem:[%s12708_s1 + $0x49c] sm:$0xf]  ;;  %v6898_v37 = vld [vmem:[%s12708_s1 + $0x4a4] sm:$0xf0] }
 0x16a   : > { %v6901_v4 = vor.u32 %v8256_v57, %v6898_v37  ;;  %v8277_v57 = vld [vmem:[%s12708_s1 + $0x544] sm:$0xf]  ;;  %v6982_v37 = vld [vmem:[%s12708_s1 + $0x54c] sm:$0xf0] }
 0x16b   : > { %v10726_v35 = vpop.f32.mrf.mxu3  ;;  %4947 = vmatpush.bf16.msra.mxu1 %v7009_v36  ;;  %v8253_v36 = vld [vmem:[%s12708_s1 + $0x484] sm:$0xf]  ;;  %v6985_v53 = vor.u32 %v8277_v57, %v6982_v37 }
 0x16c   : > { %v10728_v15 = vpop.f32.mrf.mxu0  ;;  %4919 = vmatpush.bf16.msra.mxu0 %v6901_v4  ;;  %v6889_v50 = vor.u32 %v8253_v36, %v6886_v40  ;;  %v7162_v4 = vld [vmem:[%s12708_s1 + $0x6b4] sm:$0xf0] }
 0x16d   : > { %v10730_v60 = vpop.f32.mrf.mxu1  ;;  %v7258_v36 = vld [vmem:[%s12708_s1 + $0x774] sm:$0xf0] }
 0x16f   : > { %4948 = vmatpush.bf16.msra.mxu1 %v6997_v22  ;;  %v8322_v22 = vld [vmem:[%s12708_s1 + $0x6ac] sm:$0xf] }
 0x170   : > { %v10756_v54 = vpop.f32.mrf.mxu2  ;;  %4920 = vmatpush.bf16.msra.mxu0 %v6889_v50  ;;  %v7165_v51 = vor.u32 %v8322_v22, %v7162_v4  ;;  %v7261_v50 = vor.u32 %v8346_v10, %v7258_v36  ;;  %v8319_v4 = vld [vmem:[%s12708_s1 + $0x694] sm:$0xf] }
 0x171   : > { %v8343_v10 = vld [vmem:[%s12708_s1 + $0x754] sm:$0xf] }
 0x172   : > { %4971 = vmatpush.bf16.msrb.mxu2 %v7165_v51  ;;  %5000 = vmatpush.bf16.msrb.mxu3 %v7261_v50  ;;  %v7246_v50 = vld [vmem:[%s12708_s1 + $0x75c] sm:$0xf0] }
 0x173   : > { %v10764_v48 = vpop.f32.mrf.mxu3  ;;  %4949 = vmatpush.bf16.msra.mxu1 %v6985_v53  ;;  %v7150_v53 = vld [vmem:[%s12708_s1 + $0x69c] sm:$0xf0]  ;;  %v7249_v25 = vor.u32 %v8343_v10, %v7246_v50 }
 0x174   : > { %v10766_v9 = vpop.f32.mrf.mxu0  ;;  %v7153_v36 = vor.u32 %v8319_v4, %v7150_v53 }
 0x175   : > { %v10774_v14 = vpop.f32.mrf.mxu1  ;;  %4757 = vmatmul.bf16.gmra.mxu2 %v8901_v12  ;;  %v7354_v12 = vld [vmem:[%s12708_s1 + $0x834] sm:$0xf0] }
 0x176   : > { %v7357_v0 = vor.u32 %v8370_v31, %v7354_v12  ;;  %4972 = vmatpush.bf16.msrb.mxu2 %v7153_v36  ;;  %5001 = vmatpush.bf16.msrb.mxu3 %v7249_v25  ;;  %v8394_v12 = vld [vmem:[%s12708_s1 + $0x8ec] sm:$0xf]  ;;  %v7450_v31 = vld [vmem:[%s12708_s1 + $0x8f4] sm:$0xf0]  ;;  %v8316_v25 = vld [vmem:[%s12708_s1 + $0x67c] sm:$0xf] }
 0x177   : > { %4815 = vmatmul.bf16.gmra.mxu0 %v9514_v6  ;;  %v7453_v10 = vor.u32 %v8394_v12, %v7450_v31  ;;  %v7138_v36 = vld [vmem:[%s12708_s1 + $0x684] sm:$0xf0]  ;;  %v7342_v12 = vld [vmem:[%s12708_s1 + $0x81c] sm:$0xf0] }
 0x178   : > { %4786 = vmatmul.bf16.gmra.mxu3 %v8912_v16  ;;  %4844 = vmatmul.bf16.gmra.mxu1 %v9527_v11  ;;  %v10798_v40 = vpop.f32.mrf.mxu2  ;;  %v7141_v50 = vor.u32 %v8316_v25, %v7138_v36 }
 0x179   : > { %5029 = vmatpush.bf16.msrb.mxu0 %v7357_v0  ;;  %5058 = vmatpush.bf16.msrb.mxu1 %v7453_v10  ;;  %v8391_v10 = vld [vmem:[%s12708_s1 + $0x8d4] sm:$0xf] }
 0x17a   : > { %4973 = vmatpush.bf16.msrb.mxu2 %v7141_v50  ;;  %v8364_v50 = vld [vmem:[%s12708_s1 + $0x7fc] sm:$0xf] }
 0x17b   : > { %v10800_v57 = vpop.f32.mrf.mxu3 }
 0x17c   : > { %v10802_v37 = vpop.f32.mrf.mxu0 }
 0x17d   : > { %v10804_v6 = vpop.f32.mrf.mxu1 }
 0x180   : > { %v10806_v16 = vpop.f32.mrf.mxu2 }
 0x183   : > { %v10808_v11 = vpop.f32.mrf.mxu3 }
 0x184   : > { %v10810_v22 = vpop.f32.mrf.mxu0 }
 0x185   : > { %v10821_v51 = vpop.f32.mrf.mxu1  ;;  %4762 = vmatmul.bf16.gmra.mxu2 %v9067_v28  ;;  %v4517_v28 = vadd.f32 %v10656_v45, %v10414_v27  ;;  %v8340_v27 = vld [vmem:[%s12708_s1 + $0x73c] sm:$0xf]  ;;  %v7234_v45 = vld [vmem:[%s12708_s1 + $0x744] sm:$0xf0] }
 0x187   : > { %4820 = vmatmul.bf16.gmra.mxu0 %v9593_v32  ;;  %v8367_v32 = vld [vmem:[%s12708_s1 + $0x814] sm:$0xf] }
 0x188   : > { %4791 = vmatmul.bf16.gmra.mxu3 %v9069_v29  ;;  %4849 = vmatmul.bf16.gmra.mxu1 %v9597_v41  ;;  %v10836_v4 = vpop.f32.mrf.mxu2  ;;  %v7237_v41 = vor.u32 %v8340_v27, %v7234_v45  ;;  %v7345_v31 = vor.u32 %v8367_v32, %v7342_v12  ;;  %v4546_v29 = vadd.f32 %v10658_v46, %v4517_v28  ;;  %v7438_v28 = vld [vmem:[%s12708_s1 + $0x8dc] sm:$0xf0]  ;;  %v8313_v32 = vld [vmem:[%s12708_s1 + $0x664] sm:$0xf]  ;;  %v7330_v12 = vld [vmem:[%s12708_s1 + $0x804] sm:$0xf0] }
 0x189   : > { %v4519_v27 = vadd.f32 %v10688_v42, %v10460_v34  ;;  %v7441_v46 = vor.u32 %v8391_v10, %v7438_v28  ;;  %v8337_v34 = vld [vmem:[%s12708_s1 + $0x724] sm:$0xf] }
 0x18a   : > { %5002 = vmatpush.bf16.msrb.mxu3 %v7237_v41  ;;  %5030 = vmatpush.bf16.msrb.mxu0 %v7345_v31  ;;  %v4575_v36 = vadd.f32 %v10622_v30, %v4546_v29  ;;  %v7126_v29 = vld [vmem:[%s12708_s1 + $0x66c] sm:$0xf0]  ;;  %v7333_v31 = vor.u32 %v8364_v50, %v7330_v12 }
 0x18b   : > { %v10838_v53 = vpop.f32.mrf.mxu3  ;;  %v7222_v30 = vld [vmem:[%s12708_s1 + $0x72c] sm:$0xf0]  ;;  %v7129_v42 = vor.u32 %v8313_v32, %v7126_v29  ;;  %5059 = vmatpush.bf16.msrb.mxu1 %v7441_v46  ;;  %v4548_v10 = vadd.f32 %v10690_v56, %v4519_v27  ;;  %v4522_v56 = vadd.f32 %v10724_v21, %v10487_v58  ;;  %v8334_v58 = vld [vmem:[%s12708_s1 + $0x70c] sm:$0xf]  ;;  %v7210_v21 = vld [vmem:[%s12708_s1 + $0x714] sm:$0xf0] }
 0x18c   : > { %v10840_v24 = vpop.f32.mrf.mxu0  ;;  %v7225_v45 = vor.u32 %v8337_v34, %v7222_v30  ;;  %v4604_v28 = vadd.f32 %v10624_v52, %v4575_v36  ;;  %v8388_v52 = vld [vmem:[%s12708_s1 + $0x8bc] sm:$0xf]  ;;  %v7426_v36 = vld [vmem:[%s12708_s1 + $0x8c4] sm:$0xf0] }
 0x18d   : > { %v10853_v0 = vpop.f32.mrf.mxu1  ;;  %4974 = vmatpush.bf16.msrb.mxu2 %v7129_v42  ;;  %v4577_v46 = vadd.f32 %v10660_v38, %v4548_v10  ;;  %v8310_v42 = vld [vmem:[%s12708_s1 + $0x64c] sm:$0xf]  ;;  %v7429_v50 = vor.u32 %v8388_v52, %v7426_v36  ;;  %v7114_v38 = vld [vmem:[%s12708_s1 + $0x654] sm:$0xf0]  ;;  %v7213_v10 = vor.u32 %v8334_v58, %v7210_v21 }
 0x18e   : > { %5003 = vmatpush.bf16.msrb.mxu3 %v7225_v45  ;;  %5031 = vmatpush.bf16.msrb.mxu0 %v7333_v31  ;;  %v7117_v31 = vor.u32 %v8310_v42, %v7114_v38 }
 0x18f   : > { %5060 = vmatpush.bf16.msrb.mxu1 %v7429_v50  ;;  %v4606_v36 = vadd.f32 %v10662_v33, %v4577_v46  ;;  %v8385_v33 = vld [vmem:[%s12708_s1 + $0x8a4] sm:$0xf]  ;;  %v7198_v50 = vld [vmem:[%s12708_s1 + $0x6fc] sm:$0xf0] }
 0x190   : > { %v10871_v47 = vpop.f32.mrf.mxu2 }
 0x191   : > { %4975 = vmatpush.bf16.msrb.mxu2 %v7117_v31  ;;  %v12895_v31 = vld [vmem:[#allocation15_spill] sm:$0xff] }
 0x192   : > { %5004 = vmatpush.bf16.msrb.mxu3 %v7213_v10  ;;  %v12896_v10 = vld [vmem:[#allocation29_spill] sm:$0xff] }
 0x193   : > { %v10873_v18 = vpop.f32.mrf.mxu3 }
 0x194   : > { %v4690_v25 = vpop.f32.mrf.mxu0 }
 0x195   : > { %v4719_v41 = vpop.f32.mrf.mxu1  ;;  %4863 = vmatmul.bf16.vlgmr.msra.gmra.mxu2 %v9311_v49 }
 0x197   : > { %4921 = vmatmul.bf16.vlgmr.msra.gmra.mxu0 %v9662_v59 }
 0x198   : > { %4892 = vmatmul.bf16.vlgmr.msra.gmra.mxu3 %v9337_v1  ;;  %4950 = vmatmul.bf16.vlgmr.msra.gmra.mxu1 %v9666_v8  ;;  %v4632_v32 = vpop.f32.mrf.mxu2  ;;  %v4524_v8 = vadd.f32 %v10756_v54, %v10532_v19  ;;  %v7102_v54 = vld [vmem:[%s12708_s1 + $0x63c] sm:$0xf0]  ;;  %v8331_v19 = vld [vmem:[%s12708_s1 + $0x6f4] sm:$0xf] }
 0x199   : > { %v4633_v29 = vadd.f32 %v4632_v32, %v4604_v28  ;;  %v8361_v28 = vld [vmem:[%s12708_s1 + $0x7e4] sm:$0xf]  ;;  %v7318_v32 = vld [vmem:[%s12708_s1 + $0x7ec] sm:$0xf0] }
 0x19b   : > { %v4661_v34 = vpop.f32.mrf.mxu3 }
 0x19c   : > { %v4692_v30 = vpop.f32.mrf.mxu0  ;;  %v4662_v27 = vadd.f32 %v4661_v34, %v4633_v29  ;;  %v7321_v29 = vor.u32 %v8361_v28, %v7318_v32  ;;  %v4551_v34 = vadd.f32 %v10726_v35, %v4522_v56  ;;  %v7201_v32 = vor.u32 %v8331_v19, %v7198_v50  ;;  %v8304_v50 = vld [vmem:[%s12708_s1 + $0x61c] sm:$0xf] }
 0x19d   : > { %v4721_v45 = vpop.f32.mrf.mxu1 }
 0x19e   : > { %v4691_v12 = vadd.f32 %v4690_v25, %v4662_v27  ;;  %5032 = vmatpush.bf16.msrb.mxu0 %v7321_v29  ;;  %v4580_v21 = vadd.f32 %v10692_v2, %v4551_v34  ;;  %v8307_v2 = vld [vmem:[%s12708_s1 + $0x634] sm:$0xf]  ;;  %v8358_v29 = vld [vmem:[%s12708_s1 + $0x7cc] sm:$0xf]  ;;  %v7306_v34 = vld [vmem:[%s12708_s1 + $0x7d4] sm:$0xf0]  ;;  %5005 = vmatpush.bf16.msrb.mxu3 %v7201_v32 }
 0x19f   : > { %v7105_v28 = vor.u32 %v8307_v2, %v7102_v54  ;;  %v8355_v2 = vld [vmem:[%s12708_s1 + $0x7b4] sm:$0xf]  ;;  %v8328_v32 = vld [vmem:[%s12708_s1 + $0x6dc] sm:$0xf] }
 0x1a0   : > { %v4720_v52 = vadd.f32 %v4719_v41, %v4691_v12  ;;  %v4634_v25 = vpop.f32.mrf.mxu2  ;;  %v7414_v41 = vld [vmem:[%s12708_s1 + $0x8ac] sm:$0xf0] }
 0x1a1   : > { %v4635_v42 = vadd.f32 %v4634_v25, %v4606_v36  ;;  %v7417_v56 = vor.u32 %v8385_v33, %v7414_v41  ;;  %v7309_v36 = vor.u32 %v8358_v29, %v7306_v34  ;;  %4976 = vmatpush.bf16.msrb.mxu2 %v7105_v28  ;;  %v7402_v33 = vld [vmem:[%s12708_s1 + $0x894] sm:$0xf0]  ;;  %v8379_v29 = vld [vmem:[%s12708_s1 + $0x874] sm:$0xf] }
 0x1a2   : > { %v5783_v27 = vmax.f32 %v4720_v52, 0.0  ;;  %v12897_v52 = vld [vmem:[#allocation17_spill] sm:$0xff] }
 0x1a3   : > { %v4663_v38 = vpop.f32.mrf.mxu3  ;;  %5061 = vmatpush.bf16.msrb.mxu1 %v7417_v56  ;;  %5033 = vmatpush.bf16.msrb.mxu0 %v7309_v36  ;;  %v7294_v56 = vld [vmem:[%s12708_s1 + $0x7bc] sm:$0xf0] }
 0x1a4   : > { %v4695_v58 = vpop.f32.mrf.mxu0  ;;  %5807 = vst [vmem:[%s10946_s7] sm:$0xff] %v5783_v27  ;;  %v4664_v35 = vadd.f32 %v4663_v38, %v4635_v42  ;;  %v4609_v27 = vadd.f32 %v10694_v23, %v4580_v21  ;;  %v12898_v42 = vld [vmem:[#allocation31_spill] sm:$0xff]  ;;  %v4527_v23 = vadd.f32 %v10798_v40, %v10553_v62  ;;  %v7297_v40 = vor.u32 %v8355_v2, %v7294_v56  ;;  %v7174_v56 = vld [vmem:[%s12708_s1 + $0x6cc] sm:$0xf0] }
 0x1a5   : > { %v4724_v46 = vpop.f32.mrf.mxu1  ;;  %4868 = vmatmul.bf16.gmra.mxu2 %v12895_v31  ;;  %v7090_v62 = vld [vmem:[%s12708_s1 + $0x624] sm:$0xf0] }
 0x1a6   : > { %v4693_v12 = vadd.f32 %v4692_v30, %v4664_v35  ;;  %v4553_v30 = vadd.f32 %v10764_v48, %v4524_v8  ;;  %v8382_v35 = vld [vmem:[%s12708_s1 + $0x88c] sm:$0xf]  ;;  %v7093_v28 = vor.u32 %v8304_v50, %v7090_v62  ;;  %v4529_v50 = vadd.f32 %v10806_v16, %v10592_v39  ;;  %v8373_v39 = vld [vmem:[%s12708_s1 + $0x844] sm:$0xf] }
 0x1a7   : > { %4926 = vmatmul.bf16.gmra.mxu0 %v12896_v10 }
 0x1a8   : > { %4897 = vmatmul.bf16.gmra.mxu3 %v12897_v52  ;;  %v4722_v25 = vadd.f32 %v4721_v45, %v4693_v12  ;;  %4955 = vmatmul.bf16.gmra.mxu1 %v12898_v42  ;;  %v4637_v38 = vpop.f32.mrf.mxu2  ;;  %v7405_v45 = vor.u32 %v8382_v35, %v7402_v33  ;;  %v4582_v54 = vadd.f32 %v10728_v15, %v4553_v30  ;;  %v7186_v15 = vld [vmem:[%s12708_s1 + $0x6e4] sm:$0xf0]  ;;  %v7390_v30 = vld [vmem:[%s12708_s1 + $0x87c] sm:$0xf0] }
 0x1a9   : > { %v4638_v48 = vadd.f32 %v4637_v38, %v4609_v27  ;;  %v7189_v36 = vor.u32 %v8328_v32, %v7186_v15  ;;  %5034 = vmatpush.bf16.msrb.mxu0 %v7297_v40  ;;  %4977 = vmatpush.bf16.msrb.mxu2 %v7093_v28  ;;  %v7393_v27 = vor.u32 %v8379_v29, %v7390_v30  ;;  %v8352_v38 = vld [vmem:[%s12708_s1 + $0x79c] sm:$0xf]  ;;  %v7282_v35 = vld [vmem:[%s12708_s1 + $0x7a4] sm:$0xf0]  ;;  %v8349_v32 = vld [vmem:[%s12708_s1 + $0x784] sm:$0xf] }
 0x1aa   : > { %v5786_v41 = vmax.f32 %v4722_v25, 0.0  ;;  %5062 = vmatpush.bf16.msrb.mxu1 %v7405_v45  ;;  %v4556_v25 = vadd.f32 %v10800_v57, %v4527_v23  ;;  %v8301_v57 = vld [vmem:[%s12708_s1 + $0x604] sm:$0xf]  ;;  %v7378_v28 = vld [vmem:[%s12708_s1 + $0x864] sm:$0xf0] }
 0x1ab   : > { %v4666_v8 = vpop.f32.mrf.mxu3  ;;  %5006 = vmatpush.bf16.msrb.mxu3 %v7189_v36  ;;  %v8325_v45 = vld [vmem:[%s12708_s1 + $0x6c4] sm:$0xf]  ;;  %v7270_v15 = vld [vmem:[%s12708_s1 + $0x78c] sm:$0xf0] }
 0x1ac   : > { %v4697_v21 = vpop.f32.mrf.mxu0  ;;  %5810 = vst [vmem:[%s10946_s7 + $0x18] sm:$0xff] %v5786_v41  ;;  %v4667_v19 = vadd.f32 %v4666_v8, %v4638_v48  ;;  %v7285_v41 = vor.u32 %v8352_v38, %v7282_v35  ;;  %v7078_v8 = vld [vmem:[%s12708_s1 + $0x60c] sm:$0xf0]  ;;  %v7177_v40 = vor.u32 %v8325_v45, %v7174_v56  ;;  %v4558_v38 = vadd.f32 %v10808_v11, %v4529_v50  ;;  %v12901_v35 = vld [vmem:[#allocation21_spill] sm:$0xff]  ;;  %v7534_v50 = vld [vmem:[%s12708_s1 + $0x99c] sm:$0xf0] }
 0x1ad   : > { %v4726_v12 = vpop.f32.mrf.mxu1  ;;  %v7081_v2 = vor.u32 %v8301_v57, %v7078_v8  ;;  %v7366_v36 = vld [vmem:[%s12708_s1 + $0x84c] sm:$0xf0]  ;;  %v4532_v11 = vadd.f32 %v10836_v4, %v10619_v26  ;;  %v7642_v26 = vld [vmem:[%s12708_s1 + $0xa74] sm:$0xf0] }
 0x1ae   : > { %v4696_v34 = vadd.f32 %v4695_v58, %v4667_v19  ;;  %v4611_v58 = vadd.f32 %v10730_v60, %v4582_v54  ;;  %5063 = vmatpush.bf16.msrb.mxu1 %v7393_v27  ;;  %5035 = vmatpush.bf16.msrb.mxu0 %v7285_v41  ;;  %v8376_v54 = vld [vmem:[%s12708_s1 + $0x85c] sm:$0xf]  ;;  %v4585_v19 = vadd.f32 %v10766_v9, %v4556_v25  ;;  %v12899_v25 = vld [vmem:[#allocation19_spill] sm:$0xff] }
 0x1af   : > { %4978 = vmatpush.bf16.msrb.mxu2 %v7081_v2  ;;  %v7381_v9 = vor.u32 %v8376_v54, %v7378_v28  ;;  %5007 = vmatpush.bf16.msrb.mxu3 %v7177_v40  ;;  %v12900_v27 = vld [vmem:[#allocation33_spill] sm:$0xff]  ;;  %v8439_v40 = vld [vmem:[%s12708_s1 + $0xa54] sm:$0xf] }
 0x1b0   : > { %v4725_v33 = vadd.f32 %v4724_v46, %v4696_v34  ;;  %v4639_v48 = vpop.f32.mrf.mxu2  ;;  %v7273_v34 = vor.u32 %v8349_v32, %v7270_v15  ;;  %v4614_v41 = vadd.f32 %v10774_v14, %v4585_v19  ;;  %v8418_v14 = vld [vmem:[%s12708_s1 + $0x9ac] sm:$0xf]  ;;  %v8415_v19 = vld [vmem:[%s12708_s1 + $0x994] sm:$0xf] }
 0x1b1   : > { %v4640_v23 = vadd.f32 %v4639_v48, %v4611_v58  ;;  %v12902_v48 = vld [vmem:[#allocation35_spill] sm:$0xff]  ;;  %v7537_v32 = vor.u32 %v8415_v19, %v7534_v50  ;;  %v7726_v19 = vld [vmem:[%s12708_s1 + $0xb1c] sm:$0xf0] }
 0x1b2   : > { %v5789_v46 = vmax.f32 %v4725_v33, 0.0  ;;  %5064 = vmatpush.bf16.msrb.mxu1 %v7381_v9  ;;  %v7369_v33 = vor.u32 %v8373_v39, %v7366_v36  ;;  %5036 = vmatpush.bf16.msrb.mxu0 %v7273_v34  ;;  %v8466_v15 = vld [vmem:[%s12708_s1 + $0xb2c] sm:$0xf]  ;;  %v4561_v9 = vadd.f32 %v10838_v53, %v4532_v11  ;;  %v12905_v11 = vld [vmem:[#allocation25_spill] sm:$0xff] }
 0x1b3   : > { %v4668_v60 = vpop.f32.mrf.mxu3 }
 0x1b4   : > { %v4700_v62 = vpop.f32.mrf.mxu0  ;;  %5813 = vst [vmem:[%s10946_s7 + $0x30] sm:$0xff] %v5789_v46  ;;  %v4669_v29 = vadd.f32 %v4668_v60, %v4640_v23  ;;  %v4587_v46 = vadd.f32 %v10802_v37, %v4558_v38  ;;  %v8442_v37 = vld [vmem:[%s12708_s1 + $0xa6c] sm:$0xf] }
 0x1b5   : > { %v4729_v16 = vpop.f32.mrf.mxu1  ;;  %4873 = vmatmul.bf16.gmra.mxu2 %v12899_v25  ;;  %v7645_v54 = vor.u32 %v8442_v37, %v7642_v26  ;;  %v12906_v37 = vld [vmem:[#allocation39_spill] sm:$0xff] }
 0x1b6   : > { %v4698_v30 = vadd.f32 %v4697_v21, %v4669_v29  ;;  %5065 = vmatpush.bf16.msrb.mxu1 %v7369_v33  ;;  %v4616_v28 = vadd.f32 %v10804_v6, %v4587_v46  ;;  %v7738_v29 = vld [vmem:[%s12708_s1 + $0xb34] sm:$0xf0]  ;;  %v8490_v46 = vld [vmem:[%s12708_s1 + $0xbec] sm:$0xf] }
 0x1b7   : > { %4931 = vmatmul.bf16.gmra.mxu0 %v12900_v27  ;;  %5116 = vmatpush.bf16.msra.mxu3 %v7645_v54  ;;  %v7741_v39 = vor.u32 %v8466_v15, %v7738_v29  ;;  %v8463_v54 = vld [vmem:[%s12708_s1 + $0xb14] sm:$0xf] }
 0x1b8   : > { %4902 = vmatmul.bf16.gmra.mxu3 %v12901_v35  ;;  %v4727_v58 = vadd.f32 %v4726_v12, %v4698_v30  ;;  %4960 = vmatmul.bf16.gmra.mxu1 %v12902_v48  ;;  %v4642_v57 = vpop.f32.mrf.mxu2  ;;  %v7546_v12 = vld [vmem:[%s12708_s1 + $0x9b4] sm:$0xf0] }
 0x1b9   : > { %v4643_v21 = vadd.f32 %v4642_v57, %v4614_v41  ;;  %v7549_v56 = vor.u32 %v8418_v14, %v7546_v12  ;;  %5145 = vmatpush.bf16.msra.mxu0 %v7741_v39  ;;  %v4590_v41 = vadd.f32 %v10810_v22, %v4561_v9  ;;  %v4534_v57 = vadd.f32 %v10871_v47, %v10654_v63  ;;  %v7834_v22 = vld [vmem:[%s12708_s1 + $0xbf4] sm:$0xf0]  ;;  %v8412_v63 = vld [vmem:[%s12708_s1 + $0x97c] sm:$0xf]  ;;  %v8409_v39 = vld [vmem:[%s12708_s1 + $0x964] sm:$0xf] }
 0x1ba   : > { %v5792_v8 = vmax.f32 %v4727_v58, 0.0  ;;  %v7837_v47 = vor.u32 %v8490_v46, %v7834_v22 }
 0x1bb   : > { %v4671_v45 = vpop.f32.mrf.mxu3  ;;  %5087 = vmatpush.bf16.msra.mxu2 %v7549_v56  ;;  %v4563_v14 = vadd.f32 %v10873_v18, %v4534_v57  ;;  %v4619_v56 = vadd.f32 %v10821_v51, %v4590_v41  ;;  %v7729_v51 = vor.u32 %v8463_v54, %v7726_v19  ;;  %v8484_v54 = vld [vmem:[%s12708_s1 + $0xbbc] sm:$0xf]  ;;  %v7810_v19 = vld [vmem:[%s12708_s1 + $0xbc4] sm:$0xf0] }
 0x1bc   : > { %v4702_v23 = vpop.f32.mrf.mxu0  ;;  %5816 = vst [vmem:[%s10946_s7 + $0x48] sm:$0xff] %v5792_v8  ;;  %v4672_v60 = vadd.f32 %v4671_v45, %v4643_v21  ;;  %v12903_v21 = vld [vmem:[#allocation23_spill] sm:$0xff]  ;;  %v12904_v45 = vld [vmem:[#allocation37_spill] sm:$0xff]  ;;  %5174 = vmatpush.bf16.msra.mxu1 %v7837_v47 }
 0x1bd   : > { %v4731_v2 = vpop.f32.mrf.mxu1  ;;  %5146 = vmatpush.bf16.msra.mxu0 %v7729_v51  ;;  %v8406_v51 = vld [vmem:[%s12708_s1 + $0x94c] sm:$0xf] }
 0x1be   : > { %v4701_v4 = vadd.f32 %v4700_v62, %v4672_v60  ;;  %v7630_v62 = vld [vmem:[%s12708_s1 + $0xa5c] sm:$0xf0]  ;;  %v8436_v60 = vld [vmem:[%s12708_s1 + $0xa3c] sm:$0xf] }
 0x1bf   : > { %v7633_v6 = vor.u32 %v8439_v40, %v7630_v62  ;;  %5088 = vmatpush.bf16.msra.mxu2 %v7537_v32  ;;  %v4592_v62 = vadd.f32 %v10840_v24, %v4563_v14  ;;  %v7510_v24 = vld [vmem:[%s12708_s1 + $0x96c] sm:$0xf0] }
 0x1c0   : > { %v4730_v34 = vadd.f32 %v4729_v16, %v4701_v4  ;;  %v4644_v36 = vpop.f32.mrf.mxu2  ;;  %v7618_v4 = vld [vmem:[%s12708_s1 + $0xa44] sm:$0xf0]  ;;  %v7513_v41 = vor.u32 %v8409_v39, %v7510_v24 }
 0x1c1   : > { %v4645_v38 = vadd.f32 %v4644_v36, %v4616_v28  ;;  %5117 = vmatpush.bf16.msra.mxu3 %v7633_v6  ;;  %v7822_v6 = vld [vmem:[%s12708_s1 + $0xbdc] sm:$0xf0] }
 0x1c2   : > { %v5795_v30 = vmax.f32 %v4730_v34, 0.0  ;;  %v8487_v34 = vld [vmem:[%s12708_s1 + $0xbd4] sm:$0xf] }
 0x1c3   : > { %v4673_v33 = vpop.f32.mrf.mxu3  ;;  %v7825_v36 = vor.u32 %v8487_v34, %v7822_v6  ;;  %v7702_v34 = vld [vmem:[%s12708_s1 + $0xaec] sm:$0xf0] }
 0x1c4   : > { %v4705_v58 = vpop.f32.mrf.mxu0  ;;  %5819 = vst [vmem:[%s10946_s7 + $0x60] sm:$0xff] %v5795_v30  ;;  %v4674_v8 = vadd.f32 %v4673_v33, %v4645_v38  ;;  %v8433_v30 = vld [vmem:[%s12708_s1 + $0xa24] sm:$0xf]  ;;  %v7606_v38 = vld [vmem:[%s12708_s1 + $0xa2c] sm:$0xf0] }
 0x1c5   : > { %v4734_v53 = vpop.f32.mrf.mxu1  ;;  %4878 = vmatmul.bf16.gmra.mxu2 %v12903_v21  ;;  %v7609_v57 = vor.u32 %v8433_v30, %v7606_v38  ;;  %5175 = vmatpush.bf16.msra.mxu1 %v7825_v36 }
 0x1c6   : > { %v4703_v16 = vadd.f32 %v4702_v23, %v4674_v8  ;;  %v7522_v23 = vld [vmem:[%s12708_s1 + $0x984] sm:$0xf0]  ;;  %v8460_v8 = vld [vmem:[%s12708_s1 + $0xafc] sm:$0xf] }
 0x1c7   : > { %4936 = vmatmul.bf16.gmra.mxu0 %v12904_v45  ;;  %v7525_v26 = vor.u32 %v8412_v63, %v7522_v23 }
 0x1c8   : > { %4907 = vmatmul.bf16.gmra.mxu3 %v12905_v11  ;;  %v4732_v12 = vadd.f32 %v4731_v2, %v4703_v16  ;;  %4965 = vmatmul.bf16.gmra.mxu1 %v12906_v37  ;;  %v4647_v18 = vpop.f32.mrf.mxu2  ;;  %v7621_v2 = vor.u32 %v8436_v60, %v7618_v4  ;;  %v7714_v16 = vld [vmem:[%s12708_s1 + $0xb04] sm:$0xf0] }
 0x1c9   : > { %v4648_v40 = vadd.f32 %v4647_v18, %v4619_v56  ;;  %5089 = vmatpush.bf16.msra.mxu2 %v7525_v26  ;;  %v7717_v22 = vor.u32 %v8460_v8, %v7714_v16  ;;  %v12908_v56 = vld [vmem:[#allocation41_spill] sm:$0xff]  ;;  %v8601_v26 = vld [vmem:[%s12709_s2] sm:$0x7]  ;;  %v12909_v18 = vld [vmem:[#allocation28_spill] sm:$0xff] }
 0x1ca   : > { %v5798_v50 = vmax.f32 %v4732_v12, 0.0  ;;  %5118 = vmatpush.bf16.msra.mxu3 %v7621_v2  ;;  %v12907_v12 = vld [vmem:[#allocation26_spill] sm:$0xff]  ;;  %v11164_v4 = vperm.slane %v8601_v26, 1  ;;  %v7813_v2 = vor.u32 %v8484_v54, %v7810_v19  ;;  %v7798_v8 = vld [vmem:[%s12708_s1 + $0xbac] sm:$0xf0] }
 0x1cb   : > { %v4676_v28 = vpop.f32.mrf.mxu3  ;;  %5147 = vmatpush.bf16.msra.mxu0 %v7717_v22  ;;  %v8403_v16 = vld [vmem:[%s12708_s1 + $0x934] sm:$0xf]  ;;  %v7486_v22 = vld [vmem:[%s12708_s1 + $0x93c] sm:$0xf0] }
 0x1cc   : > { %v4707_v32 = vpop.f32.mrf.mxu0  ;;  %5822 = vst [vmem:[%s10946_s7 + $0x78] sm:$0xff] %v5798_v50  ;;  %v4677_v15 = vadd.f32 %v4676_v28, %v4648_v40  ;;  %v7498_v50 = vld [vmem:[%s12708_s1 + $0x954] sm:$0xf0]  ;;  %v8430_v40 = vld [vmem:[%s12708_s1 + $0xa0c] sm:$0xf]  ;;  %5176 = vmatpush.bf16.msra.mxu1 %v7813_v2 }
 0x1cd   : > { %v4736_v29 = vpop.f32.mrf.mxu1  ;;  %5090 = vmatpush.bf16.msra.mxu2 %v7513_v41 }
 0x1ce   : > { %v4706_v9 = vadd.f32 %v4705_v58, %v4677_v15  ;;  %v4621_v58 = vadd.f32 %v10853_v0, %v4592_v62  ;;  %5119 = vmatpush.bf16.msra.mxu3 %v7609_v57  ;;  %v7501_v62 = vor.u32 %v8406_v51, %v7498_v50  ;;  %v7594_v15 = vld [vmem:[%s12708_s1 + $0xa14] sm:$0xf0]  ;;  %v8481_v57 = vld [vmem:[%s12708_s1 + $0xba4] sm:$0xf] }
 0x1cf   : > { %v7597_v39 = vor.u32 %v8430_v40, %v7594_v15  ;;  %v12911_v15 = vld [vmem:[#allocation30_spill] sm:$0xff] }
 0x1d0   : > { %v4735_v33 = vadd.f32 %v4734_v53, %v4706_v9  ;;  %v4649_v46 = vpop.f32.mrf.mxu2  ;;  %v8457_v9 = vld [vmem:[%s12708_s1 + $0xae4] sm:$0xf] }
 0x1d1   : > { %v4650_v63 = vadd.f32 %v4649_v46, %v4621_v58  ;;  %5091 = vmatpush.bf16.msra.mxu2 %v7501_v62  ;;  %v7801_v46 = vor.u32 %v8481_v57, %v7798_v8  ;;  %v7678_v57 = vld [vmem:[%s12708_s1 + $0xabc] sm:$0xf0] }
 0x1d2   : > { %v5801_v47 = vmax.f32 %v4735_v33, 0.0  ;;  %5120 = vmatpush.bf16.msra.mxu3 %v7597_v39 }
 0x1d3   : > { %v4678_v23 = vpop.f32.mrf.mxu3  ;;  %5177 = vmatpush.bf16.msra.mxu1 %v7801_v46 }
 0x1d4   : > { %v4806_v53 = vpop.f32.mrf.mxu0  ;;  %5825 = vst [vmem:[%s10946_s7 + $0x90] sm:$0xff] %v5801_v47  ;;  %v4679_v0 = vadd.f32 %v4678_v23, %v4650_v63  ;;  %v8427_v47 = vld [vmem:[%s12708_s1 + $0x9f4] sm:$0xf]  ;;  %v7582_v63 = vld [vmem:[%s12708_s1 + $0x9fc] sm:$0xf0]  ;;  %v7489_v23 = vor.u32 %v8403_v16, %v7486_v22 }
 0x1d5   : > { %v4835_v60 = vpop.f32.mrf.mxu1  ;;  %4979 = vmatmul.bf16.vlgmr.msrb.gmra.mxu2 %v12907_v12 }
 0x1d6   : > { %v4708_v14 = vadd.f32 %v4707_v32, %v4679_v0  ;;  %v12910_v32 = vld [vmem:[#allocation43_spill] sm:$0xff]  ;;  %5092 = vmatpush.bf16.msra.mxu2 %v7489_v23 }
 0x1d7   : > { %5037 = vmatmul.bf16.vlgmr.msrb.gmra.mxu0 %v12908_v56  ;;  %v8454_v0 = vld [vmem:[%s12708_s1 + $0xacc] sm:$0xf] }
 0x1d8   : > { %5008 = vmatmul.bf16.vlgmr.msrb.gmra.mxu3 %v12909_v18  ;;  %v4737_v28 = vadd.f32 %v4736_v29, %v4708_v14  ;;  %5066 = vmatmul.bf16.vlgmr.msrb.gmra.mxu1 %v12910_v32  ;;  %v4748_v6 = vpop.f32.mrf.mxu2  ;;  %v7705_v29 = vor.u32 %v8457_v9, %v7702_v34  ;;  %v7690_v14 = vld [vmem:[%s12708_s1 + $0xad4] sm:$0xf0] }
 0x1d9   : > { %v4749_v24 = vadd.f32 %v4748_v6, %v11164_v4  ;;  %v7693_v19 = vor.u32 %v8454_v0, %v7690_v14  ;;  %v12912_v9 = vld [vmem:[#allocation45_spill] sm:$0xff]  ;;  %v12913_v6 = vld [vmem:[#allocation32_spill] sm:$0xff] }
 0x1da   : > { %v5804_v36 = vmax.f32 %v4737_v28, 0.0  ;;  %5148 = vmatpush.bf16.msra.mxu0 %v7705_v29  ;;  %v7786_v34 = vld [vmem:[%s12708_s1 + $0xb94] sm:$0xf0]  ;;  %v8400_v29 = vld [vmem:[%s12708_s1 + $0x91c] sm:$0xf] }
 0x1db   : > { %v4777_v30 = vpop.f32.mrf.mxu3  ;;  %v8475_v14 = vld [vmem:[%s12708_s1 + $0xb74] sm:$0xf] }
 0x1dc   : > { %v4808_v38 = vpop.f32.mrf.mxu0  ;;  %5828 = vst [vmem:[%s10946_s7 + $0xa8] sm:$0xff] %v5804_v36  ;;  %v4778_v33 = vadd.f32 %v4777_v30, %v4749_v24  ;;  %v7474_v36 = vld [vmem:[%s12708_s1 + $0x924] sm:$0xf0]  ;;  %v8424_v24 = vld [vmem:[%s12708_s1 + $0x9dc] sm:$0xf] }
 0x1dd   : > { %v4837_v58 = vpop.f32.mrf.mxu1  ;;  %v12914_v30 = vld [vmem:[#allocation47_spill] sm:$0xff] }
 0x1de   : > { %v4807_v41 = vadd.f32 %v4806_v53, %v4778_v33  ;;  %v7585_v53 = vor.u32 %v8427_v47, %v7582_v63  ;;  %5149 = vmatpush.bf16.msra.mxu0 %v7693_v19  ;;  %v7570_v33 = vld [vmem:[%s12708_s1 + $0x9e4] sm:$0xf0] }
 0x1df   : > { %v7573_v46 = vor.u32 %v8424_v24, %v7570_v33  ;;  %v7762_v33 = vld [vmem:[%s12708_s1 + $0xb64] sm:$0xf0] }
 0x1e0   : > { %v11218_v26 = vadd.f32 %v4835_v60, %v4807_v41  ;;  %v4750_v54 = vpop.f32.mrf.mxu2  ;;  %5121 = vmatpush.bf16.msra.mxu3 %v7585_v53  ;;  %v8478_v60 = vld [vmem:[%s12708_s1 + $0xb8c] sm:$0xf]  ;;  %v8451_v41 = vld [vmem:[%s12708_s1 + $0xab4] sm:$0xf] }
 0x1e1   : > { %v4751_v2 = vadd.f32 %v4750_v54, %v11164_v4  ;;  %v7789_v39 = vor.u32 %v8478_v60, %v7786_v34  ;;  %v7681_v22 = vor.u32 %v8451_v41, %v7678_v57  ;;  %v7558_v60 = vld [vmem:[%s12708_s1 + $0x9cc] sm:$0xf0]  ;;  %v7666_v34 = vld [vmem:[%s12708_s1 + $0xaa4] sm:$0xf0] }
 0x1e3   : > { %v4779_v51 = vpop.f32.mrf.mxu3  ;;  %5178 = vmatpush.bf16.msra.mxu1 %v7789_v39  ;;  %5150 = vmatpush.bf16.msra.mxu0 %v7681_v22  ;;  %v7654_v22 = vld [vmem:[%s12708_s1 + $0xa8c] sm:$0xf0] }
 0x1e4   : > { %v4811_v50 = vpop.f32.mrf.mxu0  ;;  %v4780_v40 = vadd.f32 %v4779_v51, %v4751_v2  ;;  %5122 = vmatpush.bf16.msra.mxu3 %v7573_v46  ;;  %v8397_v2 = vld [vmem:[%s12708_s1 + $0x904] sm:$0xf]  ;;  %v7462_v51 = vld [vmem:[%s12708_s1 + $0x90c] sm:$0xf0] }
 0x1e5   : > { %v4840_v28 = vpop.f32.mrf.mxu1  ;;  %4984 = vmatmul.bf16.gmra.mxu2 %v12911_v15 }
 0x1e6   : > { %v4809_v62 = vadd.f32 %v4808_v38, %v4780_v40  ;;  %v7477_v38 = vor.u32 %v8400_v29, %v7474_v36  ;;  %v8421_v40 = vld [vmem:[%s12708_s1 + $0x9c4] sm:$0xf] }
 0x1e7   : > { %5042 = vmatmul.bf16.gmra.mxu0 %v12912_v9  ;;  %v7561_v39 = vor.u32 %v8421_v40, %v7558_v60  ;;  %v12917_v40 = vld [vmem:[#allocation36_spill] sm:$0xff]  ;;  %v7930_v60 = vld [vmem:[%s12708_s1 + $0xcb4] sm:$0xf0] }
 0x1e8   : > { %5013 = vmatmul.bf16.gmra.mxu3 %v12913_v6  ;;  %5071 = vmatmul.bf16.gmra.mxu1 %v12914_v30  ;;  %v11249_v8 = vadd.f32 %v4837_v58, %v4809_v62  ;;  %v4753_v16 = vpop.f32.mrf.mxu2  ;;  %v7774_v58 = vld [vmem:[%s12708_s1 + $0xb7c] sm:$0xf0]  ;;  %v7465_v62 = vor.u32 %v8397_v2, %v7462_v51  ;;  %v12916_v2 = vld [vmem:[#allocation49_spill] sm:$0xff]  ;;  %v6460_v30 = vld [vmem:[%s12708_s1 + $0x128] sm:$0xf] }
 0x1e9   : > { %v4754_v47 = vadd.f32 %v4753_v16, %v11164_v4  ;;  %5093 = vmatpush.bf16.msra.mxu2 %v7477_v38  ;;  %v7777_v19 = vor.u32 %v8475_v14, %v7774_v58  ;;  %v8472_v38 = vld [vmem:[%s12708_s1 + $0xb5c] sm:$0xf]  ;;  %5123 = vmatpush.bf16.msra.mxu3 %v7561_v39  ;;  %v8469_v14 = vld [vmem:[%s12708_s1 + $0xb44] sm:$0xf]  ;;  %v7750_v58 = vld [vmem:[%s12708_s1 + $0xb4c] sm:$0xf0] }
 0x1ea   : > { %v7765_v16 = vor.u32 %v8472_v38, %v7762_v33  ;;  %v7753_v51 = vor.u32 %v8469_v14, %v7750_v58  ;;  %v8026_v39 = vld [vmem:[%s12708_s1 + $0xd74] sm:$0xf0]  ;;  %v8014_v58 = vld [vmem:[%s12708_s1 + $0xd5c] sm:$0xf0]  ;;  %v12953_v9 = vld [vmem:[#allocation24_spill] sm:$0xff] }
 0x1eb   : > { %v4782_v63 = vpop.f32.mrf.mxu3  ;;  %5179 = vmatpush.bf16.msra.mxu1 %v7777_v19  ;;  %v12915_v19 = vld [vmem:[#allocation34_spill] sm:$0xff] }
 0x1ec   : > { %v4813_v23 = vpop.f32.mrf.mxu0  ;;  %v4783_v53 = vadd.f32 %v4782_v63, %v4754_v47 }
 0x1ed   : > { %v4842_v0 = vpop.f32.mrf.mxu1  ;;  %5094 = vmatpush.bf16.msra.mxu2 %v7465_v62  ;;  %v8514_v62 = vld [vmem:[%s12708_s1 + $0xcac] sm:$0xf] }
 0x1ee   : > { %v4812_v54 = vadd.f32 %v4811_v50, %v4783_v53  ;;  %v8448_v50 = vld [vmem:[%s12708_s1 + $0xa9c] sm:$0xf] }
 0x1ef   : > { %v7669_v29 = vor.u32 %v8448_v50, %v7666_v34  ;;  %5180 = vmatpush.bf16.msra.mxu1 %v7765_v16  ;;  %v12918_v50 = vld [vmem:[#allocation51_spill] sm:$0xff]  ;;  %v7933_v34 = vor.u32 %v8514_v62, %v7930_v60 }
 0x1f0   : > { %v11276_v36 = vadd.f32 %v4840_v28, %v4812_v54  ;;  %v4755_v24 = vpop.f32.mrf.mxu2  ;;  %v8445_v28 = vld [vmem:[%s12708_s1 + $0xa84] sm:$0xf] }
 0x1f1   : > { %v4756_v41 = vadd.f32 %v4755_v24, %v11164_v4  ;;  %5151 = vmatpush.bf16.msra.mxu0 %v7669_v29  ;;  %v7657_v63 = vor.u32 %v8445_v28, %v7654_v22  ;;  %5203 = vmatpush.bf16.msrb.mxu2 %v7933_v34 }
 0x1f3   : > { %v4784_v57 = vpop.f32.mrf.mxu3  ;;  %5181 = vmatpush.bf16.msra.mxu1 %v7753_v51 }
 0x1f4   : > { %v4816_v46 = vpop.f32.mrf.mxu0  ;;  %v4785_v47 = vadd.f32 %v4784_v57, %v4756_v41 }
 0x1f5   : > { %v4845_v53 = vpop.f32.mrf.mxu1  ;;  %4989 = vmatmul.bf16.gmra.mxu2 %v12915_v19  ;;  %5152 = vmatpush.bf16.msra.mxu0 %v7657_v63  ;;  %v8535_v63 = vld [vmem:[%s12708_s1 + $0xd54] sm:$0xf] }
 0x1f6   : > { %v4814_v54 = vadd.f32 %v4813_v23, %v4785_v47  ;;  %v8538_v23 = vld [vmem:[%s12708_s1 + $0xd6c] sm:$0xf]  ;;  %v8511_v47 = vld [vmem:[%s12708_s1 + $0xc94] sm:$0xf]  ;;  %v8017_v51 = vor.u32 %v8535_v63, %v8014_v58  ;;  %v8508_v63 = vld [vmem:[%s12708_s1 + $0xc7c] sm:$0xf] }
 0x1f7   : > { %5047 = vmatmul.bf16.gmra.mxu0 %v12916_v2  ;;  %v8029_v38 = vor.u32 %v8538_v23, %v8026_v39  ;;  %v12921_v58 = vld [vmem:[#allocation54_spill] sm:$0xff] }
 0x1f8   : > { %5018 = vmatmul.bf16.gmra.mxu3 %v12917_v40  ;;  %5076 = vmatmul.bf16.gmra.mxu1 %v12918_v50  ;;  %v11313_v29 = vadd.f32 %v4842_v0, %v4814_v54  ;;  %v4758_v24 = vpop.f32.mrf.mxu2  ;;  %v7918_v0 = vld [vmem:[%s12708_s1 + $0xc9c] sm:$0xf0]  ;;  %v8132_v54 = vld [vmem:[%s12708_s1 + $0xb8] sm:$0xf0]  ;;  %v6484_v50 = vld [vmem:[%s12708_s1 + $0x158] sm:$0xf] }
 0x1f9   : > { %v4759_v33 = vadd.f32 %v4758_v24, %v11164_v4  ;;  %5232 = vmatpush.bf16.msrb.mxu3 %v8029_v38  ;;  %v7921_v14 = vor.u32 %v8511_v47, %v7918_v0  ;;  %v12920_v47 = vld [vmem:[#allocation40_spill] sm:$0xff] }
 0x1fb   : > { %v4787_v41 = vpop.f32.mrf.mxu3  ;;  %5204 = vmatpush.bf16.msrb.mxu2 %v7921_v14  ;;  %v8532_v14 = vld [vmem:[%s12708_s1 + $0xd3c] sm:$0xf] }
 0x1fc   : > { %v4818_v57 = vpop.f32.mrf.mxu0  ;;  %v4788_v16 = vadd.f32 %v4787_v41, %v4759_v33 }
 0x1fd   : > { %v4847_v28 = vpop.f32.mrf.mxu1  ;;  %5233 = vmatpush.bf16.msrb.mxu3 %v8017_v51  ;;  %v6388_v51 = vld [vmem:[%s12708_s1 + $0x98] sm:$0xf] }
 0x1fe   : > { %v4817_v22 = vadd.f32 %v4816_v46, %v4788_v16  ;;  %v6400_v46 = vld [vmem:[%s12708_s1 + $0xb0] sm:$0xf]  ;;  %v12919_v16 = vld [vmem:[#allocation38_spill] sm:$0xff] }
 0x1ff   : > { %v6401_v62 = vor.u32 %v8132_v54, %v6400_v46  ;;  %v8002_v54 = vld [vmem:[%s12708_s1 + $0xd44] sm:$0xf0] }
 0x200   : > { %v11334_v60 = vadd.f32 %v4845_v53, %v4817_v22  ;;  %v4760_v23 = vpop.f32.mrf.mxu2  ;;  %v6496_v53 = vld [vmem:[%s12708_s1 + $0x170] sm:$0xf]  ;;  %v8156_v22 = vld [vmem:[%s12708_s1 + $0x178] sm:$0xf0] }
 0x201   : > { %v4761_v34 = vadd.f32 %v4760_v23, %v11164_v4  ;;  %5261 = vmatpush.bf16.msrb.mxu0 %v6401_v62  ;;  %v6497_v0 = vor.u32 %v8156_v22, %v6496_v53  ;;  %v8129_v62 = vld [vmem:[%s12708_s1 + $0xa0] sm:$0xf0] }
 0x203   : > { %v4789_v39 = vpop.f32.mrf.mxu3  ;;  %5290 = vmatpush.bf16.msrb.mxu1 %v6497_v0 }
 0x204   : > { %v4821_v24 = vpop.f32.mrf.mxu0  ;;  %v4790_v38 = vadd.f32 %v4789_v39, %v4761_v34  ;;  %v8005_v39 = vor.u32 %v8532_v14, %v8002_v54  ;;  %v7894_v14 = vld [vmem:[%s12708_s1 + $0xc6c] sm:$0xf0] }
 0x205   : > { %v4850_v33 = vpop.f32.mrf.mxu1  ;;  %4994 = vmatmul.bf16.gmra.mxu2 %v12919_v16 }
 0x206   : > { %v4819_v41 = vadd.f32 %v4818_v57, %v4790_v38  ;;  %v7906_v57 = vld [vmem:[%s12708_s1 + $0xc84] sm:$0xf0]  ;;  %v6389_v38 = vor.u32 %v8129_v62, %v6388_v51  ;;  %5234 = vmatpush.bf16.msrb.mxu3 %v8005_v39  ;;  %v6376_v62 = vld [vmem:[%s12708_s1 + $0x80] sm:$0xf] }
 0x207   : > { %5052 = vmatmul.bf16.gmra.mxu0 %v10217_v5  ;;  %v7909_v46 = vor.u32 %v8508_v63, %v7906_v57 }
 0x208   : > { %5023 = vmatmul.bf16.gmra.mxu3 %v12920_v47  ;;  %5081 = vmatmul.bf16.gmra.mxu1 %v12921_v58  ;;  %v11365_v23 = vadd.f32 %v4847_v28, %v4819_v41  ;;  %v4763_v34 = vpop.f32.mrf.mxu2  ;;  %v8153_v28 = vld [vmem:[%s12708_s1 + $0x160] sm:$0xf0] }
 0x209   : > { %v4764_v53 = vadd.f32 %v4763_v34, %v11164_v4  ;;  %5205 = vmatpush.bf16.msrb.mxu2 %v7909_v46  ;;  %5262 = vmatpush.bf16.msrb.mxu0 %v6389_v38  ;;  %v8505_v41 = vld [vmem:[%s12708_s1 + $0xc64] sm:$0xf]  ;;  %v6485_v0 = vor.u32 %v8153_v28, %v6484_v50  ;;  %v7990_v46 = vld [vmem:[%s12708_s1 + $0xd2c] sm:$0xf0]  ;;  %v8126_v50 = vld [vmem:[%s12708_s1 + $0x88] sm:$0xf0] }
 0x20a   : > { %v7897_v54 = vor.u32 %v8505_v41, %v7894_v14  ;;  %v6377_v38 = vor.u32 %v8126_v50, %v6376_v62  ;;  %v7978_v50 = vld [vmem:[%s12708_s1 + $0xd14] sm:$0xf0] }
 0x20b   : > { %v4792_v22 = vpop.f32.mrf.mxu3  ;;  %5291 = vmatpush.bf16.msrb.mxu1 %v6485_v0 }
 0x20c   : > { %v4823_v63 = vpop.f32.mrf.mxu0  ;;  %v4793_v57 = vadd.f32 %v4792_v22, %v4764_v53 }
 0x20d   : > { %v4852_v58 = vpop.f32.mrf.mxu1  ;;  %5206 = vmatpush.bf16.msrb.mxu2 %v7897_v54  ;;  %5263 = vmatpush.bf16.msrb.mxu0 %v6377_v38  ;;  %v8526_v54 = vld [vmem:[%s12708_s1 + $0xd0c] sm:$0xf]  ;;  %v8123_v38 = vld [vmem:[%s12708_s1 + $0x70] sm:$0xf0] }
 0x20e   : > { %v4822_v5 = vadd.f32 %v4821_v24, %v4793_v57  ;;  %v8529_v24 = vld [vmem:[%s12708_s1 + $0xd24] sm:$0xf] }
 0x20f   : > { %v7993_v51 = vor.u32 %v8529_v24, %v7990_v46  ;;  %v12922_v24 = vld [vmem:[#allocation42_spill] sm:$0xff]  ;;  %v8502_v46 = vld [vmem:[%s12708_s1 + $0xc4c] sm:$0xf] }
 0x210   : > { %v11392_v34 = vadd.f32 %v4850_v33, %v4822_v5  ;;  %v4765_v39 = vpop.f32.mrf.mxu2  ;;  %v6472_v5 = vld [vmem:[%s12708_s1 + $0x140] sm:$0xf]  ;;  %v12923_v33 = vld [vmem:[#allocation44_spill] sm:$0xff] }
 0x211   : > { %v4766_v53 = vadd.f32 %v4765_v39, %v11164_v4  ;;  %5235 = vmatpush.bf16.msrb.mxu3 %v7993_v51  ;;  %v8150_v4 = vld [vmem:[%s12708_s1 + $0x148] sm:$0xf0]  ;;  %v6364_v39 = vld [vmem:[%s12708_s1 + $0x68] sm:$0xf] }
 0x212   : > { %v6473_v0 = vor.u32 %v8150_v4, %v6472_v5  ;;  %v12924_v51 = vld [vmem:[#allocation59_spill] sm:$0xff]  ;;  %v6365_v5 = vor.u32 %v8123_v38, %v6364_v39 }
 0x213   : > { %v4794_v22 = vpop.f32.mrf.mxu3 }
 0x214   : > { %v4922_v57 = vpop.f32.mrf.mxu0  ;;  %v4795_v28 = vadd.f32 %v4794_v22, %v4766_v53  ;;  %5292 = vmatpush.bf16.msrb.mxu1 %v6473_v0  ;;  %5264 = vmatpush.bf16.msrb.mxu0 %v6365_v5  ;;  %v7870_v0 = vld [vmem:[%s12708_s1 + $0xc3c] sm:$0xf0] }
 0x215   : > { %v4951_v41 = vpop.f32.mrf.mxu1  ;;  %5095 = vmatmul.bf16.vlgmr.msra.gmra.mxu2 %v12922_v24 }
 0x216   : > { %v4824_v14 = vadd.f32 %v4823_v63, %v4795_v28  ;;  %v7882_v63 = vld [vmem:[%s12708_s1 + $0xc54] sm:$0xf0]  ;;  %v7981_v28 = vor.u32 %v8526_v54, %v7978_v50  ;;  %v7966_v54 = vld [vmem:[%s12708_s1 + $0xcfc] sm:$0xf0]  ;;  %v6352_v50 = vld [vmem:[%s12708_s1 + $0x50] sm:$0xf] }
 0x217   : > { %5153 = vmatmul.bf16.vlgmr.msra.gmra.mxu0 %v10315_v43  ;;  %v7885_v62 = vor.u32 %v8502_v46, %v7882_v63 }
 0x218   : > { %5124 = vmatmul.bf16.vlgmr.msra.gmra.mxu3 %v12923_v33  ;;  %5182 = vmatmul.bf16.vlgmr.msra.gmra.mxu1 %v12924_v51  ;;  %v11423_v53 = vadd.f32 %v4852_v58, %v4824_v14  ;;  %v4864_v22 = vpop.f32.mrf.mxu2  ;;  %v8147_v58 = vld [vmem:[%s12708_s1 + $0x130] sm:$0xf0] }
 0x219   : > { %v4865_v4 = vadd.f32 %v4864_v22, %v11218_v26  ;;  %5207 = vmatpush.bf16.msrb.mxu2 %v7885_v62  ;;  %5236 = vmatpush.bf16.msrb.mxu3 %v7981_v28  ;;  %v8499_v26 = vld [vmem:[%s12708_s1 + $0xc34] sm:$0xf]  ;;  %v6461_v14 = vor.u32 %v8147_v58, %v6460_v30  ;;  %v8120_v30 = vld [vmem:[%s12708_s1 + $0x58] sm:$0xf0] }
 0x21a   : > { %v6353_v22 = vor.u32 %v8120_v30, %v6352_v50  ;;  %v6340_v50 = vld [vmem:[%s12708_s1 + $0x38] sm:$0xf]  ;;  %v8117_v30 = vld [vmem:[%s12708_s1 + $0x40] sm:$0xf0] }
 0x21b   : > { %v4893_v46 = vpop.f32.mrf.mxu3  ;;  %5293 = vmatpush.bf16.msrb.mxu1 %v6461_v14 }
 0x21c   : > { %v4924_v63 = vpop.f32.mrf.mxu0  ;;  %v4894_v51 = vadd.f32 %v4893_v46, %v4865_v4  ;;  %5265 = vmatpush.bf16.msrb.mxu0 %v6353_v22 }
 0x21d   : > { %v4953_v43 = vpop.f32.mrf.mxu1 }
 0x21e   : > { %v4923_v2 = vadd.f32 %v4922_v57, %v4894_v51  ;;  %v8523_v57 = vld [vmem:[%s12708_s1 + $0xcf4] sm:$0xf]  ;;  %v7873_v51 = vor.u32 %v8499_v26, %v7870_v0  ;;  %v12925_v0 = vld [vmem:[#allocation46_spill] sm:$0xff] }
 0x21f   : > { %v7969_v62 = vor.u32 %v8523_v57, %v7966_v54  ;;  %v8496_v57 = vld [vmem:[%s12708_s1 + $0xc1c] sm:$0xf] }
 0x220   : > { %v11450_v39 = vadd.f32 %v4951_v41, %v4923_v2  ;;  %v4866_v38 = vpop.f32.mrf.mxu2  ;;  %5208 = vmatpush.bf16.msrb.mxu2 %v7873_v51  ;;  %v6448_v2 = vld [vmem:[%s12708_s1 + $0x110] sm:$0xf]  ;;  %v8520_v54 = vld [vmem:[%s12708_s1 + $0xcdc] sm:$0xf] }
 0x221   : > { %v4867_v28 = vadd.f32 %v4866_v38, %v11249_v8  ;;  %5237 = vmatpush.bf16.msrb.mxu3 %v7969_v62  ;;  %v8144_v8 = vld [vmem:[%s12708_s1 + $0x118] sm:$0xf0]  ;;  %v12926_v41 = vld [vmem:[#allocation48_spill] sm:$0xff]  ;;  %v7954_v62 = vld [vmem:[%s12708_s1 + $0xce4] sm:$0xf0] }
 0x222   : > { %v6449_v14 = vor.u32 %v8144_v8, %v6448_v2 }
 0x223   : > { %v4895_v5 = vpop.f32.mrf.mxu3 }
 0x224   : > { %v4927_v4 = vpop.f32.mrf.mxu0  ;;  %v4896_v46 = vadd.f32 %v4895_v5, %v4867_v28  ;;  %5294 = vmatpush.bf16.msrb.mxu1 %v6449_v14  ;;  %v7957_v28 = vor.u32 %v8520_v54, %v7954_v62  ;;  %v6341_v5 = vor.u32 %v8117_v30, %v6340_v50  ;;  %v7846_v54 = vld [vmem:[%s12708_s1 + $0xc0c] sm:$0xf0] }
 0x225   : > { %v4956_v58 = vpop.f32.mrf.mxu1  ;;  %5100 = vmatmul.bf16.gmra.mxu2 %v12925_v0  ;;  %v7942_v50 = vld [vmem:[%s12708_s1 + $0xccc] sm:$0xf0] }
 0x226   : > { %v4925_v26 = vadd.f32 %v4924_v63, %v4896_v46  ;;  %v7858_v63 = vld [vmem:[%s12708_s1 + $0xc24] sm:$0xf0]  ;;  %5238 = vmatpush.bf16.msrb.mxu3 %v7957_v28  ;;  %5266 = vmatpush.bf16.msrb.mxu0 %v6341_v5 }
 0x227   : > { %5158 = vmatmul.bf16.gmra.mxu0 %v10392_v44  ;;  %v7861_v51 = vor.u32 %v8496_v57, %v7858_v63  ;;  %v6868_v44 = vld [vmem:[%s12708_s1 + $0x458] sm:$0xf] }
 0x228   : > { %5129 = vmatmul.bf16.gmra.mxu3 %v12926_v41  ;;  %5187 = vmatmul.bf16.gmra.mxu1 %v10420_v55  ;;  %v11481_v38 = vadd.f32 %v4953_v43, %v4925_v26  ;;  %v4869_v22 = vpop.f32.mrf.mxu2  ;;  %v6436_v55 = vld [vmem:[%s12708_s1 + $0xf8] sm:$0xf]  ;;  %v8141_v43 = vld [vmem:[%s12708_s1 + $0x100] sm:$0xf0] }
 0x229   : > { %v4870_v46 = vadd.f32 %v4869_v22, %v11276_v36  ;;  %5209 = vmatpush.bf16.msrb.mxu2 %v7861_v51  ;;  %v6437_v14 = vor.u32 %v8141_v43, %v6436_v55  ;;  %v8493_v36 = vld [vmem:[%s12708_s1 + $0xc04] sm:$0xf]  ;;  %v6328_v55 = vld [vmem:[%s12708_s1 + $0x20] sm:$0xf] }
 0x22a   : > { %v8517_v51 = vld [vmem:[%s12708_s1 + $0xcc4] sm:$0xf]  ;;  %v7849_v62 = vor.u32 %v8493_v36, %v7846_v54 }
 0x22b   : > { %v4898_v2 = vpop.f32.mrf.mxu3  ;;  %5295 = vmatpush.bf16.msrb.mxu1 %v6437_v14  ;;  %v7945_v30 = vor.u32 %v8517_v51, %v7942_v50  ;;  %v8135_v50 = vld [vmem:[%s12708_s1 + $0xd0] sm:$0xf0] }
 0x22c   : > { %v4929_v8 = vpop.f32.mrf.mxu0  ;;  %v4899_v57 = vadd.f32 %v4898_v2, %v4870_v46  ;;  %v6424_v46 = vld [vmem:[%s12708_s1 + $0xe0] sm:$0xf]  ;;  %v8138_v2 = vld [vmem:[%s12708_s1 + $0xe8] sm:$0xf0] }
 0x22d   : > { %v4958_v63 = vpop.f32.mrf.mxu1  ;;  %5210 = vmatpush.bf16.msrb.mxu2 %v7849_v62  ;;  %5239 = vmatpush.bf16.msrb.mxu3 %v7945_v30  ;;  %v6425_v14 = vor.u32 %v8138_v2, %v6424_v46  ;;  %v8180_v46 = vld [vmem:[%s12708_s1 + $0x238] sm:$0xf0] }
 0x22e   : > { %v4928_v26 = vadd.f32 %v4927_v4, %v4899_v57  ;;  %v8114_v4 = vld [vmem:[%s12708_s1 + $0x28] sm:$0xf0] }
 0x22f   : > { %v6329_v22 = vor.u32 %v8114_v4, %v6328_v55  ;;  %5296 = vmatpush.bf16.msrb.mxu1 %v6425_v14  ;;  %v12927_v4 = vld [vmem:[#allocation50_spill] sm:$0xff] }
 0x230   : > { %v11508_v28 = vadd.f32 %v4956_v58, %v4928_v26  ;;  %v4871_v5 = vpop.f32.mrf.mxu2  ;;  %v6316_v58 = vld [vmem:[%s12708_s1 + $0x8] sm:$0xf]  ;;  %v8111_v26 = vld [vmem:[%s12708_s1 + $0x10] sm:$0xf0] }
 0x231   : > { %v4872_v57 = vadd.f32 %v4871_v5, %v11313_v29  ;;  %5267 = vmatpush.bf16.msrb.mxu0 %v6329_v22  ;;  %v6317_v51 = vor.u32 %v8111_v26, %v6316_v58  ;;  %v6412_v29 = vld [vmem:[%s12708_s1 + $0xc8] sm:$0xf]  ;;  %v12928_v22 = vld [vmem:[#allocation52_spill] sm:$0xff] }
 0x232   : > { %v6413_v30 = vor.u32 %v8135_v50, %v6412_v29  ;;  %v6592_v5 = vld [vmem:[%s12708_s1 + $0x230] sm:$0xf] }
 0x233   : > { %v4900_v43 = vpop.f32.mrf.mxu3  ;;  %v6593_v2 = vor.u32 %v8180_v46, %v6592_v5  ;;  %v6580_v5 = vld [vmem:[%s12708_s1 + $0x218] sm:$0xf]  ;;  %v8228_v46 = vld [vmem:[%s12708_s1 + $0x3b8] sm:$0xf0] }
 0x234   : > { %v4932_v36 = vpop.f32.mrf.mxu0  ;;  %v4901_v54 = vadd.f32 %v4900_v43, %v4872_v57  ;;  %v8204_v57 = vld [vmem:[%s12708_s1 + $0x2f8] sm:$0xf0]  ;;  %5297 = vmatpush.bf16.msrb.mxu1 %v6413_v30  ;;  %v8201_v30 = vld [vmem:[%s12708_s1 + $0x2e0] sm:$0xf0] }
 0x235   : > { %v4961_v62 = vpop.f32.mrf.mxu1  ;;  %5105 = vmatmul.bf16.gmra.mxu2 %v12927_v4  ;;  %5268 = vmatpush.bf16.msrb.mxu0 %v6317_v51 }
 0x236   : > { %v4930_v55 = vadd.f32 %v4929_v8, %v4901_v54  ;;  %v6688_v8 = vld [vmem:[%s12708_s1 + $0x2f0] sm:$0xf]  ;;  %5319 = vmatpush.bf16.msra.mxu2 %v6593_v2 }
 0x237   : > { %5163 = vmatmul.bf16.gmra.mxu0 %v10496_v61  ;;  %v6689_v58 = vor.u32 %v8204_v57, %v6688_v8 }
 0x238   : > { %5134 = vmatmul.bf16.gmra.mxu3 %v12928_v22  ;;  %5192 = vmatmul.bf16.gmra.mxu1 %v10500_v17  ;;  %v11545_v43 = vadd.f32 %v4958_v63, %v4930_v55  ;;  %v4874_v14 = vpop.f32.mrf.mxu2  ;;  %v8177_v63 = vld [vmem:[%s12708_s1 + $0x220] sm:$0xf0]  ;;  %v6676_v55 = vld [vmem:[%s12708_s1 + $0x2d8] sm:$0xf]  ;;  %v12929_v17 = vld [vmem:[#allocation55_spill] sm:$0xff] }
 0x239   : > { %v4875_v26 = vadd.f32 %v4874_v14, %v11334_v60  ;;  %5348 = vmatpush.bf16.msra.mxu3 %v6689_v58  ;;  %v6581_v60 = vor.u32 %v8177_v63, %v6580_v5  ;;  %v6677_v8 = vor.u32 %v8201_v30, %v6676_v55  ;;  %v6664_v30 = vld [vmem:[%s12708_s1 + $0x2c0] sm:$0xf] }
 0x23b   : > { %v4903_v54 = vpop.f32.mrf.mxu3  ;;  %5320 = vmatpush.bf16.msra.mxu2 %v6581_v60  ;;  %v6568_v60 = vld [vmem:[%s12708_s1 + $0x200] sm:$0xf] }
 0x23c   : > { %v4934_v51 = vpop.f32.mrf.mxu0  ;;  %v4904_v29 = vadd.f32 %v4903_v54, %v4875_v26 }
 0x23d   : > { %v4963_v50 = vpop.f32.mrf.mxu1  ;;  %5349 = vmatpush.bf16.msra.mxu3 %v6677_v8  ;;  %v6772_v8 = vld [vmem:[%s12708_s1 + $0x398] sm:$0xf] }
 0x23e   : > { %v4933_v61 = vadd.f32 %v4932_v36, %v4904_v29  ;;  %v6784_v36 = vld [vmem:[%s12708_s1 + $0x3b0] sm:$0xf] }
 0x23f   : > { %v6785_v2 = vor.u32 %v8228_v46, %v6784_v36  ;;  %v8198_v46 = vld [vmem:[%s12708_s1 + $0x2c8] sm:$0xf0] }
 0x240   : > { %v11566_v57 = vadd.f32 %v4961_v62, %v4933_v61  ;;  %v4876_v14 = vpop.f32.mrf.mxu2  ;;  %v6880_v61 = vld [vmem:[%s12708_s1 + $0x470] sm:$0xf]  ;;  %v8252_v62 = vld [vmem:[%s12708_s1 + $0x478] sm:$0xf0] }
 0x241   : > { %v4877_v58 = vadd.f32 %v4876_v14, %v11365_v23  ;;  %5377 = vmatpush.bf16.msra.mxu0 %v6785_v2  ;;  %v12930_v23 = vld [vmem:[#allocation56_spill] sm:$0xff]  ;;  %v6881_v55 = vor.u32 %v8252_v62, %v6880_v61  ;;  %v8225_v2 = vld [vmem:[%s12708_s1 + $0x3a0] sm:$0xf0] }
 0x243   : > { %v4905_v26 = vpop.f32.mrf.mxu3  ;;  %5406 = vmatpush.bf16.msra.mxu1 %v6881_v55  ;;  %v8171_v55 = vld [vmem:[%s12708_s1 + $0x1f0] sm:$0xf0] }
 0x244   : > { %v4937_v54 = vpop.f32.mrf.mxu0  ;;  %v4906_v29 = vadd.f32 %v4905_v26, %v4877_v58  ;;  %v6665_v26 = vor.u32 %v8198_v46, %v6664_v30  ;;  %v8195_v30 = vld [vmem:[%s12708_s1 + $0x2b0] sm:$0xf0] }
 0x245   : > { %v4966_v5 = vpop.f32.mrf.mxu1  ;;  %5110 = vmatmul.bf16.gmra.mxu2 %v12929_v17 }
 0x246   : > { %v4935_v63 = vadd.f32 %v4934_v51, %v4906_v29  ;;  %v8174_v51 = vld [vmem:[%s12708_s1 + $0x208] sm:$0xf0]  ;;  %v6773_v29 = vor.u32 %v8225_v2, %v6772_v8  ;;  %5350 = vmatpush.bf16.msra.mxu3 %v6665_v26  ;;  %v6760_v8 = vld [vmem:[%s12708_s1 + $0x380] sm:$0xf] }
 0x247   : > { %5168 = vmatmul.bf16.gmra.mxu0 %v10556_v3  ;;  %v6569_v36 = vor.u32 %v8174_v51, %v6568_v60 }
 0x248   : > { %5139 = vmatmul.bf16.gmra.mxu3 %v12930_v23  ;;  %5197 = vmatmul.bf16.gmra.mxu1 %v10560_v7  ;;  %v11597_v14 = vadd.f32 %v4963_v50, %v4935_v63  ;;  %v4879_v58 = vpop.f32.mrf.mxu2  ;;  %v8249_v50 = vld [vmem:[%s12708_s1 + $0x460] sm:$0xf0] }
 0x249   : > { %v4880_v61 = vadd.f32 %v4879_v58, %v11392_v34  ;;  %5321 = vmatpush.bf16.msra.mxu2 %v6569_v36  ;;  %5378 = vmatpush.bf16.msra.mxu0 %v6773_v29  ;;  %v6556_v34 = vld [vmem:[%s12708_s1 + $0x1e8] sm:$0xf]  ;;  %v6869_v63 = vor.u32 %v8249_v50, %v6868_v44  ;;  %v8222_v44 = vld [vmem:[%s12708_s1 + $0x388] sm:$0xf0] }
 0x24a   : > { %v6557_v36 = vor.u32 %v8171_v55, %v6556_v34  ;;  %v6761_v26 = vor.u32 %v8222_v44, %v6760_v8  ;;  %v12931_v55 = vld [vmem:[#allocation58_spill] sm:$0xff]  ;;  %v8219_v8 = vld [vmem:[%s12708_s1 + $0x370] sm:$0xf0] }
 0x24b   : > { %v4908_v62 = vpop.f32.mrf.mxu3  ;;  %5407 = vmatpush.bf16.msra.mxu1 %v6869_v63 }
 0x24c   : > { %v4939_v60 = vpop.f32.mrf.mxu0  ;;  %v4909_v51 = vadd.f32 %v4908_v62, %v4880_v61 }
 0x24d   : > { %v4968_v7 = vpop.f32.mrf.mxu1  ;;  %5322 = vmatpush.bf16.msra.mxu2 %v6557_v36  ;;  %5379 = vmatpush.bf16.msra.mxu0 %v6761_v26  ;;  %v8192_v36 = vld [vmem:[%s12708_s1 + $0x298] sm:$0xf0] }
 0x24e   : > { %v4938_v3 = vadd.f32 %v4937_v54, %v4909_v51  ;;  %v6652_v54 = vld [vmem:[%s12708_s1 + $0x2a8] sm:$0xf] }
 0x24f   : > { %v6653_v46 = vor.u32 %v8195_v30, %v6652_v54  ;;  %v6544_v54 = vld [vmem:[%s12708_s1 + $0x1d0] sm:$0xf] }
 0x250   : > { %v11624_v2 = vadd.f32 %v4966_v5, %v4938_v3  ;;  %v4881_v58 = vpop.f32.mrf.mxu2  ;;  %v6856_v3 = vld [vmem:[%s12708_s1 + $0x440] sm:$0xf]  ;;  %v12932_v5 = vld [vmem:[#allocation60_spill] sm:$0xff] }
 0x251   : > { %v4882_v29 = vadd.f32 %v4881_v58, %v11423_v53  ;;  %5351 = vmatpush.bf16.msra.mxu3 %v6653_v46  ;;  %v8246_v53 = vld [vmem:[%s12708_s1 + $0x448] sm:$0xf0]  ;;  %v6748_v46 = vld [vmem:[%s12708_s1 + $0x368] sm:$0xf] }
 0x252   : > { %v6857_v63 = vor.u32 %v8246_v53, %v6856_v3 }
 0x253   : > { %v4910_v61 = vpop.f32.mrf.mxu3 }
 0x254   : > { %v5038_v62 = vpop.f32.mrf.mxu0  ;;  %v4911_v51 = vadd.f32 %v4910_v61, %v4882_v29  ;;  %5408 = vmatpush.bf16.msra.mxu1 %v6857_v63  ;;  %v6749_v29 = vor.u32 %v8219_v8, %v6748_v46  ;;  %v8165_v63 = vld [vmem:[%s12708_s1 + $0x1c0] sm:$0xf0]  ;;  %v6736_v46 = vld [vmem:[%s12708_s1 + $0x350] sm:$0xf]  ;;  %v8216_v8 = vld [vmem:[%s12708_s1 + $0x358] sm:$0xf0] }
 0x255   : > { %v5067_v50 = vpop.f32.mrf.mxu1  ;;  %5211 = vmatmul.bf16.vlgmr.msrb.gmra.mxu2 %v12931_v55 }
 0x256   : > { %v4940_v34 = vadd.f32 %v4939_v60, %v4911_v51  ;;  %v8168_v60 = vld [vmem:[%s12708_s1 + $0x1d8] sm:$0xf0]  ;;  %5380 = vmatpush.bf16.msra.mxu0 %v6749_v29  ;;  %v6737_v29 = vor.u32 %v8216_v8, %v6736_v46  ;;  %v8186_v8 = vld [vmem:[%s12708_s1 + $0x268] sm:$0xf0] }
 0x257   : > { %5269 = vmatmul.bf16.vlgmr.msrb.gmra.mxu0 %v8903_v13  ;;  %v6640_v13 = vld [vmem:[%s12708_s1 + $0x290] sm:$0xf]  ;;  %v6545_v30 = vor.u32 %v8168_v60, %v6544_v54  ;;  %v6844_v60 = vld [vmem:[%s12708_s1 + $0x428] sm:$0xf] }
 0x258   : > { %5240 = vmatmul.bf16.vlgmr.msrb.gmra.mxu3 %v12932_v5  ;;  %5298 = vmatmul.bf16.vlgmr.msrb.gmra.mxu1 %v8920_v20  ;;  %v11655_v44 = vadd.f32 %v4968_v7, %v4940_v34  ;;  %v4980_v58 = vpop.f32.mrf.mxu2  ;;  %v6641_v26 = vor.u32 %v8192_v36, %v6640_v13  ;;  %v8243_v7 = vld [vmem:[%s12708_s1 + $0x430] sm:$0xf0]  ;;  %v8189_v13 = vld [vmem:[%s12708_s1 + $0x280] sm:$0xf0] }
 0x259   : > { %v4981_v20 = vadd.f32 %v4980_v58, %v11450_v39  ;;  %5323 = vmatpush.bf16.msra.mxu2 %v6545_v30  ;;  %v6532_v39 = vld [vmem:[%s12708_s1 + $0x1b8] sm:$0xf]  ;;  %v6845_v34 = vor.u32 %v8243_v7, %v6844_v60 }
 0x25a   : > { %5352 = vmatpush.bf16.msra.mxu3 %v6641_v26  ;;  %v6533_v30 = vor.u32 %v8165_v63, %v6532_v39  ;;  %5381 = vmatpush.bf16.msra.mxu0 %v6737_v29  ;;  %v12933_v63 = vld [vmem:[#allocation62_spill] sm:$0xff] }
 0x25b   : > { %v5009_v61 = vpop.f32.mrf.mxu3  ;;  %5409 = vmatpush.bf16.msra.mxu1 %v6845_v34  ;;  %v8213_v29 = vld [vmem:[%s12708_s1 + $0x340] sm:$0xf0] }
 0x25c   : > { %v5040_v51 = vpop.f32.mrf.mxu0  ;;  %v5010_v3 = vadd.f32 %v5009_v61, %v4981_v20 }
 0x25d   : > { %v5069_v53 = vpop.f32.mrf.mxu1  ;;  %5324 = vmatpush.bf16.msra.mxu2 %v6533_v30  ;;  %v6616_v30 = vld [vmem:[%s12708_s1 + $0x260] sm:$0xf] }
 0x25e   : > { %v5039_v54 = vadd.f32 %v5038_v62, %v5010_v3  ;;  %v6628_v62 = vld [vmem:[%s12708_s1 + $0x278] sm:$0xf] }
 0x25f   : > { %v6629_v36 = vor.u32 %v8189_v13, %v6628_v62  ;;  %v12934_v62 = vld [vmem:[#allocation10_spill] sm:$0xff] }
 0x260   : > { %v11682_v58 = vadd.f32 %v5067_v50, %v5039_v54  ;;  %v4982_v26 = vpop.f32.mrf.mxu2  ;;  %v6832_v50 = vld [vmem:[%s12708_s1 + $0x410] sm:$0xf]  ;;  %v6520_v13 = vld [vmem:[%s12708_s1 + $0x1a0] sm:$0xf] }
 0x261   : > { %v4983_v20 = vadd.f32 %v4982_v26, %v11481_v38  ;;  %5353 = vmatpush.bf16.msra.mxu3 %v6629_v36  ;;  %v8240_v38 = vld [vmem:[%s12708_s1 + $0x418] sm:$0xf0]  ;;  %v12935_v54 = vld [vmem:[#allocation64_spill] sm:$0xff]  ;;  %v12936_v36 = vld [vmem:[#allocation11_spill] sm:$0xff] }
 0x262   : > { %v6833_v34 = vor.u32 %v8240_v38, %v6832_v50  ;;  %v6724_v26 = vld [vmem:[%s12708_s1 + $0x338] sm:$0xf] }
 0x263   : > { %v5011_v61 = vpop.f32.mrf.mxu3 }
 0x264   : > { %v5043_v3 = vpop.f32.mrf.mxu0  ;;  %v5012_v60 = vadd.f32 %v5011_v61, %v4983_v20  ;;  %5410 = vmatpush.bf16.msra.mxu1 %v6833_v34 }
 0x265   : > { %v5072_v7 = vpop.f32.mrf.mxu1  ;;  %5216 = vmatmul.bf16.gmra.mxu2 %v12933_v63  ;;  %v12942_v63 = vld [vmem:[#allocation8_spill] sm:$0xff] }
 0x266   : > { %v5041_v39 = vadd.f32 %v5040_v51, %v5012_v60  ;;  %v8162_v51 = vld [vmem:[%s12708_s1 + $0x1a8] sm:$0xf0]  ;;  %v6617_v60 = vor.u32 %v8186_v8, %v6616_v30  ;;  %v8159_v30 = vld [vmem:[%s12708_s1 + $0x190] sm:$0xf0] }
 0x267   : > { %5274 = vmatmul.bf16.gmra.mxu0 %v12934_v62  ;;  %v6521_v46 = vor.u32 %v8162_v51, %v6520_v13  ;;  %v6725_v62 = vor.u32 %v8213_v29, %v6724_v26  ;;  %v8183_v26 = vld [vmem:[%s12708_s1 + $0x250] sm:$0xf0] }
 0x268   : > { %5245 = vmatmul.bf16.gmra.mxu3 %v12935_v54  ;;  %5303 = vmatmul.bf16.gmra.mxu1 %v12936_v36  ;;  %v11713_v20 = vadd.f32 %v5069_v53, %v5041_v39  ;;  %v4985_v61 = vpop.f32.mrf.mxu2  ;;  %v6820_v54 = vld [vmem:[%s12708_s1 + $0x3f8] sm:$0xf]  ;;  %v8237_v53 = vld [vmem:[%s12708_s1 + $0x400] sm:$0xf0] }
 0x269   : > { %v4986_v50 = vadd.f32 %v4985_v61, %v11508_v28  ;;  %5325 = vmatpush.bf16.msra.mxu2 %v6521_v46  ;;  %5354 = vmatpush.bf16.msra.mxu3 %v6617_v60  ;;  %v6821_v34 = vor.u32 %v8237_v53, %v6820_v54  ;;  %v6508_v28 = vld [vmem:[%s12708_s1 + $0x188] sm:$0xf]  ;;  %v8210_v54 = vld [vmem:[%s12708_s1 + $0x328] sm:$0xf0] }
 0x26a   : > { %5382 = vmatpush.bf16.msra.mxu0 %v6725_v62  ;;  %v6604_v46 = vld [vmem:[%s12708_s1 + $0x248] sm:$0xf]  ;;  %v6509_v8 = vor.u32 %v8159_v30, %v6508_v28 }
 0x26b   : > { %v5014_v38 = vpop.f32.mrf.mxu3  ;;  %5411 = vmatpush.bf16.msra.mxu1 %v6821_v34  ;;  %v6605_v29 = vor.u32 %v8183_v26, %v6604_v46  ;;  %v8231_v26 = vld [vmem:[%s12708_s1 + $0x3d0] sm:$0xf0] }
 0x26c   : > { %v5045_v13 = vpop.f32.mrf.mxu0  ;;  %v5015_v51 = vadd.f32 %v5014_v38, %v4986_v50  ;;  %v6808_v50 = vld [vmem:[%s12708_s1 + $0x3e0] sm:$0xf]  ;;  %v8234_v38 = vld [vmem:[%s12708_s1 + $0x3e8] sm:$0xf0] }
 0x26d   : > { %v5074_v36 = vpop.f32.mrf.mxu1  ;;  %5326 = vmatpush.bf16.msra.mxu2 %v6509_v8  ;;  %5355 = vmatpush.bf16.msra.mxu3 %v6605_v29  ;;  %v6809_v34 = vor.u32 %v8234_v38, %v6808_v50  ;;  %v12938_v29 = vld [vmem:[#allocation6_spill] sm:$0xff]  ;;  %v6976_v50 = vld [vmem:[%s12708_s1 + $0x530] sm:$0xf]  ;;  %v8276_v38 = vld [vmem:[%s12708_s1 + $0x538] sm:$0xf0] }
 0x26e   : > { %v5044_v39 = vadd.f32 %v5043_v3, %v5015_v51  ;;  %v6712_v3 = vld [vmem:[%s12708_s1 + $0x320] sm:$0xf] }
 0x26f   : > { %v6713_v61 = vor.u32 %v8210_v54, %v6712_v3  ;;  %5412 = vmatpush.bf16.msra.mxu1 %v6809_v34  ;;  %v12937_v54 = vld [vmem:[#allocation66_spill] sm:$0xff]  ;;  %v8300_v34 = vld [vmem:[%s12708_s1 + $0x5f8] sm:$0xf0] }
 0x270   : > { %v11740_v60 = vadd.f32 %v5072_v7, %v5044_v39  ;;  %v4987_v62 = vpop.f32.mrf.mxu2  ;;  %v6700_v7 = vld [vmem:[%s12708_s1 + $0x308] sm:$0xf]  ;;  %v8207_v39 = vld [vmem:[%s12708_s1 + $0x310] sm:$0xf0] }
 0x271   : > { %v4988_v51 = vadd.f32 %v4987_v62, %v11545_v43  ;;  %5383 = vmatpush.bf16.msra.mxu0 %v6713_v61  ;;  %v6701_v46 = vor.u32 %v8207_v39, %v6700_v7  ;;  %v6796_v43 = vld [vmem:[%s12708_s1 + $0x3c8] sm:$0xf]  ;;  %v12939_v62 = vld [vmem:[#allocation68_spill] sm:$0xff] }
 0x272   : > { %v6797_v61 = vor.u32 %v8231_v26, %v6796_v43 }
 0x273   : > { %v5016_v53 = vpop.f32.mrf.mxu3 }
 0x274   : > { %v5048_v28 = vpop.f32.mrf.mxu0  ;;  %v5017_v30 = vadd.f32 %v5016_v53, %v4988_v51  ;;  %v12940_v51 = vld [vmem:[#allocation7_spill] sm:$0xff]  ;;  %v6977_v53 = vor.u32 %v8276_v38, %v6976_v50  ;;  %5413 = vmatpush.bf16.msra.mxu1 %v6797_v61  ;;  %v6964_v50 = vld [vmem:[%s12708_s1 + $0x518] sm:$0xf]  ;;  %v8297_v61 = vld [vmem:[%s12708_s1 + $0x5e0] sm:$0xf0] }
 0x275   : > { %v5077_v8 = vpop.f32.mrf.mxu1  ;;  %5221 = vmatmul.bf16.gmra.mxu2 %v12937_v54  ;;  %5384 = vmatpush.bf16.msra.mxu0 %v6701_v46  ;;  %v8324_v38 = vld [vmem:[%s12708_s1 + $0x6b8] sm:$0xf0] }
 0x276   : > { %v5046_v3 = vadd.f32 %v5045_v13, %v5017_v30  ;;  %v7072_v13 = vld [vmem:[%s12708_s1 + $0x5f0] sm:$0xf]  ;;  %5435 = vmatpush.bf16.msrb.mxu2 %v6977_v53 }
 0x277   : > { %5279 = vmatmul.bf16.gmra.mxu0 %v12938_v29  ;;  %v7073_v30 = vor.u32 %v8300_v34, %v7072_v13 }
 0x278   : > { %5250 = vmatmul.bf16.gmra.mxu3 %v12939_v62  ;;  %5308 = vmatmul.bf16.gmra.mxu1 %v12940_v51  ;;  %v11777_v7 = vadd.f32 %v5074_v36, %v5046_v3  ;;  %v4990_v39 = vpop.f32.mrf.mxu2  ;;  %v8273_v36 = vld [vmem:[%s12708_s1 + $0x520] sm:$0xf0]  ;;  %v7060_v3 = vld [vmem:[%s12708_s1 + $0x5d8] sm:$0xf] }
 0x279   : > { %v4991_v46 = vadd.f32 %v4990_v39, %v11566_v57  ;;  %5464 = vmatpush.bf16.msrb.mxu3 %v7073_v30  ;;  %v6965_v57 = vor.u32 %v8273_v36, %v6964_v50  ;;  %v7061_v13 = vor.u32 %v8297_v61, %v7060_v3  ;;  %v12941_v36 = vld [vmem:[#allocation70_spill] sm:$0xff]  ;;  %v12944_v61 = vld [vmem:[#allocation9_spill] sm:$0xff] }
 0x27b   : > { %v5019_v43 = vpop.f32.mrf.mxu3  ;;  %5436 = vmatpush.bf16.msrb.mxu2 %v6965_v57  ;;  %v6952_v57 = vld [vmem:[%s12708_s1 + $0x500] sm:$0xf] }
 0x27c   : > { %v5050_v26 = vpop.f32.mrf.mxu0  ;;  %v5020_v29 = vadd.f32 %v5019_v43, %v4991_v46 }
 0x27d   : > { %v5079_v62 = vpop.f32.mrf.mxu1  ;;  %5465 = vmatpush.bf16.msrb.mxu3 %v7061_v13  ;;  %v7156_v13 = vld [vmem:[%s12708_s1 + $0x698] sm:$0xf] }
 0x27e   : > { %v5049_v54 = vadd.f32 %v5048_v28, %v5020_v29  ;;  %v7168_v28 = vld [vmem:[%s12708_s1 + $0x6b0] sm:$0xf] }
 0x27f   : > { %v7169_v51 = vor.u32 %v8324_v38, %v7168_v28  ;;  %v8294_v38 = vld [vmem:[%s12708_s1 + $0x5c8] sm:$0xf0] }
 0x280   : > { %v11798_v53 = vadd.f32 %v5077_v8, %v5049_v54  ;;  %v4992_v34 = vpop.f32.mrf.mxu2  ;;  %v7264_v8 = vld [vmem:[%s12708_s1 + $0x770] sm:$0xf]  ;;  %v8348_v54 = vld [vmem:[%s12708_s1 + $0x778] sm:$0xf0] }
 0x281   : > { %v4993_v39 = vadd.f32 %v4992_v34, %v11597_v14  ;;  %5493 = vmatpush.bf16.msrb.mxu0 %v7169_v51  ;;  %v12943_v14 = vld [vmem:[#allocation72_spill] sm:$0xff]  ;;  %v7265_v3 = vor.u32 %v8348_v54, %v7264_v8  ;;  %v8321_v51 = vld [vmem:[%s12708_s1 + $0x6a0] sm:$0xf0] }
 0x283   : > { %v5021_v30 = vpop.f32.mrf.mxu3  ;;  %5522 = vmatpush.bf16.msrb.mxu1 %v7265_v3  ;;  %v8267_v3 = vld [vmem:[%s12708_s1 + $0x4f0] sm:$0xf0] }
 0x284   : > { %v5053_v46 = vpop.f32.mrf.mxu0  ;;  %v5022_v43 = vadd.f32 %v5021_v30, %v4993_v39 }
 0x285   : > { %v5082_v29 = vpop.f32.mrf.mxu1  ;;  %5226 = vmatmul.bf16.gmra.mxu2 %v12941_v36  ;;  %v7252_v36 = vld [vmem:[%s12708_s1 + $0x758] sm:$0xf] }
 0x286   : > { %v5051_v50 = vadd.f32 %v5050_v26, %v5022_v43  ;;  %v8270_v26 = vld [vmem:[%s12708_s1 + $0x508] sm:$0xf0]  ;;  %v7157_v43 = vor.u32 %v8321_v51, %v7156_v13  ;;  %v7144_v13 = vld [vmem:[%s12708_s1 + $0x680] sm:$0xf] }
 0x287   : > { %5284 = vmatmul.bf16.gmra.mxu0 %v12942_v63  ;;  %v7048_v63 = vld [vmem:[%s12708_s1 + $0x5c0] sm:$0xf]  ;;  %v6953_v28 = vor.u32 %v8270_v26, %v6952_v57 }
 0x288   : > { %5255 = vmatmul.bf16.gmra.mxu3 %v12943_v14  ;;  %5313 = vmatmul.bf16.gmra.mxu1 %v12944_v61  ;;  %v11829_v34 = vadd.f32 %v5079_v62, %v5051_v50  ;;  %v4995_v39 = vpop.f32.mrf.mxu2  ;;  %v7049_v30 = vor.u32 %v8294_v38, %v7048_v63  ;;  %v8345_v62 = vld [vmem:[%s12708_s1 + $0x760] sm:$0xf0]  ;;  %v8291_v63 = vld [vmem:[%s12708_s1 + $0x5b0] sm:$0xf0] }
 0x289   : > { %v4996_v8 = vadd.f32 %v4995_v39, %v11624_v2  ;;  %5437 = vmatpush.bf16.msrb.mxu2 %v6953_v28  ;;  %5494 = vmatpush.bf16.msrb.mxu0 %v7157_v43  ;;  %v6940_v2 = vld [vmem:[%s12708_s1 + $0x4e8] sm:$0xf]  ;;  %v7253_v50 = vor.u32 %v8345_v62, %v7252_v36  ;;  %v8318_v36 = vld [vmem:[%s12708_s1 + $0x688] sm:$0xf0] }
 0x28a   : > { %5466 = vmatpush.bf16.msrb.mxu3 %v7049_v30  ;;  %v6941_v28 = vor.u32 %v8267_v3, %v6940_v2  ;;  %v7145_v30 = vor.u32 %v8318_v36, %v7144_v13  ;;  %v12945_v3 = vld [vmem:[#allocation12_spill] sm:$0xff] }
 0x28b   : > { %v5024_v54 = vpop.f32.mrf.mxu3  ;;  %5523 = vmatpush.bf16.msrb.mxu1 %v7253_v50  ;;  %v8315_v13 = vld [vmem:[%s12708_s1 + $0x670] sm:$0xf0] }
 0x28c   : > { %v5055_v57 = vpop.f32.mrf.mxu0  ;;  %v5025_v26 = vadd.f32 %v5024_v54, %v4996_v8 }
 0x28d   : > { %v5084_v61 = vpop.f32.mrf.mxu1  ;;  %5438 = vmatpush.bf16.msrb.mxu2 %v6941_v28  ;;  %5495 = vmatpush.bf16.msrb.mxu0 %v7145_v30  ;;  %v8288_v28 = vld [vmem:[%s12708_s1 + $0x598] sm:$0xf0] }
 0x28e   : > { %v5054_v14 = vadd.f32 %v5053_v46, %v5025_v26  ;;  %v7036_v46 = vld [vmem:[%s12708_s1 + $0x5a8] sm:$0xf] }
 0x28f   : > { %v7037_v38 = vor.u32 %v8291_v63, %v7036_v46  ;;  %v6928_v46 = vld [vmem:[%s12708_s1 + $0x4d0] sm:$0xf] }
 0x290   : > { %v11856_v51 = vadd.f32 %v5082_v29, %v5054_v14  ;;  %v4997_v39 = vpop.f32.mrf.mxu2  ;;  %v7240_v29 = vld [vmem:[%s12708_s1 + $0x740] sm:$0xf]  ;;  %v12946_v14 = vld [vmem:[#allocation13_spill] sm:$0xff] }
 0x291   : > { %v4998_v43 = vadd.f32 %v4997_v39, %v11655_v44  ;;  %5467 = vmatpush.bf16.msrb.mxu3 %v7037_v38  ;;  %v8342_v44 = vld [vmem:[%s12708_s1 + $0x748] sm:$0xf0]  ;;  %v7132_v38 = vld [vmem:[%s12708_s1 + $0x668] sm:$0xf] }
 0x292   : > { %v7241_v50 = vor.u32 %v8342_v44, %v7240_v29  ;;  %v8261_v44 = vld [vmem:[%s12708_s1 + $0x4c0] sm:$0xf0] }
 0x293   : > { %v5026_v8 = vpop.f32.mrf.mxu3 }
 0x294   : > { %v11859_v54 = vpop.f32.mrf.mxu0  ;;  %v5027_v26 = vadd.f32 %v5026_v8, %v4998_v43  ;;  %5524 = vmatpush.bf16.msrb.mxu1 %v7241_v50  ;;  %v8285_v50 = vld [vmem:[%s12708_s1 + $0x580] sm:$0xf0] }
 0x295   : > { %v11861_v62 = vpop.f32.mrf.mxu1  ;;  %5327 = vmatmul.bf16.vlgmr.msra.gmra.mxu2 %v12945_v3  ;;  %v7228_v3 = vld [vmem:[%s12708_s1 + $0x728] sm:$0xf] }
 0x296   : > { %v5056_v2 = vadd.f32 %v5055_v57, %v5027_v26  ;;  %v8264_v57 = vld [vmem:[%s12708_s1 + $0x4d8] sm:$0xf0] }
 0x297   : > { %5385 = vmatmul.bf16.vlgmr.msra.gmra.mxu0 %v9311_v49  ;;  %v7024_v49 = vld [vmem:[%s12708_s1 + $0x590] sm:$0xf]  ;;  %v6929_v63 = vor.u32 %v8264_v57, %v6928_v46 }
 0x298   : > { %5356 = vmatmul.bf16.vlgmr.msra.gmra.mxu3 %v12946_v14  ;;  %5414 = vmatmul.bf16.vlgmr.msra.gmra.mxu1 %v9337_v1  ;;  %v11891_v36 = vadd.f32 %v5084_v61, %v5056_v2  ;;  %v11893_v39 = vpop.f32.mrf.mxu2  ;;  %v7025_v30 = vor.u32 %v8288_v28, %v7024_v49  ;;  %v7133_v1 = vor.u32 %v8315_v13, %v7132_v38  ;;  %v8339_v61 = vld [vmem:[%s12708_s1 + $0x730] sm:$0xf0]  ;;  %v6916_v2 = vld [vmem:[%s12708_s1 + $0x4b8] sm:$0xf]  ;;  %v7120_v49 = vld [vmem:[%s12708_s1 + $0x650] sm:$0xf] }
 0x299   : > { %5439 = vmatpush.bf16.msrb.mxu2 %v6929_v63  ;;  %v7229_v29 = vor.u32 %v8339_v61, %v7228_v3  ;;  %v7012_v14 = vld [vmem:[%s12708_s1 + $0x578] sm:$0xf]  ;;  %v6917_v46 = vor.u32 %v8261_v44, %v6916_v2  ;;  %v8312_v63 = vld [vmem:[%s12708_s1 + $0x658] sm:$0xf0]  ;;  %v12947_v3 = vld [vmem:[#allocation14_spill] sm:$0xff]  ;;  %v5097_v24 = vadd.f32 %v11893_v39, %v11682_v58 }
 0x29a   : > { %5468 = vmatpush.bf16.msrb.mxu3 %v7025_v30  ;;  %5496 = vmatpush.bf16.msrb.mxu0 %v7133_v1  ;;  %v7013_v57 = vor.u32 %v8285_v50, %v7012_v14  ;;  %v7121_v38 = vor.u32 %v8312_v63, %v7120_v49  ;;  %v7216_v61 = vld [vmem:[%s12708_s1 + $0x710] sm:$0xf]  ;;  %v8336_v2 = vld [vmem:[%s12708_s1 + $0x718] sm:$0xf0]  ;;  %v6904_v14 = vld [vmem:[%s12708_s1 + $0x4a0] sm:$0xf] }
 0x29b   : > { %v11895_v43 = vpop.f32.mrf.mxu3  ;;  %5525 = vmatpush.bf16.msrb.mxu1 %v7229_v29  ;;  %v12948_v29 = vld [vmem:[#allocation16_spill] sm:$0xff]  ;;  %v7217_v44 = vor.u32 %v8336_v2, %v7216_v61  ;;  %v8258_v50 = vld [vmem:[%s12708_s1 + $0x4a8] sm:$0xf0]  ;;  %v7108_v49 = vld [vmem:[%s12708_s1 + $0x638] sm:$0xf] }
 0x29c   : > { %v11897_v8 = vpop.f32.mrf.mxu0  ;;  %v8309_v63 = vld [vmem:[%s12708_s1 + $0x640] sm:$0xf0] }
 0x29d   : > { %v11899_v26 = vpop.f32.mrf.mxu1  ;;  %5440 = vmatpush.bf16.msrb.mxu2 %v6917_v46  ;;  %v6905_v46 = vor.u32 %v8258_v50, %v6904_v14  ;;  %v7109_v61 = vor.u32 %v8309_v63, %v7108_v49  ;;  %v7204_v14 = vld [vmem:[%s12708_s1 + $0x6f8] sm:$0xf]  ;;  %v8333_v50 = vld [vmem:[%s12708_s1 + $0x700] sm:$0xf0]  ;;  %v8279_v63 = vld [vmem:[%s12708_s1 + $0x550] sm:$0xf0] }
 0x29e   : > { %5469 = vmatpush.bf16.msrb.mxu3 %v7013_v57  ;;  %5497 = vmatpush.bf16.msrb.mxu0 %v7121_v38  ;;  %v8282_v57 = vld [vmem:[%s12708_s1 + $0x568] sm:$0xf0]  ;;  %v8441_v58 = vld [vmem:[%s12708_s1 + $0xa60] sm:$0xf0] }
 0x29f   : > { %5526 = vmatpush.bf16.msrb.mxu1 %v7217_v44  ;;  %v7205_v44 = vor.u32 %v8333_v50, %v7204_v14 }
 0x2a0   : > { %v11925_v28 = vpop.f32.mrf.mxu2 }
 0x2a1   : > { %5441 = vmatpush.bf16.msrb.mxu2 %v6905_v46  ;;  %v8255_v46 = vld [vmem:[%s12708_s1 + $0x490] sm:$0xf0] }
 0x2a2   : > { %5498 = vmatpush.bf16.msrb.mxu0 %v7109_v61  ;;  %v8306_v61 = vld [vmem:[%s12708_s1 + $0x628] sm:$0xf0] }
 0x2a3   : > { %v11927_v13 = vpop.f32.mrf.mxu3  ;;  %5527 = vmatpush.bf16.msrb.mxu1 %v7205_v44  ;;  %v7084_v44 = vld [vmem:[%s12708_s1 + $0x608] sm:$0xf] }
 0x2a4   : > { %v11929_v30 = vpop.f32.mrf.mxu0 }
 0x2a5   : > { %v11931_v1 = vpop.f32.mrf.mxu1  ;;  %5332 = vmatmul.bf16.gmra.mxu2 %v12947_v3 }
 0x2a7   : > { %5390 = vmatmul.bf16.gmra.mxu0 %v12895_v31  ;;  %v7000_v31 = vld [vmem:[%s12708_s1 + $0x560] sm:$0xf] }
 0x2a8   : > { %5361 = vmatmul.bf16.gmra.mxu3 %v12948_v29  ;;  %5419 = vmatmul.bf16.gmra.mxu1 %v12897_v52  ;;  %v11961_v38 = vpop.f32.mrf.mxu2  ;;  %v7001_v3 = vor.u32 %v8282_v57, %v7000_v31  ;;  %v6892_v31 = vld [vmem:[%s12708_s1 + $0x488] sm:$0xf] }
 0x2a9   : > { %v6988_v57 = vld [vmem:[%s12708_s1 + $0x548] sm:$0xf]  ;;  %v6893_v49 = vor.u32 %v8255_v46, %v6892_v31  ;;  %v7192_v31 = vld [vmem:[%s12708_s1 + $0x6e0] sm:$0xf]  ;;  %v8330_v46 = vld [vmem:[%s12708_s1 + $0x6e8] sm:$0xf0] }
 0x2aa   : > { %5470 = vmatpush.bf16.msrb.mxu3 %v7001_v3  ;;  %v7096_v3 = vld [vmem:[%s12708_s1 + $0x620] sm:$0xf]  ;;  %v6989_v14 = vor.u32 %v8279_v63, %v6988_v57  ;;  %v7193_v23 = vor.u32 %v8330_v46, %v7192_v31  ;;  %v8303_v57 = vld [vmem:[%s12708_s1 + $0x610] sm:$0xf0]  ;;  %v8372_v46 = vld [vmem:[%s12708_s1 + $0x838] sm:$0xf0] }
 0x2ab   : > { %v11963_v2 = vpop.f32.mrf.mxu3  ;;  %v7097_v50 = vor.u32 %v8306_v61, %v7096_v3  ;;  %5442 = vmatpush.bf16.msrb.mxu2 %v6893_v49  ;;  %v7085_v49 = vor.u32 %v8303_v57, %v7084_v44  ;;  %v7180_v3 = vld [vmem:[%s12708_s1 + $0x6c8] sm:$0xf]  ;;  %v8327_v61 = vld [vmem:[%s12708_s1 + $0x6d0] sm:$0xf0]  ;;  %v7456_v44 = vld [vmem:[%s12708_s1 + $0x8f0] sm:$0xf] }
 0x2ac   : > { %v11965_v52 = vpop.f32.mrf.mxu0  ;;  %5528 = vmatpush.bf16.msrb.mxu1 %v7193_v23  ;;  %v12950_v31 = vld [vmem:[#allocation20_spill] sm:$0xff] }
 0x2ad   : > { %v11967_v29 = vpop.f32.mrf.mxu1  ;;  %5499 = vmatpush.bf16.msrb.mxu0 %v7097_v50  ;;  %v7181_v50 = vor.u32 %v8327_v61, %v7180_v3  ;;  %v7360_v23 = vld [vmem:[%s12708_s1 + $0x830] sm:$0xf] }
 0x2ae   : > { %5471 = vmatpush.bf16.msrb.mxu3 %v6989_v14  ;;  %v12949_v14 = vld [vmem:[#allocation18_spill] sm:$0xff]  ;;  %v7361_v57 = vor.u32 %v8372_v46, %v7360_v23 }
 0x2af   : > { %v8369_v23 = vld [vmem:[%s12708_s1 + $0x820] sm:$0xf0] }
 0x2b0   : > { %v11993_v5 = vpop.f32.mrf.mxu2  ;;  %5529 = vmatpush.bf16.msrb.mxu1 %v7181_v50  ;;  %5551 = vmatpush.bf16.msra.mxu2 %v7361_v57  ;;  %v7444_v50 = vld [vmem:[%s12708_s1 + $0x8d8] sm:$0xf]  ;;  %v8393_v57 = vld [vmem:[%s12708_s1 + $0x8e0] sm:$0xf0] }
 0x2b1   : > { %5500 = vmatpush.bf16.msrb.mxu0 %v7085_v49  ;;  %v7445_v4 = vor.u32 %v8393_v57, %v7444_v50  ;;  %v7648_v50 = vld [vmem:[%s12708_s1 + $0xa70] sm:$0xf] }
 0x2b3   : > { %v12001_v55 = vpop.f32.mrf.mxu3 }
 0x2b4   : > { %v12003_v17 = vpop.f32.mrf.mxu0 }
 0x2b5   : > { %v12011_v63 = vpop.f32.mrf.mxu1  ;;  %5337 = vmatmul.bf16.gmra.mxu2 %v12949_v14 }
 0x2b7   : > { %5395 = vmatmul.bf16.gmra.mxu0 %v12899_v25  ;;  %v8396_v25 = vld [vmem:[%s12708_s1 + $0x8f8] sm:$0xf0] }
 0x2b8   : > { %5366 = vmatmul.bf16.gmra.mxu3 %v12950_v31  ;;  %5424 = vmatmul.bf16.gmra.mxu1 %v12901_v35  ;;  %v12035_v49 = vpop.f32.mrf.mxu2  ;;  %v7457_v3 = vor.u32 %v8396_v25, %v7456_v44  ;;  %v7348_v35 = vld [vmem:[%s12708_s1 + $0x818] sm:$0xf]  ;;  %v7552_v25 = vld [vmem:[%s12708_s1 + $0x9b0] sm:$0xf] }
 0x2b9   : > { %v7349_v44 = vor.u32 %v8369_v23, %v7348_v35  ;;  %v12952_v23 = vld [vmem:[#allocation22_spill] sm:$0xff] }
 0x2ba   : > { %5580 = vmatpush.bf16.msra.mxu3 %v7457_v3  ;;  %v8420_v3 = vld [vmem:[%s12708_s1 + $0x9b8] sm:$0xf0] }
 0x2bb   : > { %v12037_v61 = vpop.f32.mrf.mxu3  ;;  %v7553_v41 = vor.u32 %v8420_v3, %v7552_v25  ;;  %5552 = vmatpush.bf16.msra.mxu2 %v7349_v44  ;;  %v8444_v44 = vld [vmem:[%s12708_s1 + $0xa78] sm:$0xf0] }
 0x2bc   : > { %v12039_v14 = vpop.f32.mrf.mxu0  ;;  %v7649_v57 = vor.u32 %v8444_v44, %v7648_v50  ;;  %v7540_v50 = vld [vmem:[%s12708_s1 + $0x998] sm:$0xf]  ;;  %v8417_v44 = vld [vmem:[%s12708_s1 + $0x9a0] sm:$0xf0] }
 0x2bd   : > { %v12041_v31 = vpop.f32.mrf.mxu1  ;;  %5609 = vmatpush.bf16.msra.mxu0 %v7553_v41  ;;  %v7336_v41 = vld [vmem:[%s12708_s1 + $0x800] sm:$0xf]  ;;  %v7541_v32 = vor.u32 %v8417_v44, %v7540_v50 }
 0x2be   : > { %5581 = vmatpush.bf16.msra.mxu3 %v7445_v4  ;;  %5638 = vmatpush.bf16.msra.mxu1 %v7649_v57  ;;  %v7636_v57 = vld [vmem:[%s12708_s1 + $0xa58] sm:$0xf] }
 0x2c0   : > { %v12052_v46 = vpop.f32.mrf.mxu2 }
 0x2c1   : > { %5610 = vmatpush.bf16.msra.mxu0 %v7541_v32  ;;  %v7324_v32 = vld [vmem:[%s12708_s1 + $0x7e8] sm:$0xf] }
 0x2c3   : > { %v12063_v22 = vpop.f32.mrf.mxu3 }
 0x2c4   : > { %v12065_v0 = vpop.f32.mrf.mxu0 }
 0x2c5   : > { %v12067_v35 = vpop.f32.mrf.mxu1  ;;  %5342 = vmatmul.bf16.gmra.mxu2 %v12952_v23 }
 0x2c6   : > { %12951 = vst [vmem:[#allocation15_spill] sm:$0xff] %v12067_v35 }
 0x2c7   : > { %5400 = vmatmul.bf16.gmra.mxu0 %v12903_v21  ;;  %v8366_v21 = vld [vmem:[%s12708_s1 + $0x808] sm:$0xf0] }
 0x2c8   : > { %5371 = vmatmul.bf16.gmra.mxu3 %v12953_v9  ;;  %5429 = vmatmul.bf16.gmra.mxu1 %v12905_v11  ;;  %v12082_v4 = vpop.f32.mrf.mxu2  ;;  %v7432_v11 = vld [vmem:[%s12708_s1 + $0x8c0] sm:$0xf]  ;;  %v8390_v9 = vld [vmem:[%s12708_s1 + $0x8c8] sm:$0xf0]  ;;  %v7337_v3 = vor.u32 %v8366_v21, %v7336_v41 }
 0x2c9   : > { %v7433_v23 = vor.u32 %v8390_v9, %v7432_v11  ;;  %v8602_v41 = vld [vmem:[%s12709_s2] sm:$0x7]  ;;  %v5126_v11 = vadd.f32 %v11895_v43, %v5097_v24  ;;  %v7637_v9 = vor.u32 %v8441_v58, %v7636_v57  ;;  %v7420_v24 = vld [vmem:[%s12708_s1 + $0x8a8] sm:$0xf]  ;;  %v8387_v43 = vld [vmem:[%s12708_s1 + $0x8b0] sm:$0xf0]  ;;  %v5099_v58 = vadd.f32 %v11925_v28, %v11713_v20 }
 0x2ca   : > { %5553 = vmatpush.bf16.msra.mxu2 %v7337_v3  ;;  %v12110_v21 = vperm.slane %v8602_v41, 2  ;;  %v8363_v3 = vld [vmem:[%s12708_s1 + $0x7f0] sm:$0xf0]  ;;  %v7421_v44 = vor.u32 %v8387_v43, %v7420_v24  ;;  %v7528_v41 = vld [vmem:[%s12708_s1 + $0x980] sm:$0xf]  ;;  %v12956_v20 = vld [vmem:[#allocation27_spill] sm:$0xff] }
 0x2cb   : > { %v12093_v25 = vpop.f32.mrf.mxu3  ;;  %5582 = vmatpush.bf16.msra.mxu3 %v7433_v23  ;;  %v7325_v50 = vor.u32 %v8363_v3, %v7324_v32  ;;  %v8414_v57 = vld [vmem:[%s12708_s1 + $0x988] sm:$0xf0]  ;;  %5639 = vmatpush.bf16.msra.mxu1 %v7637_v9  ;;  %v5155_v47 = vadd.f32 %v11859_v54, %v5126_v11  ;;  %v5128_v24 = vadd.f32 %v11927_v13, %v5099_v58  ;;  %v7516_v43 = vld [vmem:[%s12708_s1 + $0x968] sm:$0xf] }
 0x2cc   : > { %v12101_v33 = vpop.f32.mrf.mxu0  ;;  %v5102_v58 = vadd.f32 %v11961_v38, %v11740_v60  ;;  %v8435_v60 = vld [vmem:[%s12708_s1 + $0xa30] sm:$0xf0] }
 0x2cd   : > { %12954 = vst [vmem:[#allocation29_spill] sm:$0xff] %v12101_v33  ;;  %v12105_v56 = vpop.f32.mrf.mxu1  ;;  %v7529_v33 = vor.u32 %v8414_v57, %v7528_v41  ;;  %v5184_v28 = vadd.f32 %v11861_v62, %v5155_v47  ;;  %v8360_v47 = vld [vmem:[%s12708_s1 + $0x7d8] sm:$0xf0] }
 0x2ce   : > { %12955 = vst [vmem:[#allocation17_spill] sm:$0xff] %v12105_v56  ;;  %5554 = vmatpush.bf16.msra.mxu2 %v7325_v50  ;;  %v8384_v62 = vld [vmem:[%s12708_s1 + $0x898] sm:$0xf0]  ;;  %v8411_v50 = vld [vmem:[%s12708_s1 + $0x970] sm:$0xf0] }
 0x2cf   : > { %5583 = vmatpush.bf16.msra.mxu3 %v7421_v44  ;;  %5611 = vmatpush.bf16.msra.mxu0 %v7529_v33  ;;  %v5157_v44 = vadd.f32 %v11897_v8, %v5128_v24  ;;  %v7517_v57 = vor.u32 %v8411_v50, %v7516_v43  ;;  %v7612_v24 = vld [vmem:[%s12708_s1 + $0xa28] sm:$0xf] }
 0x2d0   : > { %v12122_v39 = vpop.f32.mrf.mxu2 }
 0x2d1   : > { %v5186_v8 = vadd.f32 %v11899_v26, %v5157_v44  ;;  %v7396_v26 = vld [vmem:[%s12708_s1 + $0x878] sm:$0xf] }
 0x2d3   : > { %v12133_v23 = vpop.f32.mrf.mxu3  ;;  %5612 = vmatpush.bf16.msra.mxu0 %v7517_v57 }
 0x2d4   : > { %v5270_v56 = vpop.f32.mrf.mxu0 }
 0x2d5   : > { %v5271_v35 = vadd.f32 %v5270_v56, %v12110_v21  ;;  %v5299_v32 = vpop.f32.mrf.mxu1  ;;  %5443 = vmatmul.bf16.vlgmr.msrb.gmra.mxu2 %v9662_v59  ;;  %v7624_v56 = vld [vmem:[%s12708_s1 + $0xa40] sm:$0xf]  ;;  %v8438_v59 = vld [vmem:[%s12708_s1 + $0xa48] sm:$0xf0] }
 0x2d6   : > { %v7625_v54 = vor.u32 %v8438_v59, %v7624_v56 }
 0x2d7   : > { %v12146_v3 = vadd.f32 %v5299_v32, %v5271_v35  ;;  %5501 = vmatmul.bf16.vlgmr.msrb.gmra.mxu0 %v12907_v12  ;;  %v7312_v12 = vld [vmem:[%s12708_s1 + $0x7d0] sm:$0xf] }
 0x2d8   : > { %5472 = vmatmul.bf16.vlgmr.msrb.gmra.mxu3 %v12956_v20  ;;  %5530 = vmatmul.bf16.vlgmr.msrb.gmra.mxu1 %v12909_v18  ;;  %v5212_v33 = vpop.f32.mrf.mxu2  ;;  %v7408_v18 = vld [vmem:[%s12708_s1 + $0x890] sm:$0xf]  ;;  %v7313_v11 = vor.u32 %v8360_v47, %v7312_v12  ;;  %v5131_v12 = vadd.f32 %v11963_v2, %v5102_v58  ;;  %v8357_v2 = vld [vmem:[%s12708_s1 + $0x7c0] sm:$0xf0] }
 0x2d9   : > { %v5213_v13 = vadd.f32 %v5212_v33, %v5184_v28  ;;  %v7409_v9 = vor.u32 %v8384_v62, %v7408_v18  ;;  %5640 = vmatpush.bf16.msra.mxu1 %v7625_v54  ;;  %v7613_v33 = vor.u32 %v8435_v60, %v7612_v24  ;;  %v7300_v54 = vld [vmem:[%s12708_s1 + $0x7b8] sm:$0xf]  ;;  %v8378_v24 = vld [vmem:[%s12708_s1 + $0x868] sm:$0xf0] }
 0x2da   : > { %5555 = vmatpush.bf16.msra.mxu2 %v7313_v11  ;;  %v7301_v62 = vor.u32 %v8357_v2, %v7300_v54  ;;  %v8408_v11 = vld [vmem:[%s12708_s1 + $0x958] sm:$0xf0]  ;;  %v5160_v44 = vadd.f32 %v11929_v30, %v5131_v12  ;;  %v7492_v60 = vld [vmem:[%s12708_s1 + $0x938] sm:$0xf] }
 0x2db   : > { %v5241_v35 = vpop.f32.mrf.mxu3  ;;  %5584 = vmatpush.bf16.msra.mxu3 %v7409_v9 }
 0x2dc   : > { %v5272_v41 = vpop.f32.mrf.mxu0  ;;  %v5242_v32 = vadd.f32 %v5241_v35, %v5213_v13  ;;  %v8381_v13 = vld [vmem:[%s12708_s1 + $0x880] sm:$0xf0]  ;;  %v7504_v35 = vld [vmem:[%s12708_s1 + $0x950] sm:$0xf] }
 0x2dd   : > { %v5273_v20 = vadd.f32 %v5272_v41, %v12110_v21  ;;  %v5301_v28 = vpop.f32.mrf.mxu1  ;;  %5641 = vmatpush.bf16.msra.mxu1 %v7613_v33  ;;  %v7397_v43 = vor.u32 %v8381_v13, %v7396_v26  ;;  %v7505_v50 = vor.u32 %v8408_v11, %v7504_v35  ;;  %v5104_v41 = vadd.f32 %v11993_v5, %v11777_v7  ;;  %v7600_v7 = vld [vmem:[%s12708_s1 + $0xa10] sm:$0xf]  ;;  %v7588_v35 = vld [vmem:[%s12708_s1 + $0x9f8] sm:$0xf] }
 0x2de   : > { %v5784_v56 = vmax.f32 %v5242_v32, 0.0  ;;  %5556 = vmatpush.bf16.msra.mxu2 %v7301_v62  ;;  %v5189_v5 = vadd.f32 %v11931_v1, %v5160_v44  ;;  %v5107_v33 = vadd.f32 %v12035_v49, %v11798_v53  ;;  %v8429_v53 = vld [vmem:[%s12708_s1 + $0xa00] sm:$0xf0] }
 0x2df   : > { %v12181_v59 = vadd.f32 %v5301_v28, %v5273_v20  ;;  %5585 = vmatpush.bf16.msra.mxu3 %v7397_v43  ;;  %5613 = vmatpush.bf16.msra.mxu0 %v7505_v50  ;;  %v5133_v30 = vadd.f32 %v12001_v55, %v5104_v41  ;;  %v7480_v43 = vld [vmem:[%s12708_s1 + $0x920] sm:$0xf]  ;;  %v8402_v50 = vld [vmem:[%s12708_s1 + $0x928] sm:$0xf0]  ;;  %v7276_v41 = vld [vmem:[%s12708_s1 + $0x788] sm:$0xf] }
 0x2e0   : > { %5808 = vst [vmem:[%s10946_s7 + $0x8] sm:$0xff] %v5784_v56  ;;  %v5214_v38 = vpop.f32.mrf.mxu2 }
 0x2e1   : > { %v5215_v47 = vadd.f32 %v5214_v38, %v5186_v8  ;;  %v8405_v38 = vld [vmem:[%s12708_s1 + $0x940] sm:$0xf0] }
 0x2e2   : > { %v7493_v26 = vor.u32 %v8405_v38, %v7492_v60  ;;  %v7564_v38 = vld [vmem:[%s12708_s1 + $0x9c8] sm:$0xf] }
 0x2e3   : > { %v5243_v18 = vpop.f32.mrf.mxu3 }
 0x2e4   : > { %v5275_v9 = vpop.f32.mrf.mxu0  ;;  %v5244_v57 = vadd.f32 %v5243_v18, %v5215_v47  ;;  %v5162_v47 = vadd.f32 %v11965_v52, %v5133_v30  ;;  %5614 = vmatpush.bf16.msra.mxu0 %v7493_v26  ;;  %v5136_v52 = vadd.f32 %v12037_v61, %v5107_v33  ;;  %v8351_v61 = vld [vmem:[%s12708_s1 + $0x790] sm:$0xf0]  ;;  %v7576_v30 = vld [vmem:[%s12708_s1 + $0x9e0] sm:$0xf] }
 0x2e5   : > { %v5276_v58 = vadd.f32 %v5275_v9, %v12110_v21  ;;  %v5304_v32 = vpop.f32.mrf.mxu1  ;;  %5448 = vmatmul.bf16.gmra.mxu2 %v12896_v10  ;;  %v8432_v10 = vld [vmem:[%s12708_s1 + $0xa18] sm:$0xf0]  ;;  %v7589_v9 = vor.u32 %v8429_v53, %v7588_v35  ;;  %v8423_v33 = vld [vmem:[%s12708_s1 + $0x9d0] sm:$0xf0]  ;;  %v5112_v53 = vadd.f32 %v12082_v4, %v11856_v51  ;;  %v7828_v51 = vld [vmem:[%s12708_s1 + $0xbd8] sm:$0xf] }
 0x2e6   : > { %v5787_v20 = vmax.f32 %v5244_v57, 0.0  ;;  %v7601_v12 = vor.u32 %v8432_v10, %v7600_v7  ;;  %v5191_v44 = vadd.f32 %v11967_v29, %v5162_v47  ;;  %v7481_v57 = vor.u32 %v8402_v50, %v7480_v43  ;;  %v8375_v29 = vld [vmem:[%s12708_s1 + $0x850] sm:$0xf0]  ;;  %v7744_v47 = vld [vmem:[%s12708_s1 + $0xb30] sm:$0xf] }
 0x2e7   : > { %v12215_v28 = vadd.f32 %v5304_v32, %v5276_v58  ;;  %5506 = vmatmul.bf16.gmra.mxu0 %v12911_v15  ;;  %v8354_v15 = vld [vmem:[%s12708_s1 + $0x7a8] sm:$0xf0]  ;;  %v7277_v32 = vor.u32 %v8351_v61, %v7276_v41  ;;  %v8465_v41 = vld [vmem:[%s12708_s1 + $0xb20] sm:$0xf0]  ;;  %v7936_v61 = vld [vmem:[%s12708_s1 + $0xcb0] sm:$0xf] }
 0x2e8   : > { %5477 = vmatmul.bf16.gmra.mxu3 %v12898_v42  ;;  %5811 = vst [vmem:[%s10946_s7 + $0x20] sm:$0xff] %v5787_v20  ;;  %5535 = vmatmul.bf16.gmra.mxu1 %v12913_v6  ;;  %v5217_v56 = vpop.f32.mrf.mxu2  ;;  %v7288_v42 = vld [vmem:[%s12708_s1 + $0x7a0] sm:$0xf]  ;;  %v7372_v20 = vld [vmem:[%s12708_s1 + $0x848] sm:$0xf] }
 0x2e9   : > { %v7384_v6 = vld [vmem:[%s12708_s1 + $0x860] sm:$0xf]  ;;  %v5218_v55 = vadd.f32 %v5217_v56, %v5189_v5  ;;  %v7289_v8 = vor.u32 %v8354_v15, %v7288_v42  ;;  %5642 = vmatpush.bf16.msra.mxu1 %v7601_v12  ;;  %v7373_v10 = vor.u32 %v8375_v29, %v7372_v20  ;;  %5615 = vmatpush.bf16.msra.mxu0 %v7481_v57  ;;  %v8426_v56 = vld [vmem:[%s12708_s1 + $0x9e8] sm:$0xf0]  ;;  %v8489_v4 = vld [vmem:[%s12708_s1 + $0xbe0] sm:$0xf0] }
 0x2ea   : > { %v7385_v2 = vor.u32 %v8378_v24, %v7384_v6  ;;  %v5165_v12 = vadd.f32 %v12003_v17, %v5136_v52  ;;  %v7577_v15 = vor.u32 %v8426_v56, %v7576_v30  ;;  %v7468_v6 = vld [vmem:[%s12708_s1 + $0x908] sm:$0xf]  ;;  %v5141_v57 = vadd.f32 %v12093_v25, %v5112_v53  ;;  %v8516_v20 = vld [vmem:[%s12708_s1 + $0xcb8] sm:$0xf0] }
 0x2eb   : > { %v5246_v1 = vpop.f32.mrf.mxu3  ;;  %5557 = vmatpush.bf16.msra.mxu2 %v7289_v8  ;;  %v7937_v30 = vor.u32 %v8516_v20, %v7936_v61  ;;  %v5114_v25 = vadd.f32 %v12122_v39, %v11891_v36  ;;  %v7720_v39 = vld [vmem:[%s12708_s1 + $0xb00] sm:$0xf]  ;;  %v7708_v53 = vld [vmem:[%s12708_s1 + $0xae8] sm:$0xf] }
 0x2ec   : > { %v5277_v54 = vpop.f32.mrf.mxu0  ;;  %v5247_v18 = vadd.f32 %v5246_v1, %v5218_v55  ;;  %5586 = vmatpush.bf16.msra.mxu3 %v7385_v2  ;;  %v8399_v55 = vld [vmem:[%s12708_s1 + $0x910] sm:$0xf0]  ;;  %v5109_v1 = vadd.f32 %v12052_v46, %v11829_v34  ;;  %v7565_v46 = vor.u32 %v8423_v33, %v7564_v38  ;;  %v5194_v26 = vadd.f32 %v12011_v63, %v5165_v12  ;;  %v7924_v38 = vld [vmem:[%s12708_s1 + $0xc98] sm:$0xf] }
 0x2ed   : > { %v5278_v62 = vadd.f32 %v5277_v54, %v12110_v21  ;;  %v5306_v13 = vpop.f32.mrf.mxu1  ;;  %5643 = vmatpush.bf16.msra.mxu1 %v7589_v9  ;;  %v7469_v17 = vor.u32 %v8399_v55, %v7468_v6  ;;  %v5170_v56 = vadd.f32 %v12065_v0, %v5141_v57  ;;  %v8032_v55 = vld [vmem:[%s12708_s1 + $0xd70] sm:$0xf]  ;;  %v8540_v0 = vld [vmem:[%s12708_s1 + $0xd78] sm:$0xf0] }
 0x2ee   : > { %v5790_v49 = vmax.f32 %v5247_v18, 0.0  ;;  %v5138_v2 = vadd.f32 %v12063_v22, %v5109_v1  ;;  %v8492_v22 = vld [vmem:[%s12708_s1 + $0xbf8] sm:$0xf0]  ;;  %v8033_v36 = vor.u32 %v8540_v0, %v8032_v55  ;;  %v5143_v1 = vadd.f32 %v12133_v23, %v5114_v25  ;;  %v8513_v23 = vld [vmem:[%s12708_s1 + $0xca0] sm:$0xf0]  ;;  %v12963_v25 = vld [vmem:[#allocation43_spill] sm:$0xff] }
 0x2ef   : > { %v12257_v11 = vadd.f32 %v5306_v13, %v5278_v62  ;;  %5558 = vmatpush.bf16.msra.mxu2 %v7277_v32  ;;  %5616 = vmatpush.bf16.msra.mxu0 %v7469_v17  ;;  %v7829_v32 = vor.u32 %v8489_v4, %v7828_v51  ;;  %v12958_v17 = vld [vmem:[#allocation40_spill] sm:$0xff]  ;;  %v8510_v4 = vld [vmem:[%s12708_s1 + $0xc88] sm:$0xf0] }
 0x2f0   : > { %5814 = vst [vmem:[%s10946_s7 + $0x38] sm:$0xff] %v5790_v49  ;;  %v5219_v58 = vpop.f32.mrf.mxu2  ;;  %5587 = vmatpush.bf16.msra.mxu3 %v7373_v10  ;;  %v5167_v35 = vadd.f32 %v12039_v14, %v5138_v2  ;;  %v12964_v55 = vld [vmem:[#allocation44_spill] sm:$0xff] }
 0x2f1   : > { %v5220_v5 = vadd.f32 %v5219_v58, %v5191_v44  ;;  %5644 = vmatpush.bf16.msra.mxu1 %v7577_v15  ;;  %v7732_v44 = vld [vmem:[%s12708_s1 + $0xb18] sm:$0xf] }
 0x2f2   : > { %v7733_v14 = vor.u32 %v8465_v41, %v7732_v44  ;;  %v5196_v58 = vadd.f32 %v12041_v31, %v5167_v35  ;;  %v8483_v44 = vld [vmem:[%s12708_s1 + $0xbb0] sm:$0xf0]  ;;  %v7912_v41 = vld [vmem:[%s12708_s1 + $0xc80] sm:$0xf] }
 0x2f3   : > { %v5248_v7 = vpop.f32.mrf.mxu3  ;;  %5725 = vmatpush.bf16.msrb.mxu0 %v7937_v30 }
 0x2f4   : > { %v5280_v42 = vpop.f32.mrf.mxu0  ;;  %v5249_v8 = vadd.f32 %v5248_v7, %v5220_v5 }
 0x2f5   : > { %v5281_v24 = vadd.f32 %v5280_v42, %v12110_v21  ;;  %v5309_v60 = vpop.f32.mrf.mxu1  ;;  %5453 = vmatmul.bf16.gmra.mxu2 %v12900_v27  ;;  %v8468_v27 = vld [vmem:[%s12708_s1 + $0xb38] sm:$0xf0]  ;;  %5645 = vmatpush.bf16.msra.mxu1 %v7565_v46 }
 0x2f6   : > { %v5793_v54 = vmax.f32 %v5249_v8, 0.0  ;;  %v7745_v18 = vor.u32 %v8468_v27, %v7744_v47  ;;  %v12957_v8 = vld [vmem:[#allocation15_spill] sm:$0xff]  ;;  %v12959_v27 = vld [vmem:[#allocation29_spill] sm:$0xff] }
 0x2f7   : > { %v12303_v34 = vadd.f32 %v5309_v60, %v5281_v24  ;;  %5511 = vmatmul.bf16.gmra.mxu0 %v12915_v19  ;;  %v5199_v24 = vadd.f32 %v12957_v8, %v5170_v56  ;;  %v8486_v60 = vld [vmem:[%s12708_s1 + $0xbc8] sm:$0xf0] }
 0x2f8   : > { %5482 = vmatmul.bf16.gmra.mxu3 %v12902_v48  ;;  %5817 = vst [vmem:[%s10946_s7 + $0x50] sm:$0xff] %v5793_v54  ;;  %5540 = vmatmul.bf16.gmra.mxu1 %v12917_v40  ;;  %v5222_v19 = vpop.f32.mrf.mxu2  ;;  %v7840_v48 = vld [vmem:[%s12708_s1 + $0xbf0] sm:$0xf]  ;;  %v8534_v56 = vld [vmem:[%s12708_s1 + $0xd48] sm:$0xf0] }
 0x2f9   : > { %v5223_v40 = vadd.f32 %v5222_v19, %v5194_v26  ;;  %v7841_v62 = vor.u32 %v8492_v22, %v7840_v48  ;;  %5667 = vmatpush.bf16.msrb.mxu2 %v7745_v18  ;;  %5754 = vmatpush.bf16.msrb.mxu1 %v8033_v36  ;;  %v7925_v26 = vor.u32 %v8513_v23, %v7924_v38  ;;  %v8480_v36 = vld [vmem:[%s12708_s1 + $0xb98] sm:$0xf0]  ;;  %v8531_v23 = vld [vmem:[%s12708_s1 + $0xd30] sm:$0xf0] }
 0x2fa   : > { %v5172_v19 = vadd.f32 %v12959_v27, %v5143_v1  ;;  %v8507_v1 = vld [vmem:[%s12708_s1 + $0xc70] sm:$0xf0] }
 0x2fb   : > { %v5251_v63 = vpop.f32.mrf.mxu3  ;;  %5696 = vmatpush.bf16.msrb.mxu3 %v7841_v62  ;;  %5726 = vmatpush.bf16.msrb.mxu0 %v7925_v26  ;;  %v8020_v62 = vld [vmem:[%s12708_s1 + $0xd58] sm:$0xf] }
 0x2fc   : > { %v5282_v13 = vpop.f32.mrf.mxu0  ;;  %v5252_v49 = vadd.f32 %v5251_v63, %v5223_v40  ;;  %v7780_v26 = vld [vmem:[%s12708_s1 + $0xb78] sm:$0xf] }
 0x2fd   : > { %v5283_v9 = vadd.f32 %v5282_v13, %v12110_v21  ;;  %v5311_v52 = vpop.f32.mrf.mxu1  ;;  %5668 = vmatpush.bf16.msrb.mxu2 %v7733_v14  ;;  %v8537_v13 = vld [vmem:[%s12708_s1 + $0xd60] sm:$0xf0] }
 0x2fe   : > { %v5796_v43 = vmax.f32 %v5252_v49, 0.0  ;;  %v8021_v35 = vor.u32 %v8537_v13, %v8020_v62  ;;  %v7804_v49 = vld [vmem:[%s12708_s1 + $0xba8] sm:$0xf] }
 0x2ff   : > { %v12327_v50 = vadd.f32 %v5311_v52, %v5283_v9  ;;  %5697 = vmatpush.bf16.msrb.mxu3 %v7829_v32  ;;  %v12960_v9 = vld [vmem:[#allocation17_spill] sm:$0xff]  ;;  %v7805_v51 = vor.u32 %v8483_v44, %v7804_v49  ;;  %v7984_v44 = vld [vmem:[%s12708_s1 + $0xd10] sm:$0xf] }
 0x300   : > { %5820 = vst [vmem:[%s10946_s7 + $0x68] sm:$0xff] %v5796_v43  ;;  %v5224_v29 = vpop.f32.mrf.mxu2  ;;  %v5201_v52 = vadd.f32 %v12960_v9, %v5172_v19  ;;  %5755 = vmatpush.bf16.msrb.mxu1 %v8021_v35 }
 0x301   : > { %v5225_v5 = vadd.f32 %v5224_v29, %v5196_v58  ;;  %v7913_v58 = vor.u32 %v8510_v4, %v7912_v41  ;;  %v12967_v41 = vld [vmem:[#allocation47_spill] sm:$0xff] }
 0x302   : > { %v8450_v4 = vld [vmem:[%s12708_s1 + $0xaa8] sm:$0xf0] }
 0x303   : > { %v5253_v7 = vpop.f32.mrf.mxu3  ;;  %5727 = vmatpush.bf16.msrb.mxu0 %v7913_v58 }
 0x304   : > { %v5285_v10 = vpop.f32.mrf.mxu0  ;;  %v5254_v31 = vadd.f32 %v5253_v7, %v5225_v5  ;;  %v12961_v5 = vld [vmem:[#allocation41_spill] sm:$0xff]  ;;  %v12962_v7 = vld [vmem:[#allocation42_spill] sm:$0xff] }
 0x305   : > { %v5286_v12 = vadd.f32 %v5285_v10, %v12110_v21  ;;  %v5314_v42 = vpop.f32.mrf.mxu1  ;;  %5458 = vmatmul.bf16.gmra.mxu2 %v12904_v45  ;;  %v8462_v45 = vld [vmem:[%s12708_s1 + $0xb08] sm:$0xf0]  ;;  %v8008_v10 = vld [vmem:[%s12708_s1 + $0xd40] sm:$0xf] }
 0x306   : > { %v5799_v15 = vmax.f32 %v5254_v31, 0.0  ;;  %v8009_v31 = vor.u32 %v8534_v56, %v8008_v10 }
 0x307   : > { %v12355_v6 = vadd.f32 %v5314_v42, %v5286_v12  ;;  %5516 = vmatmul.bf16.gmra.mxu0 %v12919_v16  ;;  %v7816_v16 = vld [vmem:[%s12708_s1 + $0xbc0] sm:$0xf]  ;;  %v7696_v12 = vld [vmem:[%s12708_s1 + $0xad0] sm:$0xf]  ;;  %v8456_v42 = vld [vmem:[%s12708_s1 + $0xad8] sm:$0xf0] }
 0x308   : > { %5487 = vmatmul.bf16.gmra.mxu3 %v12906_v37  ;;  %5823 = vst [vmem:[%s10946_s7 + $0x80] sm:$0xff] %v5799_v15  ;;  %5545 = vmatmul.bf16.gmra.mxu1 %v12958_v17  ;;  %v7721_v37 = vor.u32 %v8462_v45, %v7720_v39  ;;  %v5227_v33 = vpop.f32.mrf.mxu2  ;;  %v7817_v54 = vor.u32 %v8486_v60, %v7816_v16  ;;  %v7792_v15 = vld [vmem:[%s12708_s1 + $0xb90] sm:$0xf]  ;;  %v7900_v39 = vld [vmem:[%s12708_s1 + $0xc68] sm:$0xf] }
 0x309   : > { %v5228_v46 = vadd.f32 %v5227_v33, %v5199_v24  ;;  %v7697_v0 = vor.u32 %v8456_v42, %v7696_v12  ;;  %5756 = vmatpush.bf16.msrb.mxu1 %v8009_v31  ;;  %v7793_v16 = vor.u32 %v8480_v36, %v7792_v15  ;;  %v7901_v17 = vor.u32 %v8507_v1, %v7900_v39  ;;  %v7972_v15 = vld [vmem:[%s12708_s1 + $0xcf8] sm:$0xf]  ;;  %v8447_v39 = vld [vmem:[%s12708_s1 + $0xa90] sm:$0xf0] }
 0x30a   : > { %5669 = vmatpush.bf16.msrb.mxu2 %v7721_v37  ;;  %5698 = vmatpush.bf16.msrb.mxu3 %v7817_v54  ;;  %v7996_v54 = vld [vmem:[%s12708_s1 + $0xd28] sm:$0xf]  ;;  %v8471_v1 = vld [vmem:[%s12708_s1 + $0xb50] sm:$0xf0] }
 0x30b   : > { %v5256_v2 = vpop.f32.mrf.mxu3  ;;  %5728 = vmatpush.bf16.msrb.mxu0 %v7901_v17 }
 0x30c   : > { %v5287_v47 = vpop.f32.mrf.mxu0  ;;  %v5257_v18 = vadd.f32 %v5256_v2, %v5228_v46  ;;  %v7997_v46 = vor.u32 %v8531_v23, %v7996_v54  ;;  %v8453_v2 = vld [vmem:[%s12708_s1 + $0xac0] sm:$0xf0]  ;;  %v8522_v54 = vld [vmem:[%s12708_s1 + $0xce8] sm:$0xf0] }
 0x30d   : > { %v5288_v48 = vadd.f32 %v5287_v47, %v12110_v21  ;;  %v5316_v22 = vpop.f32.mrf.mxu1  ;;  %v8459_v21 = vld [vmem:[%s12708_s1 + $0xaf0] sm:$0xf0]  ;;  %v8477_v47 = vld [vmem:[%s12708_s1 + $0xb80] sm:$0xf0] }
 0x30e   : > { %v5802_v40 = vmax.f32 %v5257_v18, 0.0  ;;  %v7709_v43 = vor.u32 %v8459_v21, %v7708_v53  ;;  %5699 = vmatpush.bf16.msrb.mxu3 %v7805_v51  ;;  %v7781_v19 = vor.u32 %v8477_v47, %v7780_v26  ;;  %v7888_v18 = vld [vmem:[%s12708_s1 + $0xc50] sm:$0xf]  ;;  %5757 = vmatpush.bf16.msrb.mxu1 %v7997_v46  ;;  %v7672_v51 = vld [vmem:[%s12708_s1 + $0xaa0] sm:$0xf] }
 0x30f   : > { %v12389_v63 = vadd.f32 %v5316_v22, %v5288_v48  ;;  %v8504_v48 = vld [vmem:[%s12708_s1 + $0xc58] sm:$0xf0]  ;;  %v7673_v58 = vor.u32 %v8450_v4, %v7672_v51  ;;  %v7852_v26 = vld [vmem:[%s12708_s1 + $0xc08] sm:$0xf]  ;;  %v8495_v47 = vld [vmem:[%s12708_s1 + $0xc10] sm:$0xf0] }
 0x310   : > { %5826 = vst [vmem:[%s10946_s7 + $0x98] sm:$0xff] %v5802_v40  ;;  %v5229_v14 = vpop.f32.mrf.mxu2  ;;  %5670 = vmatpush.bf16.msrb.mxu2 %v7709_v43  ;;  %v7889_v62 = vor.u32 %v8504_v48, %v7888_v18  ;;  %v12966_v43 = vld [vmem:[#allocation46_spill] sm:$0xff]  ;;  %v8519_v48 = vld [vmem:[%s12708_s1 + $0xcd0] sm:$0xf0] }
 0x311   : > { %v5230_v61 = vadd.f32 %v5229_v14, %v5201_v52  ;;  %v12965_v52 = vld [vmem:[#allocation45_spill] sm:$0xff] }
 0x312   : > { %5700 = vmatpush.bf16.msrb.mxu3 %v7793_v16  ;;  %5729 = vmatpush.bf16.msrb.mxu0 %v7889_v62  ;;  %v12969_v62 = vld [vmem:[#allocation49_spill] sm:$0xff] }
 0x313   : > { %v5258_v57 = vpop.f32.mrf.mxu3 }
 0x314   : > { %v5386_v32 = vpop.f32.mrf.mxu0  ;;  %v5259_v20 = vadd.f32 %v5258_v57, %v5230_v61  ;;  %5671 = vmatpush.bf16.msrb.mxu2 %v7697_v0  ;;  %v7768_v61 = vld [vmem:[%s12708_s1 + $0xb60] sm:$0xf]  ;;  %v12968_v57 = vld [vmem:[#allocation48_spill] sm:$0xff] }
 0x315   : > { %v5415_v29 = vpop.f32.mrf.mxu1  ;;  %5559 = vmatmul.bf16.vlgmr.msra.gmra.mxu2 %v12961_v5 }
 0x316   : > { %v5805_v30 = vmax.f32 %v5259_v20, 0.0  ;;  %5701 = vmatpush.bf16.msrb.mxu3 %v7781_v19  ;;  %v7876_v20 = vld [vmem:[%s12708_s1 + $0xc38] sm:$0xf]  ;;  %v7853_v19 = vor.u32 %v8495_v47, %v7852_v26 }
 0x317   : > { %5617 = vmatmul.bf16.vlgmr.msra.gmra.mxu0 %v12962_v7 }
 0x318   : > { %5588 = vmatmul.bf16.vlgmr.msra.gmra.mxu3 %v12963_v25  ;;  %5829 = vst [vmem:[%s10946_s7 + $0xb0] sm:$0xff] %v5805_v30  ;;  %5646 = vmatmul.bf16.vlgmr.msra.gmra.mxu1 %v12964_v55  ;;  %v5328_v45 = vpop.f32.mrf.mxu2  ;;  %v8525_v55 = vld [vmem:[%s12708_s1 + $0xd00] sm:$0xf0] }
 0x319   : > { %v5329_v8 = vadd.f32 %v5328_v45, %v12146_v3  ;;  %v7684_v3 = vld [vmem:[%s12708_s1 + $0xab8] sm:$0xf]  ;;  %v7973_v36 = vor.u32 %v8525_v55, %v7972_v15  ;;  %v7756_v45 = vld [vmem:[%s12708_s1 + $0xb48] sm:$0xf] }
 0x31a   : > { %v7685_v27 = vor.u32 %v8453_v2, %v7684_v3  ;;  %v7757_v17 = vor.u32 %v8471_v1, %v7756_v45 }
 0x31b   : > { %v5357_v24 = vpop.f32.mrf.mxu3 }
 0x31c   : > { %v5388_v37 = vpop.f32.mrf.mxu0  ;;  %v5358_v60 = vadd.f32 %v5357_v24, %v5329_v8  ;;  %5672 = vmatpush.bf16.msrb.mxu2 %v7685_v27  ;;  %v7864_v8 = vld [vmem:[%s12708_s1 + $0xc20] sm:$0xf]  ;;  %v8498_v24 = vld [vmem:[%s12708_s1 + $0xc28] sm:$0xf0] }
 0x31d   : > { %v5417_v38 = vpop.f32.mrf.mxu1 }
 0x31e   : > { %v5387_v33 = vadd.f32 %v5386_v32, %v5358_v60  ;;  %v8474_v32 = vld [vmem:[%s12708_s1 + $0xb68] sm:$0xf0] }
 0x31f   : > { %v7769_v7 = vor.u32 %v8474_v32, %v7768_v61 }
 0x320   : > { %v12471_v22 = vadd.f32 %v5415_v29, %v5387_v33  ;;  %v5330_v40 = vpop.f32.mrf.mxu2  ;;  %v8501_v29 = vld [vmem:[%s12708_s1 + $0xc40] sm:$0xf0]  ;;  %5673 = vmatpush.bf16.msrb.mxu2 %v7673_v58  ;;  %v7960_v33 = vld [vmem:[%s12708_s1 + $0xce0] sm:$0xf] }
 0x321   : > { %v5331_v13 = vadd.f32 %v5330_v40, %v12181_v59  ;;  %v8528_v59 = vld [vmem:[%s12708_s1 + $0xd18] sm:$0xf0]  ;;  %v7877_v10 = vor.u32 %v8501_v29, %v7876_v20  ;;  %5702 = vmatpush.bf16.msrb.mxu3 %v7769_v7  ;;  %v7961_v46 = vor.u32 %v8522_v54, %v7960_v33  ;;  %v12974_v7 = vld [vmem:[#allocation55_spill] sm:$0xff] }
 0x322   : > { %v7985_v14 = vor.u32 %v8528_v59, %v7984_v44 }
 0x323   : > { %v5359_v35 = vpop.f32.mrf.mxu3  ;;  %5730 = vmatpush.bf16.msrb.mxu0 %v7877_v10  ;;  %v12976_v10 = vld [vmem:[#allocation56_spill] sm:$0xff] }
 0x324   : > { %v5391_v53 = vpop.f32.mrf.mxu0  ;;  %v5360_v21 = vadd.f32 %v5359_v35, %v5331_v13  ;;  %5758 = vmatpush.bf16.msrb.mxu1 %v7985_v14  ;;  %v12970_v13 = vld [vmem:[#allocation50_spill] sm:$0xff] }
 0x325   : > { %v5420_v49 = vpop.f32.mrf.mxu1  ;;  %5564 = vmatmul.bf16.gmra.mxu2 %v12965_v52  ;;  %5703 = vmatpush.bf16.msrb.mxu3 %v7757_v17  ;;  %v12978_v17 = vld [vmem:[#allocation58_spill] sm:$0xff] }
 0x326   : > { %v5389_v9 = vadd.f32 %v5388_v37, %v5360_v21  ;;  %v7865_v37 = vor.u32 %v8498_v24, %v7864_v8  ;;  %v12972_v21 = vld [vmem:[#allocation52_spill] sm:$0xff]  ;;  %v12977_v24 = vld [vmem:[#allocation57_spill] sm:$0xff] }
 0x327   : > { %5622 = vmatmul.bf16.gmra.mxu0 %v12966_v43 }
 0x328   : > { %5593 = vmatmul.bf16.gmra.mxu3 %v12967_v41  ;;  %5651 = vmatmul.bf16.gmra.mxu1 %v12968_v57  ;;  %v12502_v30 = vadd.f32 %v5417_v38, %v5389_v9  ;;  %v5333_v5 = vpop.f32.mrf.mxu2 }
 0x329   : > { %v5334_v56 = vadd.f32 %v5333_v5, %v12215_v28  ;;  %v7660_v28 = vld [vmem:[%s12708_s1 + $0xa88] sm:$0xf]  ;;  %5759 = vmatpush.bf16.msrb.mxu1 %v7973_v36  ;;  %5731 = vmatpush.bf16.msrb.mxu0 %v7865_v37  ;;  %v12973_v5 = vld [vmem:[#allocation53_spill] sm:$0xff]  ;;  %v12980_v37 = vld [vmem:[#allocation60_spill] sm:$0xff] }
 0x32a   : > { %v7661_v16 = vor.u32 %v8447_v39, %v7660_v28 }
 0x32b   : > { %v5362_v25 = vpop.f32.mrf.mxu3 }
 0x32c   : > { %v5393_v31 = vpop.f32.mrf.mxu0  ;;  %v5363_v12 = vadd.f32 %v5362_v25, %v5334_v56  ;;  %5674 = vmatpush.bf16.msrb.mxu2 %v7661_v16 }
 0x32d   : > { %v5422_v42 = vpop.f32.mrf.mxu1  ;;  %5760 = vmatpush.bf16.msrb.mxu1 %v7961_v46  ;;  %5732 = vmatpush.bf16.msrb.mxu0 %v7853_v19 }
 0x32e   : > { %v5392_v0 = vadd.f32 %v5391_v53, %v5363_v12  ;;  %v12971_v53 = vld [vmem:[#allocation51_spill] sm:$0xff] }
 0x330   : > { %v12529_v60 = vadd.f32 %v5420_v49, %v5392_v0  ;;  %v5335_v38 = vpop.f32.mrf.mxu2 }
 0x331   : > { %v5336_v23 = vadd.f32 %v5335_v38, %v12257_v11  ;;  %v7948_v11 = vld [vmem:[%s12708_s1 + $0xcc8] sm:$0xf] }
 0x332   : > { %v7949_v35 = vor.u32 %v8519_v48, %v7948_v11 }
 0x333   : > { %v5364_v3 = vpop.f32.mrf.mxu3 }
 0x334   : > { %v5396_v2 = vpop.f32.mrf.mxu0  ;;  %v5365_v27 = vadd.f32 %v5364_v3, %v5336_v23  ;;  %5761 = vmatpush.bf16.msrb.mxu1 %v7949_v35  ;;  %v12984_v35 = vld [vmem:[#allocation64_spill] sm:$0xff] }
 0x335   : > { %v5425_v18 = vpop.f32.mrf.mxu1  ;;  %5569 = vmatmul.bf16.gmra.mxu2 %v12969_v62  ;;  %v12981_v62 = vld [vmem:[#allocation61_spill] sm:$0xff] }
 0x336   : > { %v5394_v40 = vadd.f32 %v5393_v31, %v5365_v27 }
 0x337   : > { %5627 = vmatmul.bf16.gmra.mxu0 %v12970_v13  ;;  %v12982_v13 = vld [vmem:[#allocation62_spill] sm:$0xff] }
 0x338   : > { %5598 = vmatmul.bf16.gmra.mxu3 %v12971_v53  ;;  %5656 = vmatmul.bf16.gmra.mxu1 %v12972_v21  ;;  %v12554_v49 = vadd.f32 %v5422_v42, %v5394_v40  ;;  %v5338_v9 = vpop.f32.mrf.mxu2 }
 0x339   : > { %v5339_v52 = vadd.f32 %v5338_v9, %v12303_v34  ;;  %v12975_v34 = vld [vmem:[#allocation54_spill] sm:$0xff] }
 0x33b   : > { %v5367_v43 = vpop.f32.mrf.mxu3 }
 0x33c   : > { %v5398_v44 = vpop.f32.mrf.mxu0  ;;  %v5368_v59 = vadd.f32 %v5367_v43, %v5339_v52 }
 0x33d   : > { %v5427_v41 = vpop.f32.mrf.mxu1 }
 0x33e   : > { %v5397_v14 = vadd.f32 %v5396_v2, %v5368_v59 }
 0x340   : > { %v12557_v51 = vadd.f32 %v5425_v18, %v5397_v14  ;;  %v5340_v4 = vpop.f32.mrf.mxu2 }
 0x341   : > { %v5341_v61 = vadd.f32 %v5340_v4, %v12327_v50 }
 0x343   : > { %v5369_v57 = vpop.f32.mrf.mxu3 }
 0x344   : > { %v5401_v58 = vpop.f32.mrf.mxu0  ;;  %v5370_v32 = vadd.f32 %v5369_v57, %v5341_v61 }
 0x345   : > { %v5430_v20 = vpop.f32.mrf.mxu1  ;;  %5574 = vmatmul.bf16.gmra.mxu2 %v12973_v5  ;;  %v12986_v5 = vld [vmem:[#allocation66_spill] sm:$0xff] }
 0x346   : > { %v5399_v29 = vadd.f32 %v5398_v44, %v5370_v32 }
 0x347   : > { %5632 = vmatmul.bf16.gmra.mxu0 %v12974_v7  ;;  %v12988_v7 = vld [vmem:[#allocation68_spill] sm:$0xff] }
 0x348   : > { %5603 = vmatmul.bf16.gmra.mxu3 %v12975_v34  ;;  %5661 = vmatmul.bf16.gmra.mxu1 %v12976_v10  ;;  %v12564_v56 = vadd.f32 %v5427_v41, %v5399_v29  ;;  %v5343_v25 = vpop.f32.mrf.mxu2  ;;  %v12985_v29 = vld [vmem:[#allocation65_spill] sm:$0xff] }
 0x349   : > { %v5344_v31 = vadd.f32 %v5343_v25, %v12355_v6  ;;  %v12979_v6 = vld [vmem:[#allocation59_spill] sm:$0xff] }
 0x34b   : > { %v5372_v12 = vpop.f32.mrf.mxu3 }
 0x34c   : > { %v5403_v50 = vpop.f32.mrf.mxu0  ;;  %v5373_v42 = vadd.f32 %v5372_v12, %v5344_v31 }
 0x34d   : > { %v5432_v15 = vpop.f32.mrf.mxu1 }
 0x34e   : > { %v5402_v55 = vadd.f32 %v5401_v58, %v5373_v42 }
 0x350   : > { %v12567_v0 = vadd.f32 %v5430_v20, %v5402_v55  ;;  %v5345_v36 = vpop.f32.mrf.mxu2 }
 0x351   : > { %v5346_v28 = vadd.f32 %v5345_v36, %v12389_v63 }
 0x353   : > { %v5374_v39 = vpop.f32.mrf.mxu3 }
 0x354   : > { %v5502_v45 = vpop.f32.mrf.mxu0  ;;  %v5375_v16 = vadd.f32 %v5374_v39, %v5346_v28 }
 0x355   : > { %v5531_v1 = vpop.f32.mrf.mxu1  ;;  %5675 = vmatmul.bf16.vlgmr.msrb.gmra.mxu2 %v12977_v24  ;;  %v12990_v24 = vld [vmem:[#allocation70_spill] sm:$0xff] }
 0x356   : > { %v5404_v8 = vadd.f32 %v5403_v50, %v5375_v16 }
 0x357   : > { %5733 = vmatmul.bf16.vlgmr.msrb.gmra.mxu0 %v12978_v17  ;;  %v12992_v17 = vld [vmem:[#allocation72_spill] sm:$0xff] }
 0x358   : > { %5704 = vmatmul.bf16.vlgmr.msrb.gmra.mxu3 %v12979_v6  ;;  %5762 = vmatmul.bf16.vlgmr.msrb.gmra.mxu1 %v12980_v37  ;;  %v12574_v38 = vadd.f32 %v5432_v15, %v5404_v8  ;;  %v5444_v33 = vpop.f32.mrf.mxu2  ;;  %v12989_v8 = vld [vmem:[#allocation69_spill] sm:$0xff] }
 0x359   : > { %v5445_v54 = vadd.f32 %v5444_v33, %v12471_v22  ;;  %v12983_v22 = vld [vmem:[#allocation63_spill] sm:$0xff] }
 0x35b   : > { %v5473_v23 = vpop.f32.mrf.mxu3 }
 0x35c   : > { %v5504_v63 = vpop.f32.mrf.mxu0  ;;  %v5474_v3 = vadd.f32 %v5473_v23, %v5445_v54 }
 0x35d   : > { %v5533_v46 = vpop.f32.mrf.mxu1 }
 0x35e   : > { %v5503_v2 = vadd.f32 %v5502_v45, %v5474_v3 }
 0x360   : > { %v12577_v26 = vadd.f32 %v5531_v1, %v5503_v2  ;;  %v5446_v47 = vpop.f32.mrf.mxu2 }
 0x361   : > { %v5447_v27 = vadd.f32 %v5446_v47, %v12502_v30 }
 0x363   : > { %v5475_v19 = vpop.f32.mrf.mxu3 }
 0x364   : > { %v5507_v18 = vpop.f32.mrf.mxu0  ;;  %v5476_v11 = vadd.f32 %v5475_v19, %v5447_v27 }
 0x365   : > { %v5536_v48 = vpop.f32.mrf.mxu1  ;;  %5680 = vmatmul.bf16.gmra.mxu2 %v12981_v62 }
 0x366   : > { %v5505_v40 = vadd.f32 %v5504_v63, %v5476_v11 }
 0x367   : > { %5738 = vmatmul.bf16.gmra.mxu0 %v12982_v13 }
 0x368   : > { %5709 = vmatmul.bf16.gmra.mxu3 %v12983_v22  ;;  %5767 = vmatmul.bf16.gmra.mxu1 %v12984_v35  ;;  %v12584_v53 = vadd.f32 %v5533_v46, %v5505_v40  ;;  %v5449_v21 = vpop.f32.mrf.mxu2 }
 0x369   : > { %v5450_v9 = vadd.f32 %v5449_v21, %v12529_v60  ;;  %v12987_v60 = vld [vmem:[#allocation67_spill] sm:$0xff] }
 0x36b   : > { %v5478_v52 = vpop.f32.mrf.mxu3 }
 0x36c   : > { %v5509_v30 = vpop.f32.mrf.mxu0  ;;  %v5479_v43 = vadd.f32 %v5478_v52, %v5450_v9 }
 0x36d   : > { %v5538_v44 = vpop.f32.mrf.mxu1 }
 0x36e   : > { %v5508_v59 = vadd.f32 %v5507_v18, %v5479_v43 }
 0x370   : > { %v12587_v41 = vadd.f32 %v5536_v48, %v5508_v59  ;;  %v5451_v14 = vpop.f32.mrf.mxu2 }
 0x371   : > { %v5452_v4 = vadd.f32 %v5451_v14, %v12554_v49 }
 0x373   : > { %v5480_v61 = vpop.f32.mrf.mxu3 }
 0x374   : > { %v5512_v57 = vpop.f32.mrf.mxu0  ;;  %v5481_v58 = vadd.f32 %v5480_v61, %v5452_v4 }
 0x375   : > { %v5541_v32 = vpop.f32.mrf.mxu1  ;;  %5685 = vmatmul.bf16.gmra.mxu2 %v12985_v29 }
 0x376   : > { %v5510_v20 = vadd.f32 %v5509_v30, %v5481_v58 }
 0x377   : > { %5743 = vmatmul.bf16.gmra.mxu0 %v12986_v5 }
 0x378   : > { %5714 = vmatmul.bf16.gmra.mxu3 %v12987_v60  ;;  %5772 = vmatmul.bf16.gmra.mxu1 %v12988_v7  ;;  %v12594_v34 = vadd.f32 %v5538_v44, %v5510_v20  ;;  %v5454_v10 = vpop.f32.mrf.mxu2 }
 0x379   : > { %v5455_v25 = vadd.f32 %v5454_v10, %v12557_v51  ;;  %v12991_v51 = vld [vmem:[#allocation71_spill] sm:$0xff] }
 0x37b   : > { %v5483_v31 = vpop.f32.mrf.mxu3 }
 0x37c   : > { %v5514_v49 = vpop.f32.mrf.mxu0  ;;  %v5484_v12 = vadd.f32 %v5483_v31, %v5455_v25 }
 0x37d   : > { %v5543_v50 = vpop.f32.mrf.mxu1 }
 0x37e   : > { %v5513_v42 = vadd.f32 %v5512_v57, %v5484_v12 }
 0x380   : > { %v12597_v15 = vadd.f32 %v5541_v32, %v5513_v42  ;;  %v5456_v55 = vpop.f32.mrf.mxu2 }
 0x381   : > { %v5457_v36 = vadd.f32 %v5456_v55, %v12564_v56 }
 0x383   : > { %v5485_v28 = vpop.f32.mrf.mxu3 }
 0x384   : > { %v5517_v39 = vpop.f32.mrf.mxu0  ;;  %v5486_v45 = vadd.f32 %v5485_v28, %v5457_v36 }
 0x385   : > { %v5546_v16 = vpop.f32.mrf.mxu1  ;;  %5690 = vmatmul.bf16.gmra.mxu2 %v12989_v8 }
 0x386   : > { %v5515_v1 = vadd.f32 %v5514_v49, %v5486_v45 }
 0x387   : > { %5748 = vmatmul.bf16.gmra.mxu0 %v12990_v24 }
 0x388   : > { %5719 = vmatmul.bf16.gmra.mxu3 %v12991_v51  ;;  %5777 = vmatmul.bf16.gmra.mxu1 %v12992_v17  ;;  %v12604_v6 = vadd.f32 %v5543_v50, %v5515_v1  ;;  %v5459_v37 = vpop.f32.mrf.mxu2 }
 0x389   : > { %v5460_v33 = vadd.f32 %v5459_v37, %v12567_v0 }
 0x38b   : > { %v5488_v54 = vpop.f32.mrf.mxu3 }
 0x38c   : > { %v5519_v56 = vpop.f32.mrf.mxu0  ;;  %v5489_v23 = vadd.f32 %v5488_v54, %v5460_v33 }
 0x38d   : > { %v5548_v63 = vpop.f32.mrf.mxu1 }
 0x38e   : > { %v5518_v3 = vadd.f32 %v5517_v39, %v5489_v23 }
 0x390   : > { %v12607_v46 = vadd.f32 %v5546_v16, %v5518_v3  ;;  %v5461_v2 = vpop.f32.mrf.mxu2 }
 0x391   : > { %v5462_v47 = vadd.f32 %v5461_v2, %v12574_v38 }
 0x393   : > { %v5490_v27 = vpop.f32.mrf.mxu3 }
 0x394   : > { %v5618_v19 = vpop.f32.mrf.mxu0  ;;  %v5491_v18 = vadd.f32 %v5490_v27, %v5462_v47 }
 0x395   : > { %v5647_v11 = vpop.f32.mrf.mxu1 }
 0x396   : > { %v5520_v48 = vadd.f32 %v5519_v56, %v5491_v18 }
 0x398   : > { %v12610_v40 = vadd.f32 %v5548_v63, %v5520_v48  ;;  %v5560_v62 = vpop.f32.mrf.mxu2 }
 0x399   : > { %v5561_v49 = vadd.f32 %v5560_v62, %v12577_v26 }
 0x39b   : > { %v5589_v13 = vpop.f32.mrf.mxu3 }
 0x39c   : > { %v5620_v0 = vpop.f32.mrf.mxu0  ;;  %v5590_v50 = vadd.f32 %v5589_v13, %v5561_v49 }
 0x39d   : > { %v5649_v22 = vpop.f32.mrf.mxu1 }
 0x39e   : > { %v5619_v28 = vadd.f32 %v5618_v19, %v5590_v50 }
 0x3a0   : > { %v5562_v35 = vpop.f32.mrf.mxu2  ;;  %v5648_v1 = vadd.f32 %v5647_v11, %v5619_v28 }
 0x3a1   : > { %v5563_v39 = vadd.f32 %v5562_v35, %v12584_v53 }
 0x3a3   : > { %v5591_v21 = vpop.f32.mrf.mxu3 }
 0x3a4   : > { %v5623_v9 = vpop.f32.mrf.mxu0  ;;  %v5592_v16 = vadd.f32 %v5591_v21, %v5563_v39 }
 0x3a5   : > { %v5652_v52 = vpop.f32.mrf.mxu1 }
 0x3a6   : > { %v5621_v26 = vadd.f32 %v5620_v0, %v5592_v16 }
 0x3a8   : > { %v5565_v30 = vpop.f32.mrf.mxu2  ;;  %v5650_v3 = vadd.f32 %v5649_v22, %v5621_v26 }
 0x3a9   : > { %v5566_v37 = vadd.f32 %v5565_v30, %v12587_v41 }
 0x3ab   : > { %v5594_v43 = vpop.f32.mrf.mxu3 }
 0x3ac   : > { %v5625_v44 = vpop.f32.mrf.mxu0  ;;  %v5595_v23 = vadd.f32 %v5594_v43, %v5566_v37 }
 0x3ad   : > { %v12612_v59 = vpop.f32.mrf.mxu1 }
 0x3ae   : > { %v5624_v18 = vadd.f32 %v5623_v9, %v5595_v23 }
 0x3b0   : > { %v5567_v38 = vpop.f32.mrf.mxu2  ;;  %v5653_v35 = vadd.f32 %v5652_v52, %v5624_v18 }
 0x3b1   : > { %v5568_v11 = vadd.f32 %v5567_v38, %v12594_v34 }
 0x3b3   : > { %v5596_v14 = vpop.f32.mrf.mxu3 }
 0x3b4   : > { %v12614_v4 = vpop.f32.mrf.mxu0  ;;  %v5597_v41 = vadd.f32 %v5596_v14, %v5568_v11 }
 0x3b5   : > { %v12616_v61 = vpop.f32.mrf.mxu1 }
 0x3b6   : > { %v5626_v49 = vadd.f32 %v5625_v44, %v5597_v41 }
 0x3b8   : > { %v5570_v57 = vpop.f32.mrf.mxu2 }
 0x3b9   : > { %v5571_v50 = vadd.f32 %v5570_v57, %v12597_v15 }
 0x3bb   : > { %v5599_v58 = vpop.f32.mrf.mxu3 }
 0x3bc   : > { %v12618_v32 = vpop.f32.mrf.mxu0  ;;  %v5600_v38 = vadd.f32 %v5599_v58, %v5571_v50 }
 0x3bd   : > { %v12620_v20 = vpop.f32.mrf.mxu1 }
 0x3c0   : > { %v12622_v29 = vpop.f32.mrf.mxu2 }
 0x3c1   : > { %v5573_v44 = vadd.f32 %v12622_v29, %v12604_v6 }
 0x3c3   : > { %v12624_v5 = vpop.f32.mrf.mxu3 }
 0x3c4   : > { %v12626_v60 = vpop.f32.mrf.mxu0 }
 0x3c5   : > { %v12628_v7 = vpop.f32.mrf.mxu1 }
 0x3c8   : > { %v12630_v10 = vpop.f32.mrf.mxu2 }
 0x3c9   : > { %v5576_v6 = vadd.f32 %v12630_v10, %v12607_v46 }
 0x3cb   : > { %v12632_v25 = vpop.f32.mrf.mxu3 }
 0x3cc   : > { %v12634_v31 = vpop.f32.mrf.mxu0  ;;  %v5605_v23 = vadd.f32 %v12632_v25, %v5576_v6 }
 0x3cd   : > { %v12637_v12 = vpop.f32.mrf.mxu1 }
 0x3d0   : > { %v12639_v42 = vpop.f32.mrf.mxu2 }
 0x3d1   : > { %v5578_v46 = vadd.f32 %v12639_v42, %v12610_v40 }
 0x3d3   : > { %v12641_v55 = vpop.f32.mrf.mxu3 }
 0x3d4   : > { %v5734_v36 = vpop.f32.mrf.mxu0  ;;  %v5607_v25 = vadd.f32 %v12641_v55, %v5578_v46 }
 0x3d5   : > { %v5763_v45 = vpop.f32.mrf.mxu1 }
 0x3d8   : > { %v5676_v8 = vpop.f32.mrf.mxu2 }
 0x3d9   : > { %v5677_v24 = vadd.f32 %v5676_v8, %v5648_v1  ;;  %v5629_v8 = vadd.f32 %v12614_v4, %v5600_v38 }
 0x3db   : > { %v5705_v51 = vpop.f32.mrf.mxu3 }
 0x3dc   : > { %v5736_v17 = vpop.f32.mrf.mxu0  ;;  %v5706_v33 = vadd.f32 %v5705_v51, %v5677_v24  ;;  %v5602_v51 = vadd.f32 %v12624_v5, %v5573_v44 }
 0x3dd   : > { %v5765_v54 = vpop.f32.mrf.mxu1 }
 0x3de   : > { %v5735_v56 = vadd.f32 %v5734_v36, %v5706_v33  ;;  %v5631_v4 = vadd.f32 %v12618_v32, %v5602_v51  ;;  %v5634_v32 = vadd.f32 %v12626_v60, %v5605_v23  ;;  %v5636_v60 = vadd.f32 %v12634_v31, %v5607_v25 }
 0x3e0   : > { %v5764_v63 = vadd.f32 %v5763_v45, %v5735_v56  ;;  %v5678_v2 = vpop.f32.mrf.mxu2  ;;  %v5655_v45 = vadd.f32 %v12612_v59, %v5626_v49  ;;  %v5665_v55 = vadd.f32 %v12637_v12, %v5636_v60 }
 0x3e1   : > { %v5679_v53 = vadd.f32 %v5678_v2, %v5650_v3 }
 0x3e2   : > { %v5785_v47 = vmax.f32 %v5764_v63, 0.0  ;;  %v5660_v63 = vadd.f32 %v12620_v20, %v5631_v4  ;;  %v5663_v20 = vadd.f32 %v12628_v7, %v5634_v32 }
 0x3e3   : > { %v5707_v27 = vpop.f32.mrf.mxu3 }
 0x3e4   : > { %v5739_v19 = vpop.f32.mrf.mxu0  ;;  %5809 = vst [vmem:[%s10946_s7 + $0x10] sm:$0xff] %v5785_v47  ;;  %v5708_v48 = vadd.f32 %v5707_v27, %v5679_v53 }
 0x3e5   : > { %v5768_v62 = vpop.f32.mrf.mxu1 }
 0x3e6   : > { %v5737_v13 = vadd.f32 %v5736_v17, %v5708_v48  ;;  %v5658_v17 = vadd.f32 %v12616_v61, %v5629_v8 }
 0x3e8   : > { %v5766_v0 = vadd.f32 %v5765_v54, %v5737_v13  ;;  %v5681_v21 = vpop.f32.mrf.mxu2 }
 0x3e9   : > { %v5682_v43 = vadd.f32 %v5681_v21, %v5653_v35 }
 0x3ea   : > { %v5788_v30 = vmax.f32 %v5766_v0, 0.0 }
 0x3eb   : > { %v5710_v22 = vpop.f32.mrf.mxu3 }
 0x3ec   : > { %5812 = vst [vmem:[%s10946_s7 + $0x28] sm:$0xff] %v5788_v30  ;;  %v5711_v36 = vadd.f32 %v5710_v22, %v5682_v43  ;;  %v5741_v9 = vpop.f32.mrf.mxu0 }
 0x3ed   : > { %v5770_v34 = vpop.f32.mrf.mxu1 }
 0x3ee   : > { %v5740_v28 = vadd.f32 %v5739_v19, %v5711_v36 }
 0x3f0   : > { %v5769_v39 = vadd.f32 %v5768_v62, %v5740_v28  ;;  %v5683_v14 = vpop.f32.mrf.mxu2 }
 0x3f1   : > { %v5684_v52 = vadd.f32 %v5683_v14, %v5655_v45 }
 0x3f2   : > { %v5791_v16 = vmax.f32 %v5769_v39, 0.0 }
 0x3f3   : > { %v5712_v1 = vpop.f32.mrf.mxu3 }
 0x3f4   : > { %5815 = vst [vmem:[%s10946_s7 + $0x40] sm:$0xff] %v5791_v16  ;;  %v5713_v15 = vadd.f32 %v5712_v1, %v5684_v52  ;;  %v5744_v24 = vpop.f32.mrf.mxu0 }
 0x3f5   : > { %v5773_v59 = vpop.f32.mrf.mxu1 }
 0x3f6   : > { %v5742_v57 = vadd.f32 %v5741_v9, %v5713_v15 }
 0x3f8   : > { %v5771_v58 = vadd.f32 %v5770_v34, %v5742_v57  ;;  %v5686_v26 = vpop.f32.mrf.mxu2 }
 0x3f9   : > { %v5687_v33 = vadd.f32 %v5686_v26, %v5658_v17 }
 0x3fa   : > { %v5794_v37 = vmax.f32 %v5771_v58, 0.0 }
 0x3fb   : > { %v5715_v54 = vpop.f32.mrf.mxu3 }
 0x3fc   : > { %5818 = vst [vmem:[%s10946_s7 + $0x58] sm:$0xff] %v5794_v37  ;;  %v5716_v29 = vadd.f32 %v5715_v54, %v5687_v33  ;;  %v5746_v61 = vpop.f32.mrf.mxu0 }
 0x3fd   : > { %v5775_v27 = vpop.f32.mrf.mxu1 }
 0x3fe   : > { %v5745_v56 = vadd.f32 %v5744_v24, %v5716_v29 }
 0x400   : > { %v5774_v5 = vadd.f32 %v5773_v59, %v5745_v56  ;;  %v5688_v3 = vpop.f32.mrf.mxu2 }
 0x401   : > { %v5689_v47 = vadd.f32 %v5688_v3, %v5660_v63 }
 0x402   : > { %v5797_v2 = vmax.f32 %v5774_v5, 0.0 }
 0x403   : > { %v5717_v53 = vpop.f32.mrf.mxu3 }
 0x404   : > { %5821 = vst [vmem:[%s10946_s7 + $0x70] sm:$0xff] %v5797_v2  ;;  %v5718_v10 = vadd.f32 %v5717_v53, %v5689_v47  ;;  %v5749_v41 = vpop.f32.mrf.mxu0 }
 0x405   : > { %v5778_v42 = vpop.f32.mrf.mxu1 }
 0x406   : > { %v5747_v19 = vadd.f32 %v5746_v61, %v5718_v10 }
 0x408   : > { %v5776_v18 = vadd.f32 %v5775_v27, %v5747_v19  ;;  %v5691_v11 = vpop.f32.mrf.mxu2 }
 0x409   : > { %v5692_v62 = vadd.f32 %v5691_v11, %v5663_v20 }
 0x40a   : > { %v5800_v48 = vmax.f32 %v5776_v18, 0.0 }
 0x40b   : > { %v5720_v13 = vpop.f32.mrf.mxu3 }
 0x40c   : > { %5824 = vst [vmem:[%s10946_s7 + $0x88] sm:$0xff] %v5800_v48  ;;  %v5721_v40 = vadd.f32 %v5720_v13, %v5692_v62  ;;  %v5751_v22 = vpop.f32.mrf.mxu0 }
 0x40d   : > { %v5780_v50 = vpop.f32.mrf.mxu1 }
 0x40e   : > { %v5750_v0 = vadd.f32 %v5749_v41, %v5721_v40 }
 0x410   : > { %v5779_v35 = vadd.f32 %v5778_v42, %v5750_v0  ;;  %v5693_v21 = vpop.f32.mrf.mxu2 }
 0x411   : > { %v5694_v30 = vadd.f32 %v5693_v21, %v5665_v55 }
 0x412   : > { %v5803_v7 = vmax.f32 %v5779_v35, 0.0 }
 0x413   : > { %v5722_v43 = vpop.f32.mrf.mxu3 }
 0x414   : > { %5827 = vst [vmem:[%s10946_s7 + $0xa0] sm:$0xff] %v5803_v7  ;;  %v5723_v31 = vadd.f32 %v5722_v43, %v5694_v30 }
 0x416   : > { %v5752_v49 = vadd.f32 %v5751_v22, %v5723_v31 }
 0x418   : > { %v5781_v36 = vadd.f32 %v5780_v50, %v5752_v49 }
 0x41a   : > { %v5806_v12 = vmax.f32 %v5781_v36, 0.0 }
 0x41c   : > { %5830 = vst [vmem:[%s10946_s7 + $0xb8] sm:$0xff] %v5806_v12 }
 0x41d   : > { %8630 = shalt.err (!%p8627_p3)
}
 0x41e   : > { %s8667_s5 = smov 384   ;;  %s8668_s7 = smov 24  }
 0x41f   : > { %8560 = dma.vmem_to_hbm [thread:$0]  (%p8727_p5), %s5845_s17, 3072, %s5847_s16, %s5832_s20, %s8667_s5, %s8667_s5, %s8668_s7  }
 0x420 PF: > { %p8566_p4 = scmp.ge.s32.totalorder %s8665_s15, 2  ;;  %s5861_s29 = sand.u32 1, %s8653_s12  }
 0x421   : > { %s5862_s30 = scalar_lea.sflag [#allocation4], %s5861_s29 }
 0x422   : > { %p8563_p7 = pnand %p8566_p4, %p8731_p6 }
 0x424   : > { %p8564_p8 = pneg %p8563_p7 }
 0x426   : > { %8648 = dma.done.wait (%p8564_p8), %s5862_s30, 3072  }
 0x427   : > { %8650 = vsyncadd (%p8564_p8), %s5862_s30, 4294964224  ;;  %p13_p9 = scmp.ge.s32.totalorder %s8714_s18, 4   ;;  %s12993_s12 = smov %s8657_s13 }
 0x428   : > { %s12994_s13 = smov %s8661_s14  ;;  %s12995_s14 = smov %s8725_s21 }
 0x429   : > { %s12996_s15 = smov %s8714_s18  ;;  %15 = sbr.rel (!%p13_p9) target bundleno = 3 (0x3), region = 69 }
 0x42e   :  { %5868 = vsyncpa [#allocation4], 1 }
 0x42f   :  { %5870 = vsyncpa [#allocation4 + $0x1], 1 }

</bundles_post_ra>
